<compile_context>
chip_gen: v7x
topology: tpu7x:2x2x1
jax: 0.10.0
libtpu: 0.0.40
codegen_flags: <defaults>
</compile_context>

<pallas_src>
import functools

import jax
import jax.numpy as jnp
from jax import lax
from jax.experimental import pallas as pl
from jax.experimental.pallas import tpu as pltpu

NUM_HEADS = 4
HEAD_DIM = 8
INNER = NUM_HEADS * HEAD_DIM
LN_EPS = 1e-5
MXU_DTYPE = jnp.bfloat16  # MXU operand dtype (f32 accumulate); element-wise math stays f32.


def _layer_norm(x, g, b):
    mu = jnp.mean(x, axis=-1, keepdims=True)
    xc = x - mu
    var = jnp.mean(xc * xc, axis=-1, keepdims=True)
    return xc * lax.rsqrt(var + LN_EPS) * g + b


def _apply_layer(xq2, xkv2, nq, nk, lp, *, self_attn, approx_recip):
    """One MultiHead{Self,Cross}AttentionLayer on batch-flattened activations.

    xq2: (m*nq, d) f32; xkv2: (m*nk, d) f32 (same object as xq2 for self-attn).
    lp = (wqkv, bqkv, wo, w1, b1, w2, vecd) packed per-layer weights:
      wqkv (d, 3*INNER) bf16 (scale folded into q cols), bqkv (1, 3*INNER) f32,
      wo (INNER, d) bf16, w1 (d, ff) bf16, b1 (1, ff) f32, w2 (ff, d) bf16,
      vecd (6, d) f32 rows = [bo, ln1g, ln1b, b2, ln2g, ln2b].
    Pure jnp math shared by the Pallas kernel body and the matched JAX reference.
    """
    wqkv, bqkv, wo, w1, b1, w2, vecd = lp
    d = xq2.shape[-1]
    m = xq2.shape[0] // nq
    bo, ln1g, ln1b, b2, ln2g, ln2b = (vecd[i:i + 1, :] for i in range(6))

    if self_attn:
        # Single fused (m*n, d) @ (d, 3*INNER) projection.
        qkv = jnp.dot(xq2.astype(MXU_DTYPE), wqkv,
                      preferred_element_type=jnp.float32) + bqkv
        q_all, kv_all, k_off, v_off = qkv, qkv, INNER, 2 * INNER
    else:
        # q from xq; fused k|v from xkv.
        q_all = jnp.dot(xq2.astype(MXU_DTYPE), wqkv[:, :INNER],
                        preferred_element_type=jnp.float32) + bqkv[:, :INNER]
        kv_all = jnp.dot(xkv2.astype(MXU_DTYPE), wqkv[:, INNER:],
                         preferred_element_type=jnp.float32) + bqkv[:, INNER:]
        k_off, v_off = 0, INNER

    attn = None  # output projection distributed over heads (no lane concat)
    for h in range(NUM_HEADS):  # static 4-way unroll; contractions batched over m
        qs = slice(h * HEAD_DIM, (h + 1) * HEAD_DIM)
        q_h = q_all[:, qs].reshape(m, nq, HEAD_DIM).astype(MXU_DTYPE)
        k_h = kv_all[:, k_off + h * HEAD_DIM:k_off + (h + 1) * HEAD_DIM]
        k_h = k_h.reshape(m, nk, HEAD_DIM).astype(MXU_DTYPE)
        v_h = kv_all[:, v_off + h * HEAD_DIM:v_off + (h + 1) * HEAD_DIM]
        v_h = v_h.reshape(m, nk, HEAD_DIM).astype(MXU_DTYPE)

        # scale already folded into q columns at pack time
        s = jnp.einsum('bqd,bkd->bqk', q_h, k_h, preferred_element_type=jnp.float32)
        s = s - jnp.max(s, axis=-1, keepdims=True)
        p = jnp.exp(s)
        denom = jnp.sum(p, axis=-1, keepdims=True)
        if approx_recip:
            p = p * pl.reciprocal(denom, approx=True)  # EUP slot (otherwise idle)
        else:
            p = p / denom
        o_h = jnp.einsum('bqk,bkd->bqd', p.astype(MXU_DTYPE), v_h,
                         preferred_element_type=jnp.float32)
        contrib = jnp.dot(o_h.reshape(m * nq, HEAD_DIM).astype(MXU_DTYPE), wo[qs, :],
                          preferred_element_type=jnp.float32)
        attn = contrib if attn is None else attn + contrib

    # post-norm residual block 1 (attention); element-wise math in f32
    z = _layer_norm(xq2 + attn + bo, ln1g, ln1b)
    # post-norm residual block 2 (ReLU feed-forward)
    h1 = jnp.maximum(
        jnp.dot(z.astype(MXU_DTYPE), w1, preferred_element_type=jnp.float32) + b1, 0.0)
    ff = jnp.dot(h1.astype(MXU_DTYPE), w2, preferred_element_type=jnp.float32) + b2
    return _layer_norm(z + ff, ln2g, ln2b)


def _encoder_kernel(xc_ref, xt_ref, wqkv_ref, wo_ref, w1_ref, w2_ref,
                    bqkv_ref, vecd_ref, b1_ref, out_ref, *, num_layers):
    """Fused encoder: all layers, whole (sub-)batch, all weights VMEM-resident."""
    mb, nc, d = xc_ref.shape
    nt = xt_ref.shape[1]
    xc2 = xc_ref[...].reshape(mb * nc, d)
    xt2 = xt_ref[...].reshape(mb * nt, d)

    def layer_params(t, l):  # t: 0=self-attn stack, 1=cross-attn stack
        return (wqkv_ref[t, l], bqkv_ref[t, l], wo_ref[t, l],
                w1_ref[t, l], b1_ref[t, l], w2_ref[t, l], vecd_ref[t, l])

    # TODO(synk): for num_layers > ~4 switch to lax.fori_loop carrying (xc2, xt2)
    #             (weights indexed dynamically) to bound code size; unroll is free here.
    for l in range(num_layers):
        xc2 = _apply_layer(xc2, xc2, nc, nc, layer_params(0, l),
                           self_attn=True, approx_recip=True)
        xt2 = _apply_layer(xt2, xc2, nt, nc, layer_params(1, l),
                           self_attn=False, approx_recip=True)
    out_ref[...] = xt2.reshape(mb, nt, d).astype(out_ref.dtype)  # single full-block store


# ----------------------------- host-side packing -----------------------------
def _pack_layer(p):
    (wq, bq, wk, bk, wv, bv, wo, bo, ln1g, ln1b, w1, b1, w2, b2, ln2g, ln2b) = p
    scale = HEAD_DIM ** -0.5
    wqkv = jnp.concatenate([wq * scale, wk, wv], axis=1)        # (d, 3*INNER), scale folded
    bqkv = jnp.concatenate([bq * scale, bk, bv])[None, :]       # (1, 3*INNER)
    vecd = jnp.stack([bo, ln1g, ln1b, b2, ln2g, ln2b], axis=0)  # (6, d)
    return wqkv, bqkv, wo, w1, b1[None, :], w2, vecd


def _pack_params(mhsa_params, mhca_params):
    """Pack 2 x L per-layer tuples into 7 stacked operands (bf16 matrices, f32 vecs)."""
    per = [[_pack_layer(p) for p in plist] for plist in (mhsa_params, mhca_params)]

    def stack(idx, dt):
        return jnp.stack([jnp.stack([per[t][l][idx] for l in range(len(per[t]))])
                          for t in range(2)]).astype(dt)

    wqkv = stack(0, MXU_DTYPE)   # (2, L, d, 3*INNER)
    bqkv = stack(1, jnp.float32)  # (2, L, 1, 3*INNER)
    wo = stack(2, MXU_DTYPE)     # (2, L, INNER, d)
    w1 = stack(3, MXU_DTYPE)     # (2, L, d, ff)
    b1 = stack(4, jnp.float32)   # (2, L, 1, ff)
    w2 = stack(5, MXU_DTYPE)     # (2, L, ff, d)
    vecd = stack(6, jnp.float32)  # (2, L, 6, d)
    return wqkv, wo, w1, w2, bqkv, vecd, b1


@functools.partial(jax.jit, static_argnames=("num_layers", "batch_parallel"))
def tnp_transformer_encoder(xc, xt, mhsa_params, mhca_params, *,
                            num_layers, batch_parallel=False):
    """for each layer l: xc = MHSA_l(xc); xt = MHCA_l(xt, xc); return xt.

    mhsa_params / mhca_params: length-num_layers lists of per-layer 16-tuples
    (wq, bq, wk, bk, wv, bv, wo, bo, ln1g, ln1b, w1, b1, w2, b2, ln2g, ln2b).
    batch_parallel=True grids the batch ('parallel') so v7x's 2 TensorCores share it.
    """
    assert len(mhsa_params) == num_layers and len(mhca_params) == num_layers
    m, nc, d = xc.shape
    nt = xt.shape[1]
    packed = _pack_params(mhsa_params, mhca_params)
    kernel = functools.partial(_encoder_kernel, num_layers=num_layers)
    out_shape = jax.ShapeDtypeStruct((m, nt, d), xt.dtype)

    if not batch_parallel:
        # Single fused, no-grid, fully VMEM-resident call (best on v5e/v6e single TC).
        return pl.pallas_call(kernel, out_shape=out_shape)(xc, xt, *packed)

    # v7x path: parallel grid over the batch; weights use constant block index
    # (fetched once), activations/output get one batch element per grid step.
    def full_spec(a):
        nd = a.ndim
        return pl.BlockSpec(a.shape, lambda i, _nd=nd: (0,) * _nd)

    grid_spec = pltpu.PrefetchScalarGridSpec(
        num_scalar_prefetch=0,
        grid=(m,),
        in_specs=[pl.BlockSpec((1, nc, d), lambda i: (i, 0, 0)),
                  pl.BlockSpec((1, nt, d), lambda i: (i, 0, 0))]
                 + [full_spec(a) for a in packed],
        out_specs=pl.BlockSpec((1, nt, d), lambda i: (i, 0, 0)),
    )
    return pl.pallas_call(
        kernel, out_shape=out_shape, grid_spec=grid_spec,
        compiler_params=pltpu.CompilerParams(dimension_semantics=("parallel",)),
    )(xc, xt, *packed)


def init_layer_params(key, d, ff):
    """Deterministic synthetic init for one attention layer (no checkpoint)."""
    ks = jax.random.split(key, 16)
    s = 0.05
    n = lambda k, shp: jax.random.normal(k, shp, jnp.float32) * s
    wq = n(ks[0], (d, INNER)); bq = n(ks[1], (INNER,))
    wk = n(ks[2], (d, INNER)); bk = n(ks[3], (INNER,))
    wv = n(ks[4], (d, INNER)); bv = n(ks[5], (INNER,))
    wo = n(ks[6], (INNER, d)); bo = n(ks[7], (d,))
    ln1g = 1.0 + n(ks[8], (d,)); ln1b = n(ks[9], (d,))
    w1 = n(ks[10], (d, ff)); b1 = n(ks[11], (ff,))
    w2 = n(ks[12], (ff, d)); b2 = n(ks[13], (d,))
    ln2g = 1.0 + n(ks[14], (d,)); ln2b = n(ks[15], (d,))
    return (wq, bq, wk, bk, wv, bv, wo, bo, ln1g, ln1b, w1, b1, w2, b2, ln2g, ln2b)


# ----------------------------- references -----------------------------
def _ref_layer_f32(xq, xkv, p):
    (wq, bq, wk, bk, wv, bv, wo, bo, ln1g, ln1b, w1, b1, w2, b2, ln2g, ln2b) = p
    q = xq @ wq + bq
    k = xkv @ wk + bk
    v = xkv @ wv + bv
    m, nq, _ = q.shape
    nk = k.shape[1]
    qh = q.reshape(m, nq, NUM_HEADS, HEAD_DIM)
    kh = k.reshape(m, nk, NUM_HEADS, HEAD_DIM)
    vh = v.reshape(m, nk, NUM_HEADS, HEAD_DIM)
    s = jnp.einsum('mqhd,mkhd->mhqk', qh, kh) * (HEAD_DIM ** -0.5)
    p_att = jax.nn.softmax(s, axis=-1)
    o = jnp.einsum('mhqk,mkhd->mqhd', p_att, vh).reshape(m, nq, -1)
    attn = o @ wo + bo
    z = _layer_norm(xq + attn, ln1g, ln1b)
    ffv = jnp.maximum(z @ w1 + b1, 0.0) @ w2 + b2
    return _layer_norm(z + ffv, ln2g, ln2b)


def _ref_encoder_f32(xc, xt, mhsa_params, mhca_params):
    for sp, cp in zip(mhsa_params, mhca_params):
        xc = _ref_layer_f32(xc, xc, sp)
        xt = _ref_layer_f32(xt, xc, cp)
    return xt


def _ref_encoder_matched(xc, xt, mhsa_params, mhca_params):
    """Same math/casting as the kernel (bf16 MXU operands; exact reciprocal)."""
    m, nc, d = xc.shape
    nt = xt.shape[1]
    wqkv, wo, w1, w2, bqkv, vecd, b1 = _pack_params(mhsa_params, mhca_params)
    xc2 = xc.reshape(m * nc, d)
    xt2 = xt.reshape(m * nt, d)
    for l in range(len(mhsa_params)):
        lp_s = (wqkv[0, l], bqkv[0, l], wo[0, l], w1[0, l], b1[0, l], w2[0, l], vecd[0, l])
        lp_c = (wqkv[1, l], bqkv[1, l], wo[1, l], w1[1, l], b1[1, l], w2[1, l], vecd[1, l])
        xc2 = _apply_layer(xc2, xc2, nc, nc, lp_s, self_attn=True, approx_recip=False)
        xt2 = _apply_layer(xt2, xc2, nt, nc, lp_c, self_attn=False, approx_recip=False)
    return xt2.reshape(m, nt, d)


if __name__ == "__main__":
    m, nc, nt, d, ff = 2, 16, 8, 32, 32
    num_layers = 2

    key = jax.random.PRNGKey(0)
    kxc, kxt, kself, kcross = jax.random.split(key, 4)
    xc = jax.random.normal(kxc, (m, nc, d), jnp.float32)
    xt = jax.random.normal(kxt, (m, nt, d), jnp.float32)

    # Distinct weights per layer (matches a trained checkpoint; a freshly constructed
    # module with _get_clones would simply pass identical tuples).
    mhsa_params = [init_layer_params(k, d, ff) for k in jax.random.split(kself, num_layers)]
    mhca_params = [init_layer_params(k, d, ff) for k in jax.random.split(kcross, num_layers)]

    out = tnp_transformer_encoder(xc, xt, mhsa_params, mhca_params,
                                  num_layers=num_layers)
    out = jax.block_until_ready(out)
    assert out.shape == (m, nt, d)

    # Matched-semantics reference (same bf16 MXU rounding; exact reciprocal).
    ref_m = _ref_encoder_matched(xc, xt, mhsa_params, mhca_params)
    assert jnp.allclose(out, ref_m, rtol=1e-2, atol=1e-2), "mismatch vs matched reference"

    # Independent pure-f32 einsum reference (loose: kernel uses bf16 MXU operands).
    ref_f32 = _ref_encoder_f32(xc, xt, mhsa_params, mhca_params)
    assert jnp.allclose(out, ref_f32, rtol=5e-2, atol=5e-2), "mismatch vs f32 reference"

    # v7x-oriented batch-parallel grid path: same math, one batch element per grid step.
    out_par = tnp_transformer_encoder(xc, xt, mhsa_params, mhca_params,
                                      num_layers=num_layers, batch_parallel=True)
    out_par = jax.block_until_ready(out_par)
    assert jnp.allclose(out_par, out, rtol=1e-4, atol=1e-4), "mismatch grid vs fused path"

    print("KERNEL_OK")
</pallas_src>

<mosaic_0001>
module attributes {stable_mosaic.version = 11 : i64} {
  func.func @_encoder_kernel(%arg0: memref<2x16x32xf32, #tpu.memory_space<vmem>>, %arg1: memref<2x8x32xf32, #tpu.memory_space<vmem>>, %arg2: memref<2x2x32x96xbf16, #tpu.memory_space<vmem>>, %arg3: memref<2x2x32x32xbf16, #tpu.memory_space<vmem>>, %arg4: memref<2x2x32x32xbf16, #tpu.memory_space<vmem>>, %arg5: memref<2x2x32x32xbf16, #tpu.memory_space<vmem>>, %arg6: memref<2x2x1x96xf32, #tpu.memory_space<vmem>>, %arg7: memref<2x2x6x32xf32, #tpu.memory_space<vmem>>, %arg8: memref<2x2x1x32xf32, #tpu.memory_space<vmem>>, %arg9: memref<2x8x32xf32, #tpu.memory_space<vmem>>) attributes {dimension_semantics = [], scalar_prefetch = 0 : i64, scratch_operands = 0 : i64, tpu.core_type = #tpu.core_type<tc>} {
    %c0 = arith.constant 0 : index
    %c0_0 = arith.constant 0 : index
    %c0_1 = arith.constant 0 : index
    %0 = vector.load %arg0[%c0, %c0_0, %c0_1] : memref<2x16x32xf32, #tpu.memory_space<vmem>>, vector<2x16x32xf32>
    %1 = vector.shape_cast %0 : vector<2x16x32xf32> to vector<32x32xf32>
    %c0_2 = arith.constant 0 : index
    %c0_3 = arith.constant 0 : index
    %c0_4 = arith.constant 0 : index
    %2 = vector.load %arg1[%c0_2, %c0_3, %c0_4] : memref<2x8x32xf32, #tpu.memory_space<vmem>>, vector<2x8x32xf32>
    %3 = vector.shape_cast %2 : vector<2x8x32xf32> to vector<16x32xf32>
    %c0_5 = arith.constant 0 : index
    %c0_6 = arith.constant 0 : index
    %c0_7 = arith.constant 0 : index
    %c0_8 = arith.constant 0 : index
    %4 = vector.load %arg2[%c0_5, %c0_6, %c0_7, %c0_8] : memref<2x2x32x96xbf16, #tpu.memory_space<vmem>>, vector<1x1x32x96xbf16>
    %5 = vector.shape_cast %4 : vector<1x1x32x96xbf16> to vector<32x96xbf16>
    %c0_9 = arith.constant 0 : index
    %c0_10 = arith.constant 0 : index
    %c0_11 = arith.constant 0 : index
    %c0_12 = arith.constant 0 : index
    %6 = vector.load %arg6[%c0_9, %c0_10, %c0_11, %c0_12] : memref<2x2x1x96xf32, #tpu.memory_space<vmem>>, vector<1x1x1x96xf32>
    %7 = vector.shape_cast %6 : vector<1x1x1x96xf32> to vector<1x96xf32>
    %c0_13 = arith.constant 0 : index
    %c0_14 = arith.constant 0 : index
    %c0_15 = arith.constant 0 : index
    %c0_16 = arith.constant 0 : index
    %8 = vector.load %arg3[%c0_13, %c0_14, %c0_15, %c0_16] : memref<2x2x32x32xbf16, #tpu.memory_space<vmem>>, vector<1x1x32x32xbf16>
    %9 = vector.shape_cast %8 : vector<1x1x32x32xbf16> to vector<32x32xbf16>
    %c0_17 = arith.constant 0 : index
    %c0_18 = arith.constant 0 : index
    %c0_19 = arith.constant 0 : index
    %c0_20 = arith.constant 0 : index
    %10 = vector.load %arg4[%c0_17, %c0_18, %c0_19, %c0_20] : memref<2x2x32x32xbf16, #tpu.memory_space<vmem>>, vector<1x1x32x32xbf16>
    %11 = vector.shape_cast %10 : vector<1x1x32x32xbf16> to vector<32x32xbf16>
    %c0_21 = arith.constant 0 : index
    %c0_22 = arith.constant 0 : index
    %c0_23 = arith.constant 0 : index
    %c0_24 = arith.constant 0 : index
    %12 = vector.load %arg8[%c0_21, %c0_22, %c0_23, %c0_24] : memref<2x2x1x32xf32, #tpu.memory_space<vmem>>, vector<1x1x1x32xf32>
    %13 = vector.shape_cast %12 : vector<1x1x1x32xf32> to vector<1x32xf32>
    %c0_25 = arith.constant 0 : index
    %c0_26 = arith.constant 0 : index
    %c0_27 = arith.constant 0 : index
    %c0_28 = arith.constant 0 : index
    %14 = vector.load %arg5[%c0_25, %c0_26, %c0_27, %c0_28] : memref<2x2x32x32xbf16, #tpu.memory_space<vmem>>, vector<1x1x32x32xbf16>
    %15 = vector.shape_cast %14 : vector<1x1x32x32xbf16> to vector<32x32xbf16>
    %c0_29 = arith.constant 0 : index
    %c0_30 = arith.constant 0 : index
    %c0_31 = arith.constant 0 : index
    %c0_32 = arith.constant 0 : index
    %16 = vector.load %arg7[%c0_29, %c0_30, %c0_31, %c0_32] : memref<2x2x6x32xf32, #tpu.memory_space<vmem>>, vector<1x1x6x32xf32>
    %17 = vector.shape_cast %16 : vector<1x1x6x32xf32> to vector<6x32xf32>
    %18 = vector.extract_strided_slice %17 {offsets = [0, 0], sizes = [1, 32], strides = [1, 1]} : vector<6x32xf32> to vector<1x32xf32>
    %19 = vector.extract_strided_slice %17 {offsets = [1, 0], sizes = [1, 32], strides = [1, 1]} : vector<6x32xf32> to vector<1x32xf32>
    %20 = vector.extract_strided_slice %17 {offsets = [2, 0], sizes = [1, 32], strides = [1, 1]} : vector<6x32xf32> to vector<1x32xf32>
    %21 = vector.extract_strided_slice %17 {offsets = [3, 0], sizes = [1, 32], strides = [1, 1]} : vector<6x32xf32> to vector<1x32xf32>
    %22 = vector.extract_strided_slice %17 {offsets = [4, 0], sizes = [1, 32], strides = [1, 1]} : vector<6x32xf32> to vector<1x32xf32>
    %23 = vector.extract_strided_slice %17 {offsets = [5, 0], sizes = [1, 32], strides = [1, 1]} : vector<6x32xf32> to vector<1x32xf32>
    %24 = arith.truncf %1 : vector<32x32xf32> to vector<32x32xbf16>
    %cst = arith.constant dense<0.000000e+00> : vector<32x96xf32>
    %25 = tpu.matmul %24, %5, %cst {dimension_numbers = #tpu.dot_dimension_numbers<[1], [0], [0], [1], [0, 0, 1, 1], [], []>} : vector<32x32xbf16>, vector<32x96xbf16>, vector<32x96xf32> -> vector<32x96xf32>
    %26 = vector.broadcast %7 : vector<1x96xf32> to vector<32x96xf32>
    %27 = arith.addf %25, %26 : vector<32x96xf32>
    %28 = vector.extract_strided_slice %27 {offsets = [0, 0], sizes = [32, 8], strides = [1, 1]} : vector<32x96xf32> to vector<32x8xf32>
    %29 = vector.shape_cast %28 : vector<32x8xf32> to vector<2x16x8xf32>
    %30 = arith.truncf %29 : vector<2x16x8xf32> to vector<2x16x8xbf16>
    %31 = vector.extract_strided_slice %27 {offsets = [0, 32], sizes = [32, 8], strides = [1, 1]} : vector<32x96xf32> to vector<32x8xf32>
    %32 = vector.shape_cast %31 : vector<32x8xf32> to vector<2x16x8xf32>
    %33 = arith.truncf %32 : vector<2x16x8xf32> to vector<2x16x8xbf16>
    %34 = vector.extract_strided_slice %27 {offsets = [0, 64], sizes = [32, 8], strides = [1, 1]} : vector<32x96xf32> to vector<32x8xf32>
    %35 = vector.shape_cast %34 : vector<32x8xf32> to vector<2x16x8xf32>
    %36 = arith.truncf %35 : vector<2x16x8xf32> to vector<2x16x8xbf16>
    "tpu.trace_start"() <{level = 10 : i32, message = "bqd,bkd->bqk"}> : () -> ()
    %cst_33 = arith.constant dense<0.000000e+00> : vector<2x16x16xf32>
    %37 = tpu.matmul %30, %33, %cst_33 {dimension_numbers = #tpu.dot_dimension_numbers<[2], [2], [1], [1], [0, 0, 0, 1, 1, 1], [0], [0]>} : vector<2x16x8xbf16>, vector<2x16x8xbf16>, vector<2x16x16xf32> -> vector<2x16x16xf32>
    "tpu.trace_stop"() : () -> ()
    %cst_34 = arith.constant dense<0xFF800000> : vector<2x16xf32>
    %38 = vector.multi_reduction <maximumf>, %37, %cst_34 [2] : vector<2x16x16xf32> to vector<2x16xf32>
    %39 = vector.shape_cast %38 : vector<2x16xf32> to vector<2x16x1xf32>
    %40 = vector.broadcast %39 : vector<2x16x1xf32> to vector<2x16x16xf32>
    %41 = arith.subf %37, %40 : vector<2x16x16xf32>
    %42 = math.exp %41 : vector<2x16x16xf32>
    %cst_35 = arith.constant dense<0.000000e+00> : vector<2x16xf32>
    %43 = vector.multi_reduction <add>, %42, %cst_35 [2] : vector<2x16x16xf32> to vector<2x16xf32>
    %44 = vector.shape_cast %43 : vector<2x16xf32> to vector<2x16x1xf32>
    %45 = tpu.reciprocal %44 {approx = true} : vector<2x16x1xf32> -> vector<2x16x1xf32>
    %46 = vector.broadcast %45 : vector<2x16x1xf32> to vector<2x16x16xf32>
    %47 = arith.mulf %42, %46 : vector<2x16x16xf32>
    %48 = arith.truncf %47 : vector<2x16x16xf32> to vector<2x16x16xbf16>
    "tpu.trace_start"() <{level = 10 : i32, message = "bqk,bkd->bqd"}> : () -> ()
    %cst_36 = arith.constant dense<0.000000e+00> : vector<2x16x8xf32>
    %49 = tpu.matmul %48, %36, %cst_36 {dimension_numbers = #tpu.dot_dimension_numbers<[2], [1], [1], [2], [0, 0, 0, 1, 1, 2], [0], [0]>} : vector<2x16x16xbf16>, vector<2x16x8xbf16>, vector<2x16x8xf32> -> vector<2x16x8xf32>
    "tpu.trace_stop"() : () -> ()
    %50 = vector.shape_cast %49 : vector<2x16x8xf32> to vector<32x8xf32>
    %51 = arith.truncf %50 : vector<32x8xf32> to vector<32x8xbf16>
    %52 = vector.extract_strided_slice %9 {offsets = [0, 0], sizes = [8, 32], strides = [1, 1]} : vector<32x32xbf16> to vector<8x32xbf16>
    %cst_37 = arith.constant dense<0.000000e+00> : vector<32x32xf32>
    %53 = tpu.matmul %51, %52, %cst_37 {dimension_numbers = #tpu.dot_dimension_numbers<[1], [0], [0], [1], [0, 0, 1, 1], [], []>} : vector<32x8xbf16>, vector<8x32xbf16>, vector<32x32xf32> -> vector<32x32xf32>
    %54 = vector.extract_strided_slice %27 {offsets = [0, 8], sizes = [32, 8], strides = [1, 1]} : vector<32x96xf32> to vector<32x8xf32>
    %55 = vector.shape_cast %54 : vector<32x8xf32> to vector<2x16x8xf32>
    %56 = arith.truncf %55 : vector<2x16x8xf32> to vector<2x16x8xbf16>
    %57 = vector.extract_strided_slice %27 {offsets = [0, 40], sizes = [32, 8], strides = [1, 1]} : vector<32x96xf32> to vector<32x8xf32>
    %58 = vector.shape_cast %57 : vector<32x8xf32> to vector<2x16x8xf32>
    %59 = arith.truncf %58 : vector<2x16x8xf32> to vector<2x16x8xbf16>
    %60 = vector.extract_strided_slice %27 {offsets = [0, 72], sizes = [32, 8], strides = [1, 1]} : vector<32x96xf32> to vector<32x8xf32>
    %61 = vector.shape_cast %60 : vector<32x8xf32> to vector<2x16x8xf32>
    %62 = arith.truncf %61 : vector<2x16x8xf32> to vector<2x16x8xbf16>
    "tpu.trace_start"() <{level = 10 : i32, message = "bqd,bkd->bqk"}> : () -> ()
    %cst_38 = arith.constant dense<0.000000e+00> : vector<2x16x16xf32>
    %63 = tpu.matmul %56, %59, %cst_38 {dimension_numbers = #tpu.dot_dimension_numbers<[2], [2], [1], [1], [0, 0, 0, 1, 1, 1], [0], [0]>} : vector<2x16x8xbf16>, vector<2x16x8xbf16>, vector<2x16x16xf32> -> vector<2x16x16xf32>
    "tpu.trace_stop"() : () -> ()
    %cst_39 = arith.constant dense<0xFF800000> : vector<2x16xf32>
    %64 = vector.multi_reduction <maximumf>, %63, %cst_39 [2] : vector<2x16x16xf32> to vector<2x16xf32>
    %65 = vector.shape_cast %64 : vector<2x16xf32> to vector<2x16x1xf32>
    %66 = vector.broadcast %65 : vector<2x16x1xf32> to vector<2x16x16xf32>
    %67 = arith.subf %63, %66 : vector<2x16x16xf32>
    %68 = math.exp %67 : vector<2x16x16xf32>
    %cst_40 = arith.constant dense<0.000000e+00> : vector<2x16xf32>
    %69 = vector.multi_reduction <add>, %68, %cst_40 [2] : vector<2x16x16xf32> to vector<2x16xf32>
    %70 = vector.shape_cast %69 : vector<2x16xf32> to vector<2x16x1xf32>
    %71 = tpu.reciprocal %70 {approx = true} : vector<2x16x1xf32> -> vector<2x16x1xf32>
    %72 = vector.broadcast %71 : vector<2x16x1xf32> to vector<2x16x16xf32>
    %73 = arith.mulf %68, %72 : vector<2x16x16xf32>
    %74 = arith.truncf %73 : vector<2x16x16xf32> to vector<2x16x16xbf16>
    "tpu.trace_start"() <{level = 10 : i32, message = "bqk,bkd->bqd"}> : () -> ()
    %cst_41 = arith.constant dense<0.000000e+00> : vector<2x16x8xf32>
    %75 = tpu.matmul %74, %62, %cst_41 {dimension_numbers = #tpu.dot_dimension_numbers<[2], [1], [1], [2], [0, 0, 0, 1, 1, 2], [0], [0]>} : vector<2x16x16xbf16>, vector<2x16x8xbf16>, vector<2x16x8xf32> -> vector<2x16x8xf32>
    "tpu.trace_stop"() : () -> ()
    %76 = vector.shape_cast %75 : vector<2x16x8xf32> to vector<32x8xf32>
    %77 = arith.truncf %76 : vector<32x8xf32> to vector<32x8xbf16>
    %78 = vector.extract_strided_slice %9 {offsets = [8, 0], sizes = [8, 32], strides = [1, 1]} : vector<32x32xbf16> to vector<8x32xbf16>
    %cst_42 = arith.constant dense<0.000000e+00> : vector<32x32xf32>
    %79 = tpu.matmul %77, %78, %cst_42 {dimension_numbers = #tpu.dot_dimension_numbers<[1], [0], [0], [1], [0, 0, 1, 1], [], []>} : vector<32x8xbf16>, vector<8x32xbf16>, vector<32x32xf32> -> vector<32x32xf32>
    %80 = arith.addf %53, %79 : vector<32x32xf32>
    %81 = vector.extract_strided_slice %27 {offsets = [0, 16], sizes = [32, 8], strides = [1, 1]} : vector<32x96xf32> to vector<32x8xf32>
    %82 = vector.shape_cast %81 : vector<32x8xf32> to vector<2x16x8xf32>
    %83 = arith.truncf %82 : vector<2x16x8xf32> to vector<2x16x8xbf16>
    %84 = vector.extract_strided_slice %27 {offsets = [0, 48], sizes = [32, 8], strides = [1, 1]} : vector<32x96xf32> to vector<32x8xf32>
    %85 = vector.shape_cast %84 : vector<32x8xf32> to vector<2x16x8xf32>
    %86 = arith.truncf %85 : vector<2x16x8xf32> to vector<2x16x8xbf16>
    %87 = vector.extract_strided_slice %27 {offsets = [0, 80], sizes = [32, 8], strides = [1, 1]} : vector<32x96xf32> to vector<32x8xf32>
    %88 = vector.shape_cast %87 : vector<32x8xf32> to vector<2x16x8xf32>
    %89 = arith.truncf %88 : vector<2x16x8xf32> to vector<2x16x8xbf16>
    "tpu.trace_start"() <{level = 10 : i32, message = "bqd,bkd->bqk"}> : () -> ()
    %cst_43 = arith.constant dense<0.000000e+00> : vector<2x16x16xf32>
    %90 = tpu.matmul %83, %86, %cst_43 {dimension_numbers = #tpu.dot_dimension_numbers<[2], [2], [1], [1], [0, 0, 0, 1, 1, 1], [0], [0]>} : vector<2x16x8xbf16>, vector<2x16x8xbf16>, vector<2x16x16xf32> -> vector<2x16x16xf32>
    "tpu.trace_stop"() : () -> ()
    %cst_44 = arith.constant dense<0xFF800000> : vector<2x16xf32>
    %91 = vector.multi_reduction <maximumf>, %90, %cst_44 [2] : vector<2x16x16xf32> to vector<2x16xf32>
    %92 = vector.shape_cast %91 : vector<2x16xf32> to vector<2x16x1xf32>
    %93 = vector.broadcast %92 : vector<2x16x1xf32> to vector<2x16x16xf32>
    %94 = arith.subf %90, %93 : vector<2x16x16xf32>
    %95 = math.exp %94 : vector<2x16x16xf32>
    %cst_45 = arith.constant dense<0.000000e+00> : vector<2x16xf32>
    %96 = vector.multi_reduction <add>, %95, %cst_45 [2] : vector<2x16x16xf32> to vector<2x16xf32>
    %97 = vector.shape_cast %96 : vector<2x16xf32> to vector<2x16x1xf32>
    %98 = tpu.reciprocal %97 {approx = true} : vector<2x16x1xf32> -> vector<2x16x1xf32>
    %99 = vector.broadcast %98 : vector<2x16x1xf32> to vector<2x16x16xf32>
    %100 = arith.mulf %95, %99 : vector<2x16x16xf32>
    %101 = arith.truncf %100 : vector<2x16x16xf32> to vector<2x16x16xbf16>
    "tpu.trace_start"() <{level = 10 : i32, message = "bqk,bkd->bqd"}> : () -> ()
    %cst_46 = arith.constant dense<0.000000e+00> : vector<2x16x8xf32>
    %102 = tpu.matmul %101, %89, %cst_46 {dimension_numbers = #tpu.dot_dimension_numbers<[2], [1], [1], [2], [0, 0, 0, 1, 1, 2], [0], [0]>} : vector<2x16x16xbf16>, vector<2x16x8xbf16>, vector<2x16x8xf32> -> vector<2x16x8xf32>
    "tpu.trace_stop"() : () -> ()
    %103 = vector.shape_cast %102 : vector<2x16x8xf32> to vector<32x8xf32>
    %104 = arith.truncf %103 : vector<32x8xf32> to vector<32x8xbf16>
    %105 = vector.extract_strided_slice %9 {offsets = [16, 0], sizes = [8, 32], strides = [1, 1]} : vector<32x32xbf16> to vector<8x32xbf16>
    %cst_47 = arith.constant dense<0.000000e+00> : vector<32x32xf32>
    %106 = tpu.matmul %104, %105, %cst_47 {dimension_numbers = #tpu.dot_dimension_numbers<[1], [0], [0], [1], [0, 0, 1, 1], [], []>} : vector<32x8xbf16>, vector<8x32xbf16>, vector<32x32xf32> -> vector<32x32xf32>
    %107 = arith.addf %80, %106 : vector<32x32xf32>
    %108 = vector.extract_strided_slice %27 {offsets = [0, 24], sizes = [32, 8], strides = [1, 1]} : vector<32x96xf32> to vector<32x8xf32>
    %109 = vector.shape_cast %108 : vector<32x8xf32> to vector<2x16x8xf32>
    %110 = arith.truncf %109 : vector<2x16x8xf32> to vector<2x16x8xbf16>
    %111 = vector.extract_strided_slice %27 {offsets = [0, 56], sizes = [32, 8], strides = [1, 1]} : vector<32x96xf32> to vector<32x8xf32>
    %112 = vector.shape_cast %111 : vector<32x8xf32> to vector<2x16x8xf32>
    %113 = arith.truncf %112 : vector<2x16x8xf32> to vector<2x16x8xbf16>
    %114 = vector.extract_strided_slice %27 {offsets = [0, 88], sizes = [32, 8], strides = [1, 1]} : vector<32x96xf32> to vector<32x8xf32>
    %115 = vector.shape_cast %114 : vector<32x8xf32> to vector<2x16x8xf32>
    %116 = arith.truncf %115 : vector<2x16x8xf32> to vector<2x16x8xbf16>
    "tpu.trace_start"() <{level = 10 : i32, message = "bqd,bkd->bqk"}> : () -> ()
    %cst_48 = arith.constant dense<0.000000e+00> : vector<2x16x16xf32>
    %117 = tpu.matmul %110, %113, %cst_48 {dimension_numbers = #tpu.dot_dimension_numbers<[2], [2], [1], [1], [0, 0, 0, 1, 1, 1], [0], [0]>} : vector<2x16x8xbf16>, vector<2x16x8xbf16>, vector<2x16x16xf32> -> vector<2x16x16xf32>
    "tpu.trace_stop"() : () -> ()
    %cst_49 = arith.constant dense<0xFF800000> : vector<2x16xf32>
    %118 = vector.multi_reduction <maximumf>, %117, %cst_49 [2] : vector<2x16x16xf32> to vector<2x16xf32>
    %119 = vector.shape_cast %118 : vector<2x16xf32> to vector<2x16x1xf32>
    %120 = vector.broadcast %119 : vector<2x16x1xf32> to vector<2x16x16xf32>
    %121 = arith.subf %117, %120 : vector<2x16x16xf32>
    %122 = math.exp %121 : vector<2x16x16xf32>
    %cst_50 = arith.constant dense<0.000000e+00> : vector<2x16xf32>
    %123 = vector.multi_reduction <add>, %122, %cst_50 [2] : vector<2x16x16xf32> to vector<2x16xf32>
    %124 = vector.shape_cast %123 : vector<2x16xf32> to vector<2x16x1xf32>
    %125 = tpu.reciprocal %124 {approx = true} : vector<2x16x1xf32> -> vector<2x16x1xf32>
    %126 = vector.broadcast %125 : vector<2x16x1xf32> to vector<2x16x16xf32>
    %127 = arith.mulf %122, %126 : vector<2x16x16xf32>
    %128 = arith.truncf %127 : vector<2x16x16xf32> to vector<2x16x16xbf16>
    "tpu.trace_start"() <{level = 10 : i32, message = "bqk,bkd->bqd"}> : () -> ()
    %cst_51 = arith.constant dense<0.000000e+00> : vector<2x16x8xf32>
    %129 = tpu.matmul %128, %116, %cst_51 {dimension_numbers = #tpu.dot_dimension_numbers<[2], [1], [1], [2], [0, 0, 0, 1, 1, 2], [0], [0]>} : vector<2x16x16xbf16>, vector<2x16x8xbf16>, vector<2x16x8xf32> -> vector<2x16x8xf32>
    "tpu.trace_stop"() : () -> ()
    %130 = vector.shape_cast %129 : vector<2x16x8xf32> to vector<32x8xf32>
    %131 = arith.truncf %130 : vector<32x8xf32> to vector<32x8xbf16>
    %132 = vector.extract_strided_slice %9 {offsets = [24, 0], sizes = [8, 32], strides = [1, 1]} : vector<32x32xbf16> to vector<8x32xbf16>
    %cst_52 = arith.constant dense<0.000000e+00> : vector<32x32xf32>
    %133 = tpu.matmul %131, %132, %cst_52 {dimension_numbers = #tpu.dot_dimension_numbers<[1], [0], [0], [1], [0, 0, 1, 1], [], []>} : vector<32x8xbf16>, vector<8x32xbf16>, vector<32x32xf32> -> vector<32x32xf32>
    %134 = arith.addf %107, %133 : vector<32x32xf32>
    %135 = arith.addf %1, %134 : vector<32x32xf32>
    %136 = vector.broadcast %18 : vector<1x32xf32> to vector<32x32xf32>
    %137 = arith.addf %135, %136 : vector<32x32xf32>
    %cst_53 = arith.constant dense<0.000000e+00> : vector<32xf32>
    %138 = vector.multi_reduction <add>, %137, %cst_53 [1] : vector<32x32xf32> to vector<32xf32>
    %139 = vector.shape_cast %138 : vector<32xf32> to vector<32x1xf32>
    %cst_54 = arith.constant 3.200000e+01 : f32
    %140 = vector.broadcast %cst_54 : f32 to vector<32x1xf32>
    %141 = arith.divf %139, %140 : vector<32x1xf32>
    %142 = vector.broadcast %141 : vector<32x1xf32> to vector<32x32xf32>
    %143 = arith.subf %137, %142 : vector<32x32xf32>
    %144 = arith.mulf %143, %143 : vector<32x32xf32>
    %cst_55 = arith.constant dense<0.000000e+00> : vector<32xf32>
    %145 = vector.multi_reduction <add>, %144, %cst_55 [1] : vector<32x32xf32> to vector<32xf32>
    %146 = vector.shape_cast %145 : vector<32xf32> to vector<32x1xf32>
    %cst_56 = arith.constant 3.200000e+01 : f32
    %147 = vector.broadcast %cst_56 : f32 to vector<32x1xf32>
    %148 = arith.divf %146, %147 : vector<32x1xf32>
    %cst_57 = arith.constant 9.99999974E-6 : f32
    %149 = vector.broadcast %cst_57 : f32 to vector<32x1xf32>
    %150 = arith.addf %148, %149 : vector<32x1xf32>
    %151 = math.rsqrt %150 : vector<32x1xf32>
    %152 = vector.broadcast %151 : vector<32x1xf32> to vector<32x32xf32>
    %153 = arith.mulf %143, %152 : vector<32x32xf32>
    %154 = vector.broadcast %19 : vector<1x32xf32> to vector<32x32xf32>
    %155 = arith.mulf %153, %154 : vector<32x32xf32>
    %156 = vector.broadcast %20 : vector<1x32xf32> to vector<32x32xf32>
    %157 = arith.addf %155, %156 : vector<32x32xf32>
    %158 = arith.truncf %157 : vector<32x32xf32> to vector<32x32xbf16>
    %cst_58 = arith.constant dense<0.000000e+00> : vector<32x32xf32>
    %159 = tpu.matmul %158, %11, %cst_58 {dimension_numbers = #tpu.dot_dimension_numbers<[1], [0], [0], [1], [0, 0, 1, 1], [], []>} : vector<32x32xbf16>, vector<32x32xbf16>, vector<32x32xf32> -> vector<32x32xf32>
    %160 = vector.broadcast %13 : vector<1x32xf32> to vector<32x32xf32>
    %161 = arith.addf %159, %160 : vector<32x32xf32>
    %cst_59 = arith.constant 0.000000e+00 : f32
    %162 = vector.broadcast %cst_59 : f32 to vector<32x32xf32>
    %163 = arith.maximumf %161, %162 : vector<32x32xf32>
    %164 = arith.truncf %163 : vector<32x32xf32> to vector<32x32xbf16>
    %cst_60 = arith.constant dense<0.000000e+00> : vector<32x32xf32>
    %165 = tpu.matmul %164, %15, %cst_60 {dimension_numbers = #tpu.dot_dimension_numbers<[1], [0], [0], [1], [0, 0, 1, 1], [], []>} : vector<32x32xbf16>, vector<32x32xbf16>, vector<32x32xf32> -> vector<32x32xf32>
    %166 = vector.broadcast %21 : vector<1x32xf32> to vector<32x32xf32>
    %167 = arith.addf %165, %166 : vector<32x32xf32>
    %168 = arith.addf %157, %167 : vector<32x32xf32>
    %cst_61 = arith.constant dense<0.000000e+00> : vector<32xf32>
    %169 = vector.multi_reduction <add>, %168, %cst_61 [1] : vector<32x32xf32> to vector<32xf32>
    %170 = vector.shape_cast %169 : vector<32xf32> to vector<32x1xf32>
    %cst_62 = arith.constant 3.200000e+01 : f32
    %171 = vector.broadcast %cst_62 : f32 to vector<32x1xf32>
    %172 = arith.divf %170, %171 : vector<32x1xf32>
    %173 = vector.broadcast %172 : vector<32x1xf32> to vector<32x32xf32>
    %174 = arith.subf %168, %173 : vector<32x32xf32>
    %175 = arith.mulf %174, %174 : vector<32x32xf32>
    %cst_63 = arith.constant dense<0.000000e+00> : vector<32xf32>
    %176 = vector.multi_reduction <add>, %175, %cst_63 [1] : vector<32x32xf32> to vector<32xf32>
    %177 = vector.shape_cast %176 : vector<32xf32> to vector<32x1xf32>
    %cst_64 = arith.constant 3.200000e+01 : f32
    %178 = vector.broadcast %cst_64 : f32 to vector<32x1xf32>
    %179 = arith.divf %177, %178 : vector<32x1xf32>
    %cst_65 = arith.constant 9.99999974E-6 : f32
    %180 = vector.broadcast %cst_65 : f32 to vector<32x1xf32>
    %181 = arith.addf %179, %180 : vector<32x1xf32>
    %182 = math.rsqrt %181 : vector<32x1xf32>
    %183 = vector.broadcast %182 : vector<32x1xf32> to vector<32x32xf32>
    %184 = arith.mulf %174, %183 : vector<32x32xf32>
    %185 = vector.broadcast %22 : vector<1x32xf32> to vector<32x32xf32>
    %186 = arith.mulf %184, %185 : vector<32x32xf32>
    %187 = vector.broadcast %23 : vector<1x32xf32> to vector<32x32xf32>
    %188 = arith.addf %186, %187 : vector<32x32xf32>
    %c1 = arith.constant 1 : index
    %c0_66 = arith.constant 0 : index
    %c0_67 = arith.constant 0 : index
    %c0_68 = arith.constant 0 : index
    %189 = vector.load %arg2[%c1, %c0_66, %c0_67, %c0_68] : memref<2x2x32x96xbf16, #tpu.memory_space<vmem>>, vector<1x1x32x96xbf16>
    %190 = vector.shape_cast %189 : vector<1x1x32x96xbf16> to vector<32x96xbf16>
    %c1_69 = arith.constant 1 : index
    %c0_70 = arith.constant 0 : index
    %c0_71 = arith.constant 0 : index
    %c0_72 = arith.constant 0 : index
    %191 = vector.load %arg6[%c1_69, %c0_70, %c0_71, %c0_72] : memref<2x2x1x96xf32, #tpu.memory_space<vmem>>, vector<1x1x1x96xf32>
    %192 = vector.shape_cast %191 : vector<1x1x1x96xf32> to vector<1x96xf32>
    %c1_73 = arith.constant 1 : index
    %c0_74 = arith.constant 0 : index
    %c0_75 = arith.constant 0 : index
    %c0_76 = arith.constant 0 : index
    %193 = vector.load %arg3[%c1_73, %c0_74, %c0_75, %c0_76] : memref<2x2x32x32xbf16, #tpu.memory_space<vmem>>, vector<1x1x32x32xbf16>
    %194 = vector.shape_cast %193 : vector<1x1x32x32xbf16> to vector<32x32xbf16>
    %c1_77 = arith.constant 1 : index
    %c0_78 = arith.constant 0 : index
    %c0_79 = arith.constant 0 : index
    %c0_80 = arith.constant 0 : index
    %195 = vector.load %arg4[%c1_77, %c0_78, %c0_79, %c0_80] : memref<2x2x32x32xbf16, #tpu.memory_space<vmem>>, vector<1x1x32x32xbf16>
    %196 = vector.shape_cast %195 : vector<1x1x32x32xbf16> to vector<32x32xbf16>
    %c1_81 = arith.constant 1 : index
    %c0_82 = arith.constant 0 : index
    %c0_83 = arith.constant 0 : index
    %c0_84 = arith.constant 0 : index
    %197 = vector.load %arg8[%c1_81, %c0_82, %c0_83, %c0_84] : memref<2x2x1x32xf32, #tpu.memory_space<vmem>>, vector<1x1x1x32xf32>
    %198 = vector.shape_cast %197 : vector<1x1x1x32xf32> to vector<1x32xf32>
    %c1_85 = arith.constant 1 : index
    %c0_86 = arith.constant 0 : index
    %c0_87 = arith.constant 0 : index
    %c0_88 = arith.constant 0 : index
    %199 = vector.load %arg5[%c1_85, %c0_86, %c0_87, %c0_88] : memref<2x2x32x32xbf16, #tpu.memory_space<vmem>>, vector<1x1x32x32xbf16>
    %200 = vector.shape_cast %199 : vector<1x1x32x32xbf16> to vector<32x32xbf16>
    %c1_89 = arith.constant 1 : index
    %c0_90 = arith.constant 0 : index
    %c0_91 = arith.constant 0 : index
    %c0_92 = arith.constant 0 : index
    %201 = vector.load %arg7[%c1_89, %c0_90, %c0_91, %c0_92] : memref<2x2x6x32xf32, #tpu.memory_space<vmem>>, vector<1x1x6x32xf32>
    %202 = vector.shape_cast %201 : vector<1x1x6x32xf32> to vector<6x32xf32>
    %203 = vector.extract_strided_slice %202 {offsets = [0, 0], sizes = [1, 32], strides = [1, 1]} : vector<6x32xf32> to vector<1x32xf32>
    %204 = vector.extract_strided_slice %202 {offsets = [1, 0], sizes = [1, 32], strides = [1, 1]} : vector<6x32xf32> to vector<1x32xf32>
    %205 = vector.extract_strided_slice %202 {offsets = [2, 0], sizes = [1, 32], strides = [1, 1]} : vector<6x32xf32> to vector<1x32xf32>
    %206 = vector.extract_strided_slice %202 {offsets = [3, 0], sizes = [1, 32], strides = [1, 1]} : vector<6x32xf32> to vector<1x32xf32>
    %207 = vector.extract_strided_slice %202 {offsets = [4, 0], sizes = [1, 32], strides = [1, 1]} : vector<6x32xf32> to vector<1x32xf32>
    %208 = vector.extract_strided_slice %202 {offsets = [5, 0], sizes = [1, 32], strides = [1, 1]} : vector<6x32xf32> to vector<1x32xf32>
    %209 = arith.truncf %3 : vector<16x32xf32> to vector<16x32xbf16>
    %210 = vector.extract_strided_slice %190 {offsets = [0, 0], sizes = [32, 32], strides = [1, 1]} : vector<32x96xbf16> to vector<32x32xbf16>
    %cst_93 = arith.constant dense<0.000000e+00> : vector<16x32xf32>
    %211 = tpu.matmul %209, %210, %cst_93 {dimension_numbers = #tpu.dot_dimension_numbers<[1], [0], [0], [1], [0, 0, 1, 1], [], []>} : vector<16x32xbf16>, vector<32x32xbf16>, vector<16x32xf32> -> vector<16x32xf32>
    %212 = vector.extract_strided_slice %192 {offsets = [0, 0], sizes = [1, 32], strides = [1, 1]} : vector<1x96xf32> to vector<1x32xf32>
    %213 = vector.broadcast %212 : vector<1x32xf32> to vector<16x32xf32>
    %214 = arith.addf %211, %213 : vector<16x32xf32>
    %215 = arith.truncf %188 : vector<32x32xf32> to vector<32x32xbf16>
    %216 = vector.extract_strided_slice %190 {offsets = [0, 32], sizes = [32, 64], strides = [1, 1]} : vector<32x96xbf16> to vector<32x64xbf16>
    %cst_94 = arith.constant dense<0.000000e+00> : vector<32x64xf32>
    %217 = tpu.matmul %215, %216, %cst_94 {dimension_numbers = #tpu.dot_dimension_numbers<[1], [0], [0], [1], [0, 0, 1, 1], [], []>} : vector<32x32xbf16>, vector<32x64xbf16>, vector<32x64xf32> -> vector<32x64xf32>
    %218 = vector.extract_strided_slice %192 {offsets = [0, 32], sizes = [1, 64], strides = [1, 1]} : vector<1x96xf32> to vector<1x64xf32>
    %219 = vector.broadcast %218 : vector<1x64xf32> to vector<32x64xf32>
    %220 = arith.addf %217, %219 : vector<32x64xf32>
    %221 = vector.extract_strided_slice %214 {offsets = [0, 0], sizes = [16, 8], strides = [1, 1]} : vector<16x32xf32> to vector<16x8xf32>
    %222 = vector.shape_cast %221 : vector<16x8xf32> to vector<2x8x8xf32>
    %223 = arith.truncf %222 : vector<2x8x8xf32> to vector<2x8x8xbf16>
    %224 = vector.extract_strided_slice %220 {offsets = [0, 0], sizes = [32, 8], strides = [1, 1]} : vector<32x64xf32> to vector<32x8xf32>
    %225 = vector.shape_cast %224 : vector<32x8xf32> to vector<2x16x8xf32>
    %226 = arith.truncf %225 : vector<2x16x8xf32> to vector<2x16x8xbf16>
    %227 = vector.extract_strided_slice %220 {offsets = [0, 32], sizes = [32, 8], strides = [1, 1]} : vector<32x64xf32> to vector<32x8xf32>
    %228 = vector.shape_cast %227 : vector<32x8xf32> to vector<2x16x8xf32>
    %229 = arith.truncf %228 : vector<2x16x8xf32> to vector<2x16x8xbf16>
    "tpu.trace_start"() <{level = 10 : i32, message = "bqd,bkd->bqk"}> : () -> ()
    %cst_95 = arith.constant dense<0.000000e+00> : vector<2x8x16xf32>
    %230 = tpu.matmul %223, %226, %cst_95 {dimension_numbers = #tpu.dot_dimension_numbers<[2], [2], [1], [1], [0, 0, 0, 1, 1, 1], [0], [0]>} : vector<2x8x8xbf16>, vector<2x16x8xbf16>, vector<2x8x16xf32> -> vector<2x8x16xf32>
    "tpu.trace_stop"() : () -> ()
    %cst_96 = arith.constant dense<0xFF800000> : vector<2x8xf32>
    %231 = vector.multi_reduction <maximumf>, %230, %cst_96 [2] : vector<2x8x16xf32> to vector<2x8xf32>
    %232 = vector.shape_cast %231 : vector<2x8xf32> to vector<2x8x1xf32>
    %233 = vector.broadcast %232 : vector<2x8x1xf32> to vector<2x8x16xf32>
    %234 = arith.subf %230, %233 : vector<2x8x16xf32>
    %235 = math.exp %234 : vector<2x8x16xf32>
    %cst_97 = arith.constant dense<0.000000e+00> : vector<2x8xf32>
    %236 = vector.multi_reduction <add>, %235, %cst_97 [2] : vector<2x8x16xf32> to vector<2x8xf32>
    %237 = vector.shape_cast %236 : vector<2x8xf32> to vector<2x8x1xf32>
    %238 = tpu.reciprocal %237 {approx = true} : vector<2x8x1xf32> -> vector<2x8x1xf32>
    %239 = vector.broadcast %238 : vector<2x8x1xf32> to vector<2x8x16xf32>
    %240 = arith.mulf %235, %239 : vector<2x8x16xf32>
    %241 = arith.truncf %240 : vector<2x8x16xf32> to vector<2x8x16xbf16>
    "tpu.trace_start"() <{level = 10 : i32, message = "bqk,bkd->bqd"}> : () -> ()
    %cst_98 = arith.constant dense<0.000000e+00> : vector<2x8x8xf32>
    %242 = tpu.matmul %241, %229, %cst_98 {dimension_numbers = #tpu.dot_dimension_numbers<[2], [1], [1], [2], [0, 0, 0, 1, 1, 2], [0], [0]>} : vector<2x8x16xbf16>, vector<2x16x8xbf16>, vector<2x8x8xf32> -> vector<2x8x8xf32>
    "tpu.trace_stop"() : () -> ()
    %243 = vector.shape_cast %242 : vector<2x8x8xf32> to vector<16x8xf32>
    %244 = arith.truncf %243 : vector<16x8xf32> to vector<16x8xbf16>
    %245 = vector.extract_strided_slice %194 {offsets = [0, 0], sizes = [8, 32], strides = [1, 1]} : vector<32x32xbf16> to vector<8x32xbf16>
    %cst_99 = arith.constant dense<0.000000e+00> : vector<16x32xf32>
    %246 = tpu.matmul %244, %245, %cst_99 {dimension_numbers = #tpu.dot_dimension_numbers<[1], [0], [0], [1], [0, 0, 1, 1], [], []>} : vector<16x8xbf16>, vector<8x32xbf16>, vector<16x32xf32> -> vector<16x32xf32>
    %247 = vector.extract_strided_slice %214 {offsets = [0, 8], sizes = [16, 8], strides = [1, 1]} : vector<16x32xf32> to vector<16x8xf32>
    %248 = vector.shape_cast %247 : vector<16x8xf32> to vector<2x8x8xf32>
    %249 = arith.truncf %248 : vector<2x8x8xf32> to vector<2x8x8xbf16>
    %250 = vector.extract_strided_slice %220 {offsets = [0, 8], sizes = [32, 8], strides = [1, 1]} : vector<32x64xf32> to vector<32x8xf32>
    %251 = vector.shape_cast %250 : vector<32x8xf32> to vector<2x16x8xf32>
    %252 = arith.truncf %251 : vector<2x16x8xf32> to vector<2x16x8xbf16>
    %253 = vector.extract_strided_slice %220 {offsets = [0, 40], sizes = [32, 8], strides = [1, 1]} : vector<32x64xf32> to vector<32x8xf32>
    %254 = vector.shape_cast %253 : vector<32x8xf32> to vector<2x16x8xf32>
    %255 = arith.truncf %254 : vector<2x16x8xf32> to vector<2x16x8xbf16>
    "tpu.trace_start"() <{level = 10 : i32, message = "bqd,bkd->bqk"}> : () -> ()
    %cst_100 = arith.constant dense<0.000000e+00> : vector<2x8x16xf32>
    %256 = tpu.matmul %249, %252, %cst_100 {dimension_numbers = #tpu.dot_dimension_numbers<[2], [2], [1], [1], [0, 0, 0, 1, 1, 1], [0], [0]>} : vector<2x8x8xbf16>, vector<2x16x8xbf16>, vector<2x8x16xf32> -> vector<2x8x16xf32>
    "tpu.trace_stop"() : () -> ()
    %cst_101 = arith.constant dense<0xFF800000> : vector<2x8xf32>
    %257 = vector.multi_reduction <maximumf>, %256, %cst_101 [2] : vector<2x8x16xf32> to vector<2x8xf32>
    %258 = vector.shape_cast %257 : vector<2x8xf32> to vector<2x8x1xf32>
    %259 = vector.broadcast %258 : vector<2x8x1xf32> to vector<2x8x16xf32>
    %260 = arith.subf %256, %259 : vector<2x8x16xf32>
    %261 = math.exp %260 : vector<2x8x16xf32>
    %cst_102 = arith.constant dense<0.000000e+00> : vector<2x8xf32>
    %262 = vector.multi_reduction <add>, %261, %cst_102 [2] : vector<2x8x16xf32> to vector<2x8xf32>
    %263 = vector.shape_cast %262 : vector<2x8xf32> to vector<2x8x1xf32>
    %264 = tpu.reciprocal %263 {approx = true} : vector<2x8x1xf32> -> vector<2x8x1xf32>
    %265 = vector.broadcast %264 : vector<2x8x1xf32> to vector<2x8x16xf32>
    %266 = arith.mulf %261, %265 : vector<2x8x16xf32>
    %267 = arith.truncf %266 : vector<2x8x16xf32> to vector<2x8x16xbf16>
    "tpu.trace_start"() <{level = 10 : i32, message = "bqk,bkd->bqd"}> : () -> ()
    %cst_103 = arith.constant dense<0.000000e+00> : vector<2x8x8xf32>
    %268 = tpu.matmul %267, %255, %cst_103 {dimension_numbers = #tpu.dot_dimension_numbers<[2], [1], [1], [2], [0, 0, 0, 1, 1, 2], [0], [0]>} : vector<2x8x16xbf16>, vector<2x16x8xbf16>, vector<2x8x8xf32> -> vector<2x8x8xf32>
    "tpu.trace_stop"() : () -> ()
    %269 = vector.shape_cast %268 : vector<2x8x8xf32> to vector<16x8xf32>
    %270 = arith.truncf %269 : vector<16x8xf32> to vector<16x8xbf16>
    %271 = vector.extract_strided_slice %194 {offsets = [8, 0], sizes = [8, 32], strides = [1, 1]} : vector<32x32xbf16> to vector<8x32xbf16>
    %cst_104 = arith.constant dense<0.000000e+00> : vector<16x32xf32>
    %272 = tpu.matmul %270, %271, %cst_104 {dimension_numbers = #tpu.dot_dimension_numbers<[1], [0], [0], [1], [0, 0, 1, 1], [], []>} : vector<16x8xbf16>, vector<8x32xbf16>, vector<16x32xf32> -> vector<16x32xf32>
    %273 = arith.addf %246, %272 : vector<16x32xf32>
    %274 = vector.extract_strided_slice %214 {offsets = [0, 16], sizes = [16, 8], strides = [1, 1]} : vector<16x32xf32> to vector<16x8xf32>
    %275 = vector.shape_cast %274 : vector<16x8xf32> to vector<2x8x8xf32>
    %276 = arith.truncf %275 : vector<2x8x8xf32> to vector<2x8x8xbf16>
    %277 = vector.extract_strided_slice %220 {offsets = [0, 16], sizes = [32, 8], strides = [1, 1]} : vector<32x64xf32> to vector<32x8xf32>
    %278 = vector.shape_cast %277 : vector<32x8xf32> to vector<2x16x8xf32>
    %279 = arith.truncf %278 : vector<2x16x8xf32> to vector<2x16x8xbf16>
    %280 = vector.extract_strided_slice %220 {offsets = [0, 48], sizes = [32, 8], strides = [1, 1]} : vector<32x64xf32> to vector<32x8xf32>
    %281 = vector.shape_cast %280 : vector<32x8xf32> to vector<2x16x8xf32>
    %282 = arith.truncf %281 : vector<2x16x8xf32> to vector<2x16x8xbf16>
    "tpu.trace_start"() <{level = 10 : i32, message = "bqd,bkd->bqk"}> : () -> ()
    %cst_105 = arith.constant dense<0.000000e+00> : vector<2x8x16xf32>
    %283 = tpu.matmul %276, %279, %cst_105 {dimension_numbers = #tpu.dot_dimension_numbers<[2], [2], [1], [1], [0, 0, 0, 1, 1, 1], [0], [0]>} : vector<2x8x8xbf16>, vector<2x16x8xbf16>, vector<2x8x16xf32> -> vector<2x8x16xf32>
    "tpu.trace_stop"() : () -> ()
    %cst_106 = arith.constant dense<0xFF800000> : vector<2x8xf32>
    %284 = vector.multi_reduction <maximumf>, %283, %cst_106 [2] : vector<2x8x16xf32> to vector<2x8xf32>
    %285 = vector.shape_cast %284 : vector<2x8xf32> to vector<2x8x1xf32>
    %286 = vector.broadcast %285 : vector<2x8x1xf32> to vector<2x8x16xf32>
    %287 = arith.subf %283, %286 : vector<2x8x16xf32>
    %288 = math.exp %287 : vector<2x8x16xf32>
    %cst_107 = arith.constant dense<0.000000e+00> : vector<2x8xf32>
    %289 = vector.multi_reduction <add>, %288, %cst_107 [2] : vector<2x8x16xf32> to vector<2x8xf32>
    %290 = vector.shape_cast %289 : vector<2x8xf32> to vector<2x8x1xf32>
    %291 = tpu.reciprocal %290 {approx = true} : vector<2x8x1xf32> -> vector<2x8x1xf32>
    %292 = vector.broadcast %291 : vector<2x8x1xf32> to vector<2x8x16xf32>
    %293 = arith.mulf %288, %292 : vector<2x8x16xf32>
    %294 = arith.truncf %293 : vector<2x8x16xf32> to vector<2x8x16xbf16>
    "tpu.trace_start"() <{level = 10 : i32, message = "bqk,bkd->bqd"}> : () -> ()
    %cst_108 = arith.constant dense<0.000000e+00> : vector<2x8x8xf32>
    %295 = tpu.matmul %294, %282, %cst_108 {dimension_numbers = #tpu.dot_dimension_numbers<[2], [1], [1], [2], [0, 0, 0, 1, 1, 2], [0], [0]>} : vector<2x8x16xbf16>, vector<2x16x8xbf16>, vector<2x8x8xf32> -> vector<2x8x8xf32>
    "tpu.trace_stop"() : () -> ()
    %296 = vector.shape_cast %295 : vector<2x8x8xf32> to vector<16x8xf32>
    %297 = arith.truncf %296 : vector<16x8xf32> to vector<16x8xbf16>
    %298 = vector.extract_strided_slice %194 {offsets = [16, 0], sizes = [8, 32], strides = [1, 1]} : vector<32x32xbf16> to vector<8x32xbf16>
    %cst_109 = arith.constant dense<0.000000e+00> : vector<16x32xf32>
    %299 = tpu.matmul %297, %298, %cst_109 {dimension_numbers = #tpu.dot_dimension_numbers<[1], [0], [0], [1], [0, 0, 1, 1], [], []>} : vector<16x8xbf16>, vector<8x32xbf16>, vector<16x32xf32> -> vector<16x32xf32>
    %300 = arith.addf %273, %299 : vector<16x32xf32>
    %301 = vector.extract_strided_slice %214 {offsets = [0, 24], sizes = [16, 8], strides = [1, 1]} : vector<16x32xf32> to vector<16x8xf32>
    %302 = vector.shape_cast %301 : vector<16x8xf32> to vector<2x8x8xf32>
    %303 = arith.truncf %302 : vector<2x8x8xf32> to vector<2x8x8xbf16>
    %304 = vector.extract_strided_slice %220 {offsets = [0, 24], sizes = [32, 8], strides = [1, 1]} : vector<32x64xf32> to vector<32x8xf32>
    %305 = vector.shape_cast %304 : vector<32x8xf32> to vector<2x16x8xf32>
    %306 = arith.truncf %305 : vector<2x16x8xf32> to vector<2x16x8xbf16>
    %307 = vector.extract_strided_slice %220 {offsets = [0, 56], sizes = [32, 8], strides = [1, 1]} : vector<32x64xf32> to vector<32x8xf32>
    %308 = vector.shape_cast %307 : vector<32x8xf32> to vector<2x16x8xf32>
    %309 = arith.truncf %308 : vector<2x16x8xf32> to vector<2x16x8xbf16>
    "tpu.trace_start"() <{level = 10 : i32, message = "bqd,bkd->bqk"}> : () -> ()
    %cst_110 = arith.constant dense<0.000000e+00> : vector<2x8x16xf32>
    %310 = tpu.matmul %303, %306, %cst_110 {dimension_numbers = #tpu.dot_dimension_numbers<[2], [2], [1], [1], [0, 0, 0, 1, 1, 1], [0], [0]>} : vector<2x8x8xbf16>, vector<2x16x8xbf16>, vector<2x8x16xf32> -> vector<2x8x16xf32>
    "tpu.trace_stop"() : () -> ()
    %cst_111 = arith.constant dense<0xFF800000> : vector<2x8xf32>
    %311 = vector.multi_reduction <maximumf>, %310, %cst_111 [2] : vector<2x8x16xf32> to vector<2x8xf32>
    %312 = vector.shape_cast %311 : vector<2x8xf32> to vector<2x8x1xf32>
    %313 = vector.broadcast %312 : vector<2x8x1xf32> to vector<2x8x16xf32>
    %314 = arith.subf %310, %313 : vector<2x8x16xf32>
    %315 = math.exp %314 : vector<2x8x16xf32>
    %cst_112 = arith.constant dense<0.000000e+00> : vector<2x8xf32>
    %316 = vector.multi_reduction <add>, %315, %cst_112 [2] : vector<2x8x16xf32> to vector<2x8xf32>
    %317 = vector.shape_cast %316 : vector<2x8xf32> to vector<2x8x1xf32>
    %318 = tpu.reciprocal %317 {approx = true} : vector<2x8x1xf32> -> vector<2x8x1xf32>
    %319 = vector.broadcast %318 : vector<2x8x1xf32> to vector<2x8x16xf32>
    %320 = arith.mulf %315, %319 : vector<2x8x16xf32>
    %321 = arith.truncf %320 : vector<2x8x16xf32> to vector<2x8x16xbf16>
    "tpu.trace_start"() <{level = 10 : i32, message = "bqk,bkd->bqd"}> : () -> ()
    %cst_113 = arith.constant dense<0.000000e+00> : vector<2x8x8xf32>
    %322 = tpu.matmul %321, %309, %cst_113 {dimension_numbers = #tpu.dot_dimension_numbers<[2], [1], [1], [2], [0, 0, 0, 1, 1, 2], [0], [0]>} : vector<2x8x16xbf16>, vector<2x16x8xbf16>, vector<2x8x8xf32> -> vector<2x8x8xf32>
    "tpu.trace_stop"() : () -> ()
    %323 = vector.shape_cast %322 : vector<2x8x8xf32> to vector<16x8xf32>
    %324 = arith.truncf %323 : vector<16x8xf32> to vector<16x8xbf16>
    %325 = vector.extract_strided_slice %194 {offsets = [24, 0], sizes = [8, 32], strides = [1, 1]} : vector<32x32xbf16> to vector<8x32xbf16>
    %cst_114 = arith.constant dense<0.000000e+00> : vector<16x32xf32>
    %326 = tpu.matmul %324, %325, %cst_114 {dimension_numbers = #tpu.dot_dimension_numbers<[1], [0], [0], [1], [0, 0, 1, 1], [], []>} : vector<16x8xbf16>, vector<8x32xbf16>, vector<16x32xf32> -> vector<16x32xf32>
    %327 = arith.addf %300, %326 : vector<16x32xf32>
    %328 = arith.addf %3, %327 : vector<16x32xf32>
    %329 = vector.broadcast %203 : vector<1x32xf32> to vector<16x32xf32>
    %330 = arith.addf %328, %329 : vector<16x32xf32>
    %cst_115 = arith.constant dense<0.000000e+00> : vector<16xf32>
    %331 = vector.multi_reduction <add>, %330, %cst_115 [1] : vector<16x32xf32> to vector<16xf32>
    %332 = vector.shape_cast %331 : vector<16xf32> to vector<16x1xf32>
    %cst_116 = arith.constant 3.200000e+01 : f32
    %333 = vector.broadcast %cst_116 : f32 to vector<16x1xf32>
    %334 = arith.divf %332, %333 : vector<16x1xf32>
    %335 = vector.broadcast %334 : vector<16x1xf32> to vector<16x32xf32>
    %336 = arith.subf %330, %335 : vector<16x32xf32>
    %337 = arith.mulf %336, %336 : vector<16x32xf32>
    %cst_117 = arith.constant dense<0.000000e+00> : vector<16xf32>
    %338 = vector.multi_reduction <add>, %337, %cst_117 [1] : vector<16x32xf32> to vector<16xf32>
    %339 = vector.shape_cast %338 : vector<16xf32> to vector<16x1xf32>
    %cst_118 = arith.constant 3.200000e+01 : f32
    %340 = vector.broadcast %cst_118 : f32 to vector<16x1xf32>
    %341 = arith.divf %339, %340 : vector<16x1xf32>
    %cst_119 = arith.constant 9.99999974E-6 : f32
    %342 = vector.broadcast %cst_119 : f32 to vector<16x1xf32>
    %343 = arith.addf %341, %342 : vector<16x1xf32>
    %344 = math.rsqrt %343 : vector<16x1xf32>
    %345 = vector.broadcast %344 : vector<16x1xf32> to vector<16x32xf32>
    %346 = arith.mulf %336, %345 : vector<16x32xf32>
    %347 = vector.broadcast %204 : vector<1x32xf32> to vector<16x32xf32>
    %348 = arith.mulf %346, %347 : vector<16x32xf32>
    %349 = vector.broadcast %205 : vector<1x32xf32> to vector<16x32xf32>
    %350 = arith.addf %348, %349 : vector<16x32xf32>
    %351 = arith.truncf %350 : vector<16x32xf32> to vector<16x32xbf16>
    %cst_120 = arith.constant dense<0.000000e+00> : vector<16x32xf32>
    %352 = tpu.matmul %351, %196, %cst_120 {dimension_numbers = #tpu.dot_dimension_numbers<[1], [0], [0], [1], [0, 0, 1, 1], [], []>} : vector<16x32xbf16>, vector<32x32xbf16>, vector<16x32xf32> -> vector<16x32xf32>
    %353 = vector.broadcast %198 : vector<1x32xf32> to vector<16x32xf32>
    %354 = arith.addf %352, %353 : vector<16x32xf32>
    %cst_121 = arith.constant 0.000000e+00 : f32
    %355 = vector.broadcast %cst_121 : f32 to vector<16x32xf32>
    %356 = arith.maximumf %354, %355 : vector<16x32xf32>
    %357 = arith.truncf %356 : vector<16x32xf32> to vector<16x32xbf16>
    %cst_122 = arith.constant dense<0.000000e+00> : vector<16x32xf32>
    %358 = tpu.matmul %357, %200, %cst_122 {dimension_numbers = #tpu.dot_dimension_numbers<[1], [0], [0], [1], [0, 0, 1, 1], [], []>} : vector<16x32xbf16>, vector<32x32xbf16>, vector<16x32xf32> -> vector<16x32xf32>
    %359 = vector.broadcast %206 : vector<1x32xf32> to vector<16x32xf32>
    %360 = arith.addf %358, %359 : vector<16x32xf32>
    %361 = arith.addf %350, %360 : vector<16x32xf32>
    %cst_123 = arith.constant dense<0.000000e+00> : vector<16xf32>
    %362 = vector.multi_reduction <add>, %361, %cst_123 [1] : vector<16x32xf32> to vector<16xf32>
    %363 = vector.shape_cast %362 : vector<16xf32> to vector<16x1xf32>
    %cst_124 = arith.constant 3.200000e+01 : f32
    %364 = vector.broadcast %cst_124 : f32 to vector<16x1xf32>
    %365 = arith.divf %363, %364 : vector<16x1xf32>
    %366 = vector.broadcast %365 : vector<16x1xf32> to vector<16x32xf32>
    %367 = arith.subf %361, %366 : vector<16x32xf32>
    %368 = arith.mulf %367, %367 : vector<16x32xf32>
    %cst_125 = arith.constant dense<0.000000e+00> : vector<16xf32>
    %369 = vector.multi_reduction <add>, %368, %cst_125 [1] : vector<16x32xf32> to vector<16xf32>
    %370 = vector.shape_cast %369 : vector<16xf32> to vector<16x1xf32>
    %cst_126 = arith.constant 3.200000e+01 : f32
    %371 = vector.broadcast %cst_126 : f32 to vector<16x1xf32>
    %372 = arith.divf %370, %371 : vector<16x1xf32>
    %cst_127 = arith.constant 9.99999974E-6 : f32
    %373 = vector.broadcast %cst_127 : f32 to vector<16x1xf32>
    %374 = arith.addf %372, %373 : vector<16x1xf32>
    %375 = math.rsqrt %374 : vector<16x1xf32>
    %376 = vector.broadcast %375 : vector<16x1xf32> to vector<16x32xf32>
    %377 = arith.mulf %367, %376 : vector<16x32xf32>
    %378 = vector.broadcast %207 : vector<1x32xf32> to vector<16x32xf32>
    %379 = arith.mulf %377, %378 : vector<16x32xf32>
    %380 = vector.broadcast %208 : vector<1x32xf32> to vector<16x32xf32>
    %381 = arith.addf %379, %380 : vector<16x32xf32>
    %c0_128 = arith.constant 0 : index
    %c1_129 = arith.constant 1 : index
    %c0_130 = arith.constant 0 : index
    %c0_131 = arith.constant 0 : index
    %382 = vector.load %arg2[%c0_128, %c1_129, %c0_130, %c0_131] : memref<2x2x32x96xbf16, #tpu.memory_space<vmem>>, vector<1x1x32x96xbf16>
    %383 = vector.shape_cast %382 : vector<1x1x32x96xbf16> to vector<32x96xbf16>
    %c0_132 = arith.constant 0 : index
    %c1_133 = arith.constant 1 : index
    %c0_134 = arith.constant 0 : index
    %c0_135 = arith.constant 0 : index
    %384 = vector.load %arg6[%c0_132, %c1_133, %c0_134, %c0_135] : memref<2x2x1x96xf32, #tpu.memory_space<vmem>>, vector<1x1x1x96xf32>
    %385 = vector.shape_cast %384 : vector<1x1x1x96xf32> to vector<1x96xf32>
    %c0_136 = arith.constant 0 : index
    %c1_137 = arith.constant 1 : index
    %c0_138 = arith.constant 0 : index
    %c0_139 = arith.constant 0 : index
    %386 = vector.load %arg3[%c0_136, %c1_137, %c0_138, %c0_139] : memref<2x2x32x32xbf16, #tpu.memory_space<vmem>>, vector<1x1x32x32xbf16>
    %387 = vector.shape_cast %386 : vector<1x1x32x32xbf16> to vector<32x32xbf16>
    %c0_140 = arith.constant 0 : index
    %c1_141 = arith.constant 1 : index
    %c0_142 = arith.constant 0 : index
    %c0_143 = arith.constant 0 : index
    %388 = vector.load %arg4[%c0_140, %c1_141, %c0_142, %c0_143] : memref<2x2x32x32xbf16, #tpu.memory_space<vmem>>, vector<1x1x32x32xbf16>
    %389 = vector.shape_cast %388 : vector<1x1x32x32xbf16> to vector<32x32xbf16>
    %c0_144 = arith.constant 0 : index
    %c1_145 = arith.constant 1 : index
    %c0_146 = arith.constant 0 : index
    %c0_147 = arith.constant 0 : index
    %390 = vector.load %arg8[%c0_144, %c1_145, %c0_146, %c0_147] : memref<2x2x1x32xf32, #tpu.memory_space<vmem>>, vector<1x1x1x32xf32>
    %391 = vector.shape_cast %390 : vector<1x1x1x32xf32> to vector<1x32xf32>
    %c0_148 = arith.constant 0 : index
    %c1_149 = arith.constant 1 : index
    %c0_150 = arith.constant 0 : index
    %c0_151 = arith.constant 0 : index
    %392 = vector.load %arg5[%c0_148, %c1_149, %c0_150, %c0_151] : memref<2x2x32x32xbf16, #tpu.memory_space<vmem>>, vector<1x1x32x32xbf16>
    %393 = vector.shape_cast %392 : vector<1x1x32x32xbf16> to vector<32x32xbf16>
    %c0_152 = arith.constant 0 : index
    %c1_153 = arith.constant 1 : index
    %c0_154 = arith.constant 0 : index
    %c0_155 = arith.constant 0 : index
    %394 = vector.load %arg7[%c0_152, %c1_153, %c0_154, %c0_155] : memref<2x2x6x32xf32, #tpu.memory_space<vmem>>, vector<1x1x6x32xf32>
    %395 = vector.shape_cast %394 : vector<1x1x6x32xf32> to vector<6x32xf32>
    %396 = vector.extract_strided_slice %395 {offsets = [0, 0], sizes = [1, 32], strides = [1, 1]} : vector<6x32xf32> to vector<1x32xf32>
    %397 = vector.extract_strided_slice %395 {offsets = [1, 0], sizes = [1, 32], strides = [1, 1]} : vector<6x32xf32> to vector<1x32xf32>
    %398 = vector.extract_strided_slice %395 {offsets = [2, 0], sizes = [1, 32], strides = [1, 1]} : vector<6x32xf32> to vector<1x32xf32>
    %399 = vector.extract_strided_slice %395 {offsets = [3, 0], sizes = [1, 32], strides = [1, 1]} : vector<6x32xf32> to vector<1x32xf32>
    %400 = vector.extract_strided_slice %395 {offsets = [4, 0], sizes = [1, 32], strides = [1, 1]} : vector<6x32xf32> to vector<1x32xf32>
    %401 = vector.extract_strided_slice %395 {offsets = [5, 0], sizes = [1, 32], strides = [1, 1]} : vector<6x32xf32> to vector<1x32xf32>
    %402 = arith.truncf %188 : vector<32x32xf32> to vector<32x32xbf16>
    %cst_156 = arith.constant dense<0.000000e+00> : vector<32x96xf32>
    %403 = tpu.matmul %402, %383, %cst_156 {dimension_numbers = #tpu.dot_dimension_numbers<[1], [0], [0], [1], [0, 0, 1, 1], [], []>} : vector<32x32xbf16>, vector<32x96xbf16>, vector<32x96xf32> -> vector<32x96xf32>
    %404 = vector.broadcast %385 : vector<1x96xf32> to vector<32x96xf32>
    %405 = arith.addf %403, %404 : vector<32x96xf32>
    %406 = vector.extract_strided_slice %405 {offsets = [0, 0], sizes = [32, 8], strides = [1, 1]} : vector<32x96xf32> to vector<32x8xf32>
    %407 = vector.shape_cast %406 : vector<32x8xf32> to vector<2x16x8xf32>
    %408 = arith.truncf %407 : vector<2x16x8xf32> to vector<2x16x8xbf16>
    %409 = vector.extract_strided_slice %405 {offsets = [0, 32], sizes = [32, 8], strides = [1, 1]} : vector<32x96xf32> to vector<32x8xf32>
    %410 = vector.shape_cast %409 : vector<32x8xf32> to vector<2x16x8xf32>
    %411 = arith.truncf %410 : vector<2x16x8xf32> to vector<2x16x8xbf16>
    %412 = vector.extract_strided_slice %405 {offsets = [0, 64], sizes = [32, 8], strides = [1, 1]} : vector<32x96xf32> to vector<32x8xf32>
    %413 = vector.shape_cast %412 : vector<32x8xf32> to vector<2x16x8xf32>
    %414 = arith.truncf %413 : vector<2x16x8xf32> to vector<2x16x8xbf16>
    "tpu.trace_start"() <{level = 10 : i32, message = "bqd,bkd->bqk"}> : () -> ()
    %cst_157 = arith.constant dense<0.000000e+00> : vector<2x16x16xf32>
    %415 = tpu.matmul %408, %411, %cst_157 {dimension_numbers = #tpu.dot_dimension_numbers<[2], [2], [1], [1], [0, 0, 0, 1, 1, 1], [0], [0]>} : vector<2x16x8xbf16>, vector<2x16x8xbf16>, vector<2x16x16xf32> -> vector<2x16x16xf32>
    "tpu.trace_stop"() : () -> ()
    %cst_158 = arith.constant dense<0xFF800000> : vector<2x16xf32>
    %416 = vector.multi_reduction <maximumf>, %415, %cst_158 [2] : vector<2x16x16xf32> to vector<2x16xf32>
    %417 = vector.shape_cast %416 : vector<2x16xf32> to vector<2x16x1xf32>
    %418 = vector.broadcast %417 : vector<2x16x1xf32> to vector<2x16x16xf32>
    %419 = arith.subf %415, %418 : vector<2x16x16xf32>
    %420 = math.exp %419 : vector<2x16x16xf32>
    %cst_159 = arith.constant dense<0.000000e+00> : vector<2x16xf32>
    %421 = vector.multi_reduction <add>, %420, %cst_159 [2] : vector<2x16x16xf32> to vector<2x16xf32>
    %422 = vector.shape_cast %421 : vector<2x16xf32> to vector<2x16x1xf32>
    %423 = tpu.reciprocal %422 {approx = true} : vector<2x16x1xf32> -> vector<2x16x1xf32>
    %424 = vector.broadcast %423 : vector<2x16x1xf32> to vector<2x16x16xf32>
    %425 = arith.mulf %420, %424 : vector<2x16x16xf32>
    %426 = arith.truncf %425 : vector<2x16x16xf32> to vector<2x16x16xbf16>
    "tpu.trace_start"() <{level = 10 : i32, message = "bqk,bkd->bqd"}> : () -> ()
    %cst_160 = arith.constant dense<0.000000e+00> : vector<2x16x8xf32>
    %427 = tpu.matmul %426, %414, %cst_160 {dimension_numbers = #tpu.dot_dimension_numbers<[2], [1], [1], [2], [0, 0, 0, 1, 1, 2], [0], [0]>} : vector<2x16x16xbf16>, vector<2x16x8xbf16>, vector<2x16x8xf32> -> vector<2x16x8xf32>
    "tpu.trace_stop"() : () -> ()
    %428 = vector.shape_cast %427 : vector<2x16x8xf32> to vector<32x8xf32>
    %429 = arith.truncf %428 : vector<32x8xf32> to vector<32x8xbf16>
    %430 = vector.extract_strided_slice %387 {offsets = [0, 0], sizes = [8, 32], strides = [1, 1]} : vector<32x32xbf16> to vector<8x32xbf16>
    %cst_161 = arith.constant dense<0.000000e+00> : vector<32x32xf32>
    %431 = tpu.matmul %429, %430, %cst_161 {dimension_numbers = #tpu.dot_dimension_numbers<[1], [0], [0], [1], [0, 0, 1, 1], [], []>} : vector<32x8xbf16>, vector<8x32xbf16>, vector<32x32xf32> -> vector<32x32xf32>
    %432 = vector.extract_strided_slice %405 {offsets = [0, 8], sizes = [32, 8], strides = [1, 1]} : vector<32x96xf32> to vector<32x8xf32>
    %433 = vector.shape_cast %432 : vector<32x8xf32> to vector<2x16x8xf32>
    %434 = arith.truncf %433 : vector<2x16x8xf32> to vector<2x16x8xbf16>
    %435 = vector.extract_strided_slice %405 {offsets = [0, 40], sizes = [32, 8], strides = [1, 1]} : vector<32x96xf32> to vector<32x8xf32>
    %436 = vector.shape_cast %435 : vector<32x8xf32> to vector<2x16x8xf32>
    %437 = arith.truncf %436 : vector<2x16x8xf32> to vector<2x16x8xbf16>
    %438 = vector.extract_strided_slice %405 {offsets = [0, 72], sizes = [32, 8], strides = [1, 1]} : vector<32x96xf32> to vector<32x8xf32>
    %439 = vector.shape_cast %438 : vector<32x8xf32> to vector<2x16x8xf32>
    %440 = arith.truncf %439 : vector<2x16x8xf32> to vector<2x16x8xbf16>
    "tpu.trace_start"() <{level = 10 : i32, message = "bqd,bkd->bqk"}> : () -> ()
    %cst_162 = arith.constant dense<0.000000e+00> : vector<2x16x16xf32>
    %441 = tpu.matmul %434, %437, %cst_162 {dimension_numbers = #tpu.dot_dimension_numbers<[2], [2], [1], [1], [0, 0, 0, 1, 1, 1], [0], [0]>} : vector<2x16x8xbf16>, vector<2x16x8xbf16>, vector<2x16x16xf32> -> vector<2x16x16xf32>
    "tpu.trace_stop"() : () -> ()
    %cst_163 = arith.constant dense<0xFF800000> : vector<2x16xf32>
    %442 = vector.multi_reduction <maximumf>, %441, %cst_163 [2] : vector<2x16x16xf32> to vector<2x16xf32>
    %443 = vector.shape_cast %442 : vector<2x16xf32> to vector<2x16x1xf32>
    %444 = vector.broadcast %443 : vector<2x16x1xf32> to vector<2x16x16xf32>
    %445 = arith.subf %441, %444 : vector<2x16x16xf32>
    %446 = math.exp %445 : vector<2x16x16xf32>
    %cst_164 = arith.constant dense<0.000000e+00> : vector<2x16xf32>
    %447 = vector.multi_reduction <add>, %446, %cst_164 [2] : vector<2x16x16xf32> to vector<2x16xf32>
    %448 = vector.shape_cast %447 : vector<2x16xf32> to vector<2x16x1xf32>
    %449 = tpu.reciprocal %448 {approx = true} : vector<2x16x1xf32> -> vector<2x16x1xf32>
    %450 = vector.broadcast %449 : vector<2x16x1xf32> to vector<2x16x16xf32>
    %451 = arith.mulf %446, %450 : vector<2x16x16xf32>
    %452 = arith.truncf %451 : vector<2x16x16xf32> to vector<2x16x16xbf16>
    "tpu.trace_start"() <{level = 10 : i32, message = "bqk,bkd->bqd"}> : () -> ()
    %cst_165 = arith.constant dense<0.000000e+00> : vector<2x16x8xf32>
    %453 = tpu.matmul %452, %440, %cst_165 {dimension_numbers = #tpu.dot_dimension_numbers<[2], [1], [1], [2], [0, 0, 0, 1, 1, 2], [0], [0]>} : vector<2x16x16xbf16>, vector<2x16x8xbf16>, vector<2x16x8xf32> -> vector<2x16x8xf32>
    "tpu.trace_stop"() : () -> ()
    %454 = vector.shape_cast %453 : vector<2x16x8xf32> to vector<32x8xf32>
    %455 = arith.truncf %454 : vector<32x8xf32> to vector<32x8xbf16>
    %456 = vector.extract_strided_slice %387 {offsets = [8, 0], sizes = [8, 32], strides = [1, 1]} : vector<32x32xbf16> to vector<8x32xbf16>
    %cst_166 = arith.constant dense<0.000000e+00> : vector<32x32xf32>
    %457 = tpu.matmul %455, %456, %cst_166 {dimension_numbers = #tpu.dot_dimension_numbers<[1], [0], [0], [1], [0, 0, 1, 1], [], []>} : vector<32x8xbf16>, vector<8x32xbf16>, vector<32x32xf32> -> vector<32x32xf32>
    %458 = arith.addf %431, %457 : vector<32x32xf32>
    %459 = vector.extract_strided_slice %405 {offsets = [0, 16], sizes = [32, 8], strides = [1, 1]} : vector<32x96xf32> to vector<32x8xf32>
    %460 = vector.shape_cast %459 : vector<32x8xf32> to vector<2x16x8xf32>
    %461 = arith.truncf %460 : vector<2x16x8xf32> to vector<2x16x8xbf16>
    %462 = vector.extract_strided_slice %405 {offsets = [0, 48], sizes = [32, 8], strides = [1, 1]} : vector<32x96xf32> to vector<32x8xf32>
    %463 = vector.shape_cast %462 : vector<32x8xf32> to vector<2x16x8xf32>
    %464 = arith.truncf %463 : vector<2x16x8xf32> to vector<2x16x8xbf16>
    %465 = vector.extract_strided_slice %405 {offsets = [0, 80], sizes = [32, 8], strides = [1, 1]} : vector<32x96xf32> to vector<32x8xf32>
    %466 = vector.shape_cast %465 : vector<32x8xf32> to vector<2x16x8xf32>
    %467 = arith.truncf %466 : vector<2x16x8xf32> to vector<2x16x8xbf16>
    "tpu.trace_start"() <{level = 10 : i32, message = "bqd,bkd->bqk"}> : () -> ()
    %cst_167 = arith.constant dense<0.000000e+00> : vector<2x16x16xf32>
    %468 = tpu.matmul %461, %464, %cst_167 {dimension_numbers = #tpu.dot_dimension_numbers<[2], [2], [1], [1], [0, 0, 0, 1, 1, 1], [0], [0]>} : vector<2x16x8xbf16>, vector<2x16x8xbf16>, vector<2x16x16xf32> -> vector<2x16x16xf32>
    "tpu.trace_stop"() : () -> ()
    %cst_168 = arith.constant dense<0xFF800000> : vector<2x16xf32>
    %469 = vector.multi_reduction <maximumf>, %468, %cst_168 [2] : vector<2x16x16xf32> to vector<2x16xf32>
    %470 = vector.shape_cast %469 : vector<2x16xf32> to vector<2x16x1xf32>
    %471 = vector.broadcast %470 : vector<2x16x1xf32> to vector<2x16x16xf32>
    %472 = arith.subf %468, %471 : vector<2x16x16xf32>
    %473 = math.exp %472 : vector<2x16x16xf32>
    %cst_169 = arith.constant dense<0.000000e+00> : vector<2x16xf32>
    %474 = vector.multi_reduction <add>, %473, %cst_169 [2] : vector<2x16x16xf32> to vector<2x16xf32>
    %475 = vector.shape_cast %474 : vector<2x16xf32> to vector<2x16x1xf32>
    %476 = tpu.reciprocal %475 {approx = true} : vector<2x16x1xf32> -> vector<2x16x1xf32>
    %477 = vector.broadcast %476 : vector<2x16x1xf32> to vector<2x16x16xf32>
    %478 = arith.mulf %473, %477 : vector<2x16x16xf32>
    %479 = arith.truncf %478 : vector<2x16x16xf32> to vector<2x16x16xbf16>
    "tpu.trace_start"() <{level = 10 : i32, message = "bqk,bkd->bqd"}> : () -> ()
    %cst_170 = arith.constant dense<0.000000e+00> : vector<2x16x8xf32>
    %480 = tpu.matmul %479, %467, %cst_170 {dimension_numbers = #tpu.dot_dimension_numbers<[2], [1], [1], [2], [0, 0, 0, 1, 1, 2], [0], [0]>} : vector<2x16x16xbf16>, vector<2x16x8xbf16>, vector<2x16x8xf32> -> vector<2x16x8xf32>
    "tpu.trace_stop"() : () -> ()
    %481 = vector.shape_cast %480 : vector<2x16x8xf32> to vector<32x8xf32>
    %482 = arith.truncf %481 : vector<32x8xf32> to vector<32x8xbf16>
    %483 = vector.extract_strided_slice %387 {offsets = [16, 0], sizes = [8, 32], strides = [1, 1]} : vector<32x32xbf16> to vector<8x32xbf16>
    %cst_171 = arith.constant dense<0.000000e+00> : vector<32x32xf32>
    %484 = tpu.matmul %482, %483, %cst_171 {dimension_numbers = #tpu.dot_dimension_numbers<[1], [0], [0], [1], [0, 0, 1, 1], [], []>} : vector<32x8xbf16>, vector<8x32xbf16>, vector<32x32xf32> -> vector<32x32xf32>
    %485 = arith.addf %458, %484 : vector<32x32xf32>
    %486 = vector.extract_strided_slice %405 {offsets = [0, 24], sizes = [32, 8], strides = [1, 1]} : vector<32x96xf32> to vector<32x8xf32>
    %487 = vector.shape_cast %486 : vector<32x8xf32> to vector<2x16x8xf32>
    %488 = arith.truncf %487 : vector<2x16x8xf32> to vector<2x16x8xbf16>
    %489 = vector.extract_strided_slice %405 {offsets = [0, 56], sizes = [32, 8], strides = [1, 1]} : vector<32x96xf32> to vector<32x8xf32>
    %490 = vector.shape_cast %489 : vector<32x8xf32> to vector<2x16x8xf32>
    %491 = arith.truncf %490 : vector<2x16x8xf32> to vector<2x16x8xbf16>
    %492 = vector.extract_strided_slice %405 {offsets = [0, 88], sizes = [32, 8], strides = [1, 1]} : vector<32x96xf32> to vector<32x8xf32>
    %493 = vector.shape_cast %492 : vector<32x8xf32> to vector<2x16x8xf32>
    %494 = arith.truncf %493 : vector<2x16x8xf32> to vector<2x16x8xbf16>
    "tpu.trace_start"() <{level = 10 : i32, message = "bqd,bkd->bqk"}> : () -> ()
    %cst_172 = arith.constant dense<0.000000e+00> : vector<2x16x16xf32>
    %495 = tpu.matmul %488, %491, %cst_172 {dimension_numbers = #tpu.dot_dimension_numbers<[2], [2], [1], [1], [0, 0, 0, 1, 1, 1], [0], [0]>} : vector<2x16x8xbf16>, vector<2x16x8xbf16>, vector<2x16x16xf32> -> vector<2x16x16xf32>
    "tpu.trace_stop"() : () -> ()
    %cst_173 = arith.constant dense<0xFF800000> : vector<2x16xf32>
    %496 = vector.multi_reduction <maximumf>, %495, %cst_173 [2] : vector<2x16x16xf32> to vector<2x16xf32>
    %497 = vector.shape_cast %496 : vector<2x16xf32> to vector<2x16x1xf32>
    %498 = vector.broadcast %497 : vector<2x16x1xf32> to vector<2x16x16xf32>
    %499 = arith.subf %495, %498 : vector<2x16x16xf32>
    %500 = math.exp %499 : vector<2x16x16xf32>
    %cst_174 = arith.constant dense<0.000000e+00> : vector<2x16xf32>
    %501 = vector.multi_reduction <add>, %500, %cst_174 [2] : vector<2x16x16xf32> to vector<2x16xf32>
    %502 = vector.shape_cast %501 : vector<2x16xf32> to vector<2x16x1xf32>
    %503 = tpu.reciprocal %502 {approx = true} : vector<2x16x1xf32> -> vector<2x16x1xf32>
    %504 = vector.broadcast %503 : vector<2x16x1xf32> to vector<2x16x16xf32>
    %505 = arith.mulf %500, %504 : vector<2x16x16xf32>
    %506 = arith.truncf %505 : vector<2x16x16xf32> to vector<2x16x16xbf16>
    "tpu.trace_start"() <{level = 10 : i32, message = "bqk,bkd->bqd"}> : () -> ()
    %cst_175 = arith.constant dense<0.000000e+00> : vector<2x16x8xf32>
    %507 = tpu.matmul %506, %494, %cst_175 {dimension_numbers = #tpu.dot_dimension_numbers<[2], [1], [1], [2], [0, 0, 0, 1, 1, 2], [0], [0]>} : vector<2x16x16xbf16>, vector<2x16x8xbf16>, vector<2x16x8xf32> -> vector<2x16x8xf32>
    "tpu.trace_stop"() : () -> ()
    %508 = vector.shape_cast %507 : vector<2x16x8xf32> to vector<32x8xf32>
    %509 = arith.truncf %508 : vector<32x8xf32> to vector<32x8xbf16>
    %510 = vector.extract_strided_slice %387 {offsets = [24, 0], sizes = [8, 32], strides = [1, 1]} : vector<32x32xbf16> to vector<8x32xbf16>
    %cst_176 = arith.constant dense<0.000000e+00> : vector<32x32xf32>
    %511 = tpu.matmul %509, %510, %cst_176 {dimension_numbers = #tpu.dot_dimension_numbers<[1], [0], [0], [1], [0, 0, 1, 1], [], []>} : vector<32x8xbf16>, vector<8x32xbf16>, vector<32x32xf32> -> vector<32x32xf32>
    %512 = arith.addf %485, %511 : vector<32x32xf32>
    %513 = arith.addf %188, %512 : vector<32x32xf32>
    %514 = vector.broadcast %396 : vector<1x32xf32> to vector<32x32xf32>
    %515 = arith.addf %513, %514 : vector<32x32xf32>
    %cst_177 = arith.constant dense<0.000000e+00> : vector<32xf32>
    %516 = vector.multi_reduction <add>, %515, %cst_177 [1] : vector<32x32xf32> to vector<32xf32>
    %517 = vector.shape_cast %516 : vector<32xf32> to vector<32x1xf32>
    %cst_178 = arith.constant 3.200000e+01 : f32
    %518 = vector.broadcast %cst_178 : f32 to vector<32x1xf32>
    %519 = arith.divf %517, %518 : vector<32x1xf32>
    %520 = vector.broadcast %519 : vector<32x1xf32> to vector<32x32xf32>
    %521 = arith.subf %515, %520 : vector<32x32xf32>
    %522 = arith.mulf %521, %521 : vector<32x32xf32>
    %cst_179 = arith.constant dense<0.000000e+00> : vector<32xf32>
    %523 = vector.multi_reduction <add>, %522, %cst_179 [1] : vector<32x32xf32> to vector<32xf32>
    %524 = vector.shape_cast %523 : vector<32xf32> to vector<32x1xf32>
    %cst_180 = arith.constant 3.200000e+01 : f32
    %525 = vector.broadcast %cst_180 : f32 to vector<32x1xf32>
    %526 = arith.divf %524, %525 : vector<32x1xf32>
    %cst_181 = arith.constant 9.99999974E-6 : f32
    %527 = vector.broadcast %cst_181 : f32 to vector<32x1xf32>
    %528 = arith.addf %526, %527 : vector<32x1xf32>
    %529 = math.rsqrt %528 : vector<32x1xf32>
    %530 = vector.broadcast %529 : vector<32x1xf32> to vector<32x32xf32>
    %531 = arith.mulf %521, %530 : vector<32x32xf32>
    %532 = vector.broadcast %397 : vector<1x32xf32> to vector<32x32xf32>
    %533 = arith.mulf %531, %532 : vector<32x32xf32>
    %534 = vector.broadcast %398 : vector<1x32xf32> to vector<32x32xf32>
    %535 = arith.addf %533, %534 : vector<32x32xf32>
    %536 = arith.truncf %535 : vector<32x32xf32> to vector<32x32xbf16>
    %cst_182 = arith.constant dense<0.000000e+00> : vector<32x32xf32>
    %537 = tpu.matmul %536, %389, %cst_182 {dimension_numbers = #tpu.dot_dimension_numbers<[1], [0], [0], [1], [0, 0, 1, 1], [], []>} : vector<32x32xbf16>, vector<32x32xbf16>, vector<32x32xf32> -> vector<32x32xf32>
    %538 = vector.broadcast %391 : vector<1x32xf32> to vector<32x32xf32>
    %539 = arith.addf %537, %538 : vector<32x32xf32>
    %cst_183 = arith.constant 0.000000e+00 : f32
    %540 = vector.broadcast %cst_183 : f32 to vector<32x32xf32>
    %541 = arith.maximumf %539, %540 : vector<32x32xf32>
    %542 = arith.truncf %541 : vector<32x32xf32> to vector<32x32xbf16>
    %cst_184 = arith.constant dense<0.000000e+00> : vector<32x32xf32>
    %543 = tpu.matmul %542, %393, %cst_184 {dimension_numbers = #tpu.dot_dimension_numbers<[1], [0], [0], [1], [0, 0, 1, 1], [], []>} : vector<32x32xbf16>, vector<32x32xbf16>, vector<32x32xf32> -> vector<32x32xf32>
    %544 = vector.broadcast %399 : vector<1x32xf32> to vector<32x32xf32>
    %545 = arith.addf %543, %544 : vector<32x32xf32>
    %546 = arith.addf %535, %545 : vector<32x32xf32>
    %cst_185 = arith.constant dense<0.000000e+00> : vector<32xf32>
    %547 = vector.multi_reduction <add>, %546, %cst_185 [1] : vector<32x32xf32> to vector<32xf32>
    %548 = vector.shape_cast %547 : vector<32xf32> to vector<32x1xf32>
    %cst_186 = arith.constant 3.200000e+01 : f32
    %549 = vector.broadcast %cst_186 : f32 to vector<32x1xf32>
    %550 = arith.divf %548, %549 : vector<32x1xf32>
    %551 = vector.broadcast %550 : vector<32x1xf32> to vector<32x32xf32>
    %552 = arith.subf %546, %551 : vector<32x32xf32>
    %553 = arith.mulf %552, %552 : vector<32x32xf32>
    %cst_187 = arith.constant dense<0.000000e+00> : vector<32xf32>
    %554 = vector.multi_reduction <add>, %553, %cst_187 [1] : vector<32x32xf32> to vector<32xf32>
    %555 = vector.shape_cast %554 : vector<32xf32> to vector<32x1xf32>
    %cst_188 = arith.constant 3.200000e+01 : f32
    %556 = vector.broadcast %cst_188 : f32 to vector<32x1xf32>
    %557 = arith.divf %555, %556 : vector<32x1xf32>
    %cst_189 = arith.constant 9.99999974E-6 : f32
    %558 = vector.broadcast %cst_189 : f32 to vector<32x1xf32>
    %559 = arith.addf %557, %558 : vector<32x1xf32>
    %560 = math.rsqrt %559 : vector<32x1xf32>
    %561 = vector.broadcast %560 : vector<32x1xf32> to vector<32x32xf32>
    %562 = arith.mulf %552, %561 : vector<32x32xf32>
    %563 = vector.broadcast %400 : vector<1x32xf32> to vector<32x32xf32>
    %564 = arith.mulf %562, %563 : vector<32x32xf32>
    %565 = vector.broadcast %401 : vector<1x32xf32> to vector<32x32xf32>
    %566 = arith.addf %564, %565 : vector<32x32xf32>
    %c1_190 = arith.constant 1 : index
    %c1_191 = arith.constant 1 : index
    %c0_192 = arith.constant 0 : index
    %c0_193 = arith.constant 0 : index
    %567 = vector.load %arg2[%c1_190, %c1_191, %c0_192, %c0_193] : memref<2x2x32x96xbf16, #tpu.memory_space<vmem>>, vector<1x1x32x96xbf16>
    %568 = vector.shape_cast %567 : vector<1x1x32x96xbf16> to vector<32x96xbf16>
    %c1_194 = arith.constant 1 : index
    %c1_195 = arith.constant 1 : index
    %c0_196 = arith.constant 0 : index
    %c0_197 = arith.constant 0 : index
    %569 = vector.load %arg6[%c1_194, %c1_195, %c0_196, %c0_197] : memref<2x2x1x96xf32, #tpu.memory_space<vmem>>, vector<1x1x1x96xf32>
    %570 = vector.shape_cast %569 : vector<1x1x1x96xf32> to vector<1x96xf32>
    %c1_198 = arith.constant 1 : index
    %c1_199 = arith.constant 1 : index
    %c0_200 = arith.constant 0 : index
    %c0_201 = arith.constant 0 : index
    %571 = vector.load %arg3[%c1_198, %c1_199, %c0_200, %c0_201] : memref<2x2x32x32xbf16, #tpu.memory_space<vmem>>, vector<1x1x32x32xbf16>
    %572 = vector.shape_cast %571 : vector<1x1x32x32xbf16> to vector<32x32xbf16>
    %c1_202 = arith.constant 1 : index
    %c1_203 = arith.constant 1 : index
    %c0_204 = arith.constant 0 : index
    %c0_205 = arith.constant 0 : index
    %573 = vector.load %arg4[%c1_202, %c1_203, %c0_204, %c0_205] : memref<2x2x32x32xbf16, #tpu.memory_space<vmem>>, vector<1x1x32x32xbf16>
    %574 = vector.shape_cast %573 : vector<1x1x32x32xbf16> to vector<32x32xbf16>
    %c1_206 = arith.constant 1 : index
    %c1_207 = arith.constant 1 : index
    %c0_208 = arith.constant 0 : index
    %c0_209 = arith.constant 0 : index
    %575 = vector.load %arg8[%c1_206, %c1_207, %c0_208, %c0_209] : memref<2x2x1x32xf32, #tpu.memory_space<vmem>>, vector<1x1x1x32xf32>
    %576 = vector.shape_cast %575 : vector<1x1x1x32xf32> to vector<1x32xf32>
    %c1_210 = arith.constant 1 : index
    %c1_211 = arith.constant 1 : index
    %c0_212 = arith.constant 0 : index
    %c0_213 = arith.constant 0 : index
    %577 = vector.load %arg5[%c1_210, %c1_211, %c0_212, %c0_213] : memref<2x2x32x32xbf16, #tpu.memory_space<vmem>>, vector<1x1x32x32xbf16>
    %578 = vector.shape_cast %577 : vector<1x1x32x32xbf16> to vector<32x32xbf16>
    %c1_214 = arith.constant 1 : index
    %c1_215 = arith.constant 1 : index
    %c0_216 = arith.constant 0 : index
    %c0_217 = arith.constant 0 : index
    %579 = vector.load %arg7[%c1_214, %c1_215, %c0_216, %c0_217] : memref<2x2x6x32xf32, #tpu.memory_space<vmem>>, vector<1x1x6x32xf32>
    %580 = vector.shape_cast %579 : vector<1x1x6x32xf32> to vector<6x32xf32>
    %581 = vector.extract_strided_slice %580 {offsets = [0, 0], sizes = [1, 32], strides = [1, 1]} : vector<6x32xf32> to vector<1x32xf32>
    %582 = vector.extract_strided_slice %580 {offsets = [1, 0], sizes = [1, 32], strides = [1, 1]} : vector<6x32xf32> to vector<1x32xf32>
    %583 = vector.extract_strided_slice %580 {offsets = [2, 0], sizes = [1, 32], strides = [1, 1]} : vector<6x32xf32> to vector<1x32xf32>
    %584 = vector.extract_strided_slice %580 {offsets = [3, 0], sizes = [1, 32], strides = [1, 1]} : vector<6x32xf32> to vector<1x32xf32>
    %585 = vector.extract_strided_slice %580 {offsets = [4, 0], sizes = [1, 32], strides = [1, 1]} : vector<6x32xf32> to vector<1x32xf32>
    %586 = vector.extract_strided_slice %580 {offsets = [5, 0], sizes = [1, 32], strides = [1, 1]} : vector<6x32xf32> to vector<1x32xf32>
    %587 = arith.truncf %381 : vector<16x32xf32> to vector<16x32xbf16>
    %588 = vector.extract_strided_slice %568 {offsets = [0, 0], sizes = [32, 32], strides = [1, 1]} : vector<32x96xbf16> to vector<32x32xbf16>
    %cst_218 = arith.constant dense<0.000000e+00> : vector<16x32xf32>
    %589 = tpu.matmul %587, %588, %cst_218 {dimension_numbers = #tpu.dot_dimension_numbers<[1], [0], [0], [1], [0, 0, 1, 1], [], []>} : vector<16x32xbf16>, vector<32x32xbf16>, vector<16x32xf32> -> vector<16x32xf32>
    %590 = vector.extract_strided_slice %570 {offsets = [0, 0], sizes = [1, 32], strides = [1, 1]} : vector<1x96xf32> to vector<1x32xf32>
    %591 = vector.broadcast %590 : vector<1x32xf32> to vector<16x32xf32>
    %592 = arith.addf %589, %591 : vector<16x32xf32>
    %593 = arith.truncf %566 : vector<32x32xf32> to vector<32x32xbf16>
    %594 = vector.extract_strided_slice %568 {offsets = [0, 32], sizes = [32, 64], strides = [1, 1]} : vector<32x96xbf16> to vector<32x64xbf16>
    %cst_219 = arith.constant dense<0.000000e+00> : vector<32x64xf32>
    %595 = tpu.matmul %593, %594, %cst_219 {dimension_numbers = #tpu.dot_dimension_numbers<[1], [0], [0], [1], [0, 0, 1, 1], [], []>} : vector<32x32xbf16>, vector<32x64xbf16>, vector<32x64xf32> -> vector<32x64xf32>
    %596 = vector.extract_strided_slice %570 {offsets = [0, 32], sizes = [1, 64], strides = [1, 1]} : vector<1x96xf32> to vector<1x64xf32>
    %597 = vector.broadcast %596 : vector<1x64xf32> to vector<32x64xf32>
    %598 = arith.addf %595, %597 : vector<32x64xf32>
    %599 = vector.extract_strided_slice %592 {offsets = [0, 0], sizes = [16, 8], strides = [1, 1]} : vector<16x32xf32> to vector<16x8xf32>
    %600 = vector.shape_cast %599 : vector<16x8xf32> to vector<2x8x8xf32>
    %601 = arith.truncf %600 : vector<2x8x8xf32> to vector<2x8x8xbf16>
    %602 = vector.extract_strided_slice %598 {offsets = [0, 0], sizes = [32, 8], strides = [1, 1]} : vector<32x64xf32> to vector<32x8xf32>
    %603 = vector.shape_cast %602 : vector<32x8xf32> to vector<2x16x8xf32>
    %604 = arith.truncf %603 : vector<2x16x8xf32> to vector<2x16x8xbf16>
    %605 = vector.extract_strided_slice %598 {offsets = [0, 32], sizes = [32, 8], strides = [1, 1]} : vector<32x64xf32> to vector<32x8xf32>
    %606 = vector.shape_cast %605 : vector<32x8xf32> to vector<2x16x8xf32>
    %607 = arith.truncf %606 : vector<2x16x8xf32> to vector<2x16x8xbf16>
    "tpu.trace_start"() <{level = 10 : i32, message = "bqd,bkd->bqk"}> : () -> ()
    %cst_220 = arith.constant dense<0.000000e+00> : vector<2x8x16xf32>
    %608 = tpu.matmul %601, %604, %cst_220 {dimension_numbers = #tpu.dot_dimension_numbers<[2], [2], [1], [1], [0, 0, 0, 1, 1, 1], [0], [0]>} : vector<2x8x8xbf16>, vector<2x16x8xbf16>, vector<2x8x16xf32> -> vector<2x8x16xf32>
    "tpu.trace_stop"() : () -> ()
    %cst_221 = arith.constant dense<0xFF800000> : vector<2x8xf32>
    %609 = vector.multi_reduction <maximumf>, %608, %cst_221 [2] : vector<2x8x16xf32> to vector<2x8xf32>
    %610 = vector.shape_cast %609 : vector<2x8xf32> to vector<2x8x1xf32>
    %611 = vector.broadcast %610 : vector<2x8x1xf32> to vector<2x8x16xf32>
    %612 = arith.subf %608, %611 : vector<2x8x16xf32>
    %613 = math.exp %612 : vector<2x8x16xf32>
    %cst_222 = arith.constant dense<0.000000e+00> : vector<2x8xf32>
    %614 = vector.multi_reduction <add>, %613, %cst_222 [2] : vector<2x8x16xf32> to vector<2x8xf32>
    %615 = vector.shape_cast %614 : vector<2x8xf32> to vector<2x8x1xf32>
    %616 = tpu.reciprocal %615 {approx = true} : vector<2x8x1xf32> -> vector<2x8x1xf32>
    %617 = vector.broadcast %616 : vector<2x8x1xf32> to vector<2x8x16xf32>
    %618 = arith.mulf %613, %617 : vector<2x8x16xf32>
    %619 = arith.truncf %618 : vector<2x8x16xf32> to vector<2x8x16xbf16>
    "tpu.trace_start"() <{level = 10 : i32, message = "bqk,bkd->bqd"}> : () -> ()
    %cst_223 = arith.constant dense<0.000000e+00> : vector<2x8x8xf32>
    %620 = tpu.matmul %619, %607, %cst_223 {dimension_numbers = #tpu.dot_dimension_numbers<[2], [1], [1], [2], [0, 0, 0, 1, 1, 2], [0], [0]>} : vector<2x8x16xbf16>, vector<2x16x8xbf16>, vector<2x8x8xf32> -> vector<2x8x8xf32>
    "tpu.trace_stop"() : () -> ()
    %621 = vector.shape_cast %620 : vector<2x8x8xf32> to vector<16x8xf32>
    %622 = arith.truncf %621 : vector<16x8xf32> to vector<16x8xbf16>
    %623 = vector.extract_strided_slice %572 {offsets = [0, 0], sizes = [8, 32], strides = [1, 1]} : vector<32x32xbf16> to vector<8x32xbf16>
    %cst_224 = arith.constant dense<0.000000e+00> : vector<16x32xf32>
    %624 = tpu.matmul %622, %623, %cst_224 {dimension_numbers = #tpu.dot_dimension_numbers<[1], [0], [0], [1], [0, 0, 1, 1], [], []>} : vector<16x8xbf16>, vector<8x32xbf16>, vector<16x32xf32> -> vector<16x32xf32>
    %625 = vector.extract_strided_slice %592 {offsets = [0, 8], sizes = [16, 8], strides = [1, 1]} : vector<16x32xf32> to vector<16x8xf32>
    %626 = vector.shape_cast %625 : vector<16x8xf32> to vector<2x8x8xf32>
    %627 = arith.truncf %626 : vector<2x8x8xf32> to vector<2x8x8xbf16>
    %628 = vector.extract_strided_slice %598 {offsets = [0, 8], sizes = [32, 8], strides = [1, 1]} : vector<32x64xf32> to vector<32x8xf32>
    %629 = vector.shape_cast %628 : vector<32x8xf32> to vector<2x16x8xf32>
    %630 = arith.truncf %629 : vector<2x16x8xf32> to vector<2x16x8xbf16>
    %631 = vector.extract_strided_slice %598 {offsets = [0, 40], sizes = [32, 8], strides = [1, 1]} : vector<32x64xf32> to vector<32x8xf32>
    %632 = vector.shape_cast %631 : vector<32x8xf32> to vector<2x16x8xf32>
    %633 = arith.truncf %632 : vector<2x16x8xf32> to vector<2x16x8xbf16>
    "tpu.trace_start"() <{level = 10 : i32, message = "bqd,bkd->bqk"}> : () -> ()
    %cst_225 = arith.constant dense<0.000000e+00> : vector<2x8x16xf32>
    %634 = tpu.matmul %627, %630, %cst_225 {dimension_numbers = #tpu.dot_dimension_numbers<[2], [2], [1], [1], [0, 0, 0, 1, 1, 1], [0], [0]>} : vector<2x8x8xbf16>, vector<2x16x8xbf16>, vector<2x8x16xf32> -> vector<2x8x16xf32>
    "tpu.trace_stop"() : () -> ()
    %cst_226 = arith.constant dense<0xFF800000> : vector<2x8xf32>
    %635 = vector.multi_reduction <maximumf>, %634, %cst_226 [2] : vector<2x8x16xf32> to vector<2x8xf32>
    %636 = vector.shape_cast %635 : vector<2x8xf32> to vector<2x8x1xf32>
    %637 = vector.broadcast %636 : vector<2x8x1xf32> to vector<2x8x16xf32>
    %638 = arith.subf %634, %637 : vector<2x8x16xf32>
    %639 = math.exp %638 : vector<2x8x16xf32>
    %cst_227 = arith.constant dense<0.000000e+00> : vector<2x8xf32>
    %640 = vector.multi_reduction <add>, %639, %cst_227 [2] : vector<2x8x16xf32> to vector<2x8xf32>
    %641 = vector.shape_cast %640 : vector<2x8xf32> to vector<2x8x1xf32>
    %642 = tpu.reciprocal %641 {approx = true} : vector<2x8x1xf32> -> vector<2x8x1xf32>
    %643 = vector.broadcast %642 : vector<2x8x1xf32> to vector<2x8x16xf32>
    %644 = arith.mulf %639, %643 : vector<2x8x16xf32>
    %645 = arith.truncf %644 : vector<2x8x16xf32> to vector<2x8x16xbf16>
    "tpu.trace_start"() <{level = 10 : i32, message = "bqk,bkd->bqd"}> : () -> ()
    %cst_228 = arith.constant dense<0.000000e+00> : vector<2x8x8xf32>
    %646 = tpu.matmul %645, %633, %cst_228 {dimension_numbers = #tpu.dot_dimension_numbers<[2], [1], [1], [2], [0, 0, 0, 1, 1, 2], [0], [0]>} : vector<2x8x16xbf16>, vector<2x16x8xbf16>, vector<2x8x8xf32> -> vector<2x8x8xf32>
    "tpu.trace_stop"() : () -> ()
    %647 = vector.shape_cast %646 : vector<2x8x8xf32> to vector<16x8xf32>
    %648 = arith.truncf %647 : vector<16x8xf32> to vector<16x8xbf16>
    %649 = vector.extract_strided_slice %572 {offsets = [8, 0], sizes = [8, 32], strides = [1, 1]} : vector<32x32xbf16> to vector<8x32xbf16>
    %cst_229 = arith.constant dense<0.000000e+00> : vector<16x32xf32>
    %650 = tpu.matmul %648, %649, %cst_229 {dimension_numbers = #tpu.dot_dimension_numbers<[1], [0], [0], [1], [0, 0, 1, 1], [], []>} : vector<16x8xbf16>, vector<8x32xbf16>, vector<16x32xf32> -> vector<16x32xf32>
    %651 = arith.addf %624, %650 : vector<16x32xf32>
    %652 = vector.extract_strided_slice %592 {offsets = [0, 16], sizes = [16, 8], strides = [1, 1]} : vector<16x32xf32> to vector<16x8xf32>
    %653 = vector.shape_cast %652 : vector<16x8xf32> to vector<2x8x8xf32>
    %654 = arith.truncf %653 : vector<2x8x8xf32> to vector<2x8x8xbf16>
    %655 = vector.extract_strided_slice %598 {offsets = [0, 16], sizes = [32, 8], strides = [1, 1]} : vector<32x64xf32> to vector<32x8xf32>
    %656 = vector.shape_cast %655 : vector<32x8xf32> to vector<2x16x8xf32>
    %657 = arith.truncf %656 : vector<2x16x8xf32> to vector<2x16x8xbf16>
    %658 = vector.extract_strided_slice %598 {offsets = [0, 48], sizes = [32, 8], strides = [1, 1]} : vector<32x64xf32> to vector<32x8xf32>
    %659 = vector.shape_cast %658 : vector<32x8xf32> to vector<2x16x8xf32>
    %660 = arith.truncf %659 : vector<2x16x8xf32> to vector<2x16x8xbf16>
    "tpu.trace_start"() <{level = 10 : i32, message = "bqd,bkd->bqk"}> : () -> ()
    %cst_230 = arith.constant dense<0.000000e+00> : vector<2x8x16xf32>
    %661 = tpu.matmul %654, %657, %cst_230 {dimension_numbers = #tpu.dot_dimension_numbers<[2], [2], [1], [1], [0, 0, 0, 1, 1, 1], [0], [0]>} : vector<2x8x8xbf16>, vector<2x16x8xbf16>, vector<2x8x16xf32> -> vector<2x8x16xf32>
    "tpu.trace_stop"() : () -> ()
    %cst_231 = arith.constant dense<0xFF800000> : vector<2x8xf32>
    %662 = vector.multi_reduction <maximumf>, %661, %cst_231 [2] : vector<2x8x16xf32> to vector<2x8xf32>
    %663 = vector.shape_cast %662 : vector<2x8xf32> to vector<2x8x1xf32>
    %664 = vector.broadcast %663 : vector<2x8x1xf32> to vector<2x8x16xf32>
    %665 = arith.subf %661, %664 : vector<2x8x16xf32>
    %666 = math.exp %665 : vector<2x8x16xf32>
    %cst_232 = arith.constant dense<0.000000e+00> : vector<2x8xf32>
    %667 = vector.multi_reduction <add>, %666, %cst_232 [2] : vector<2x8x16xf32> to vector<2x8xf32>
    %668 = vector.shape_cast %667 : vector<2x8xf32> to vector<2x8x1xf32>
    %669 = tpu.reciprocal %668 {approx = true} : vector<2x8x1xf32> -> vector<2x8x1xf32>
    %670 = vector.broadcast %669 : vector<2x8x1xf32> to vector<2x8x16xf32>
    %671 = arith.mulf %666, %670 : vector<2x8x16xf32>
    %672 = arith.truncf %671 : vector<2x8x16xf32> to vector<2x8x16xbf16>
    "tpu.trace_start"() <{level = 10 : i32, message = "bqk,bkd->bqd"}> : () -> ()
    %cst_233 = arith.constant dense<0.000000e+00> : vector<2x8x8xf32>
    %673 = tpu.matmul %672, %660, %cst_233 {dimension_numbers = #tpu.dot_dimension_numbers<[2], [1], [1], [2], [0, 0, 0, 1, 1, 2], [0], [0]>} : vector<2x8x16xbf16>, vector<2x16x8xbf16>, vector<2x8x8xf32> -> vector<2x8x8xf32>
    "tpu.trace_stop"() : () -> ()
    %674 = vector.shape_cast %673 : vector<2x8x8xf32> to vector<16x8xf32>
    %675 = arith.truncf %674 : vector<16x8xf32> to vector<16x8xbf16>
    %676 = vector.extract_strided_slice %572 {offsets = [16, 0], sizes = [8, 32], strides = [1, 1]} : vector<32x32xbf16> to vector<8x32xbf16>
    %cst_234 = arith.constant dense<0.000000e+00> : vector<16x32xf32>
    %677 = tpu.matmul %675, %676, %cst_234 {dimension_numbers = #tpu.dot_dimension_numbers<[1], [0], [0], [1], [0, 0, 1, 1], [], []>} : vector<16x8xbf16>, vector<8x32xbf16>, vector<16x32xf32> -> vector<16x32xf32>
    %678 = arith.addf %651, %677 : vector<16x32xf32>
    %679 = vector.extract_strided_slice %592 {offsets = [0, 24], sizes = [16, 8], strides = [1, 1]} : vector<16x32xf32> to vector<16x8xf32>
    %680 = vector.shape_cast %679 : vector<16x8xf32> to vector<2x8x8xf32>
    %681 = arith.truncf %680 : vector<2x8x8xf32> to vector<2x8x8xbf16>
    %682 = vector.extract_strided_slice %598 {offsets = [0, 24], sizes = [32, 8], strides = [1, 1]} : vector<32x64xf32> to vector<32x8xf32>
    %683 = vector.shape_cast %682 : vector<32x8xf32> to vector<2x16x8xf32>
    %684 = arith.truncf %683 : vector<2x16x8xf32> to vector<2x16x8xbf16>
    %685 = vector.extract_strided_slice %598 {offsets = [0, 56], sizes = [32, 8], strides = [1, 1]} : vector<32x64xf32> to vector<32x8xf32>
    %686 = vector.shape_cast %685 : vector<32x8xf32> to vector<2x16x8xf32>
    %687 = arith.truncf %686 : vector<2x16x8xf32> to vector<2x16x8xbf16>
    "tpu.trace_start"() <{level = 10 : i32, message = "bqd,bkd->bqk"}> : () -> ()
    %cst_235 = arith.constant dense<0.000000e+00> : vector<2x8x16xf32>
    %688 = tpu.matmul %681, %684, %cst_235 {dimension_numbers = #tpu.dot_dimension_numbers<[2], [2], [1], [1], [0, 0, 0, 1, 1, 1], [0], [0]>} : vector<2x8x8xbf16>, vector<2x16x8xbf16>, vector<2x8x16xf32> -> vector<2x8x16xf32>
    "tpu.trace_stop"() : () -> ()
    %cst_236 = arith.constant dense<0xFF800000> : vector<2x8xf32>
    %689 = vector.multi_reduction <maximumf>, %688, %cst_236 [2] : vector<2x8x16xf32> to vector<2x8xf32>
    %690 = vector.shape_cast %689 : vector<2x8xf32> to vector<2x8x1xf32>
    %691 = vector.broadcast %690 : vector<2x8x1xf32> to vector<2x8x16xf32>
    %692 = arith.subf %688, %691 : vector<2x8x16xf32>
    %693 = math.exp %692 : vector<2x8x16xf32>
    %cst_237 = arith.constant dense<0.000000e+00> : vector<2x8xf32>
    %694 = vector.multi_reduction <add>, %693, %cst_237 [2] : vector<2x8x16xf32> to vector<2x8xf32>
    %695 = vector.shape_cast %694 : vector<2x8xf32> to vector<2x8x1xf32>
    %696 = tpu.reciprocal %695 {approx = true} : vector<2x8x1xf32> -> vector<2x8x1xf32>
    %697 = vector.broadcast %696 : vector<2x8x1xf32> to vector<2x8x16xf32>
    %698 = arith.mulf %693, %697 : vector<2x8x16xf32>
    %699 = arith.truncf %698 : vector<2x8x16xf32> to vector<2x8x16xbf16>
    "tpu.trace_start"() <{level = 10 : i32, message = "bqk,bkd->bqd"}> : () -> ()
    %cst_238 = arith.constant dense<0.000000e+00> : vector<2x8x8xf32>
    %700 = tpu.matmul %699, %687, %cst_238 {dimension_numbers = #tpu.dot_dimension_numbers<[2], [1], [1], [2], [0, 0, 0, 1, 1, 2], [0], [0]>} : vector<2x8x16xbf16>, vector<2x16x8xbf16>, vector<2x8x8xf32> -> vector<2x8x8xf32>
    "tpu.trace_stop"() : () -> ()
    %701 = vector.shape_cast %700 : vector<2x8x8xf32> to vector<16x8xf32>
    %702 = arith.truncf %701 : vector<16x8xf32> to vector<16x8xbf16>
    %703 = vector.extract_strided_slice %572 {offsets = [24, 0], sizes = [8, 32], strides = [1, 1]} : vector<32x32xbf16> to vector<8x32xbf16>
    %cst_239 = arith.constant dense<0.000000e+00> : vector<16x32xf32>
    %704 = tpu.matmul %702, %703, %cst_239 {dimension_numbers = #tpu.dot_dimension_numbers<[1], [0], [0], [1], [0, 0, 1, 1], [], []>} : vector<16x8xbf16>, vector<8x32xbf16>, vector<16x32xf32> -> vector<16x32xf32>
    %705 = arith.addf %678, %704 : vector<16x32xf32>
    %706 = arith.addf %381, %705 : vector<16x32xf32>
    %707 = vector.broadcast %581 : vector<1x32xf32> to vector<16x32xf32>
    %708 = arith.addf %706, %707 : vector<16x32xf32>
    %cst_240 = arith.constant dense<0.000000e+00> : vector<16xf32>
    %709 = vector.multi_reduction <add>, %708, %cst_240 [1] : vector<16x32xf32> to vector<16xf32>
    %710 = vector.shape_cast %709 : vector<16xf32> to vector<16x1xf32>
    %cst_241 = arith.constant 3.200000e+01 : f32
    %711 = vector.broadcast %cst_241 : f32 to vector<16x1xf32>
    %712 = arith.divf %710, %711 : vector<16x1xf32>
    %713 = vector.broadcast %712 : vector<16x1xf32> to vector<16x32xf32>
    %714 = arith.subf %708, %713 : vector<16x32xf32>
    %715 = arith.mulf %714, %714 : vector<16x32xf32>
    %cst_242 = arith.constant dense<0.000000e+00> : vector<16xf32>
    %716 = vector.multi_reduction <add>, %715, %cst_242 [1] : vector<16x32xf32> to vector<16xf32>
    %717 = vector.shape_cast %716 : vector<16xf32> to vector<16x1xf32>
    %cst_243 = arith.constant 3.200000e+01 : f32
    %718 = vector.broadcast %cst_243 : f32 to vector<16x1xf32>
    %719 = arith.divf %717, %718 : vector<16x1xf32>
    %cst_244 = arith.constant 9.99999974E-6 : f32
    %720 = vector.broadcast %cst_244 : f32 to vector<16x1xf32>
    %721 = arith.addf %719, %720 : vector<16x1xf32>
    %722 = math.rsqrt %721 : vector<16x1xf32>
    %723 = vector.broadcast %722 : vector<16x1xf32> to vector<16x32xf32>
    %724 = arith.mulf %714, %723 : vector<16x32xf32>
    %725 = vector.broadcast %582 : vector<1x32xf32> to vector<16x32xf32>
    %726 = arith.mulf %724, %725 : vector<16x32xf32>
    %727 = vector.broadcast %583 : vector<1x32xf32> to vector<16x32xf32>
    %728 = arith.addf %726, %727 : vector<16x32xf32>
    %729 = arith.truncf %728 : vector<16x32xf32> to vector<16x32xbf16>
    %cst_245 = arith.constant dense<0.000000e+00> : vector<16x32xf32>
    %730 = tpu.matmul %729, %574, %cst_245 {dimension_numbers = #tpu.dot_dimension_numbers<[1], [0], [0], [1], [0, 0, 1, 1], [], []>} : vector<16x32xbf16>, vector<32x32xbf16>, vector<16x32xf32> -> vector<16x32xf32>
    %731 = vector.broadcast %576 : vector<1x32xf32> to vector<16x32xf32>
    %732 = arith.addf %730, %731 : vector<16x32xf32>
    %cst_246 = arith.constant 0.000000e+00 : f32
    %733 = vector.broadcast %cst_246 : f32 to vector<16x32xf32>
    %734 = arith.maximumf %732, %733 : vector<16x32xf32>
    %735 = arith.truncf %734 : vector<16x32xf32> to vector<16x32xbf16>
    %cst_247 = arith.constant dense<0.000000e+00> : vector<16x32xf32>
    %736 = tpu.matmul %735, %578, %cst_247 {dimension_numbers = #tpu.dot_dimension_numbers<[1], [0], [0], [1], [0, 0, 1, 1], [], []>} : vector<16x32xbf16>, vector<32x32xbf16>, vector<16x32xf32> -> vector<16x32xf32>
    %737 = vector.broadcast %584 : vector<1x32xf32> to vector<16x32xf32>
    %738 = arith.addf %736, %737 : vector<16x32xf32>
    %739 = arith.addf %728, %738 : vector<16x32xf32>
    %cst_248 = arith.constant dense<0.000000e+00> : vector<16xf32>
    %740 = vector.multi_reduction <add>, %739, %cst_248 [1] : vector<16x32xf32> to vector<16xf32>
    %741 = vector.shape_cast %740 : vector<16xf32> to vector<16x1xf32>
    %cst_249 = arith.constant 3.200000e+01 : f32
    %742 = vector.broadcast %cst_249 : f32 to vector<16x1xf32>
    %743 = arith.divf %741, %742 : vector<16x1xf32>
    %744 = vector.broadcast %743 : vector<16x1xf32> to vector<16x32xf32>
    %745 = arith.subf %739, %744 : vector<16x32xf32>
    %746 = arith.mulf %745, %745 : vector<16x32xf32>
    %cst_250 = arith.constant dense<0.000000e+00> : vector<16xf32>
    %747 = vector.multi_reduction <add>, %746, %cst_250 [1] : vector<16x32xf32> to vector<16xf32>
    %748 = vector.shape_cast %747 : vector<16xf32> to vector<16x1xf32>
    %cst_251 = arith.constant 3.200000e+01 : f32
    %749 = vector.broadcast %cst_251 : f32 to vector<16x1xf32>
    %750 = arith.divf %748, %749 : vector<16x1xf32>
    %cst_252 = arith.constant 9.99999974E-6 : f32
    %751 = vector.broadcast %cst_252 : f32 to vector<16x1xf32>
    %752 = arith.addf %750, %751 : vector<16x1xf32>
    %753 = math.rsqrt %752 : vector<16x1xf32>
    %754 = vector.broadcast %753 : vector<16x1xf32> to vector<16x32xf32>
    %755 = arith.mulf %745, %754 : vector<16x32xf32>
    %756 = vector.broadcast %585 : vector<1x32xf32> to vector<16x32xf32>
    %757 = arith.mulf %755, %756 : vector<16x32xf32>
    %758 = vector.broadcast %586 : vector<1x32xf32> to vector<16x32xf32>
    %759 = arith.addf %757, %758 : vector<16x32xf32>
    %760 = vector.shape_cast %759 : vector<16x32xf32> to vector<2x8x32xf32>
    %c0_253 = arith.constant 0 : index
    %c0_254 = arith.constant 0 : index
    %c0_255 = arith.constant 0 : index
    %761 = vector.load %arg9[%c0_253, %c0_254, %c0_255] : memref<2x8x32xf32, #tpu.memory_space<vmem>>, vector<2x8x32xf32>
    tpu.vector_store %arg9[%c0_253, %c0_254, %c0_255], %760 {strides = array<i32>} : memref<2x8x32xf32, #tpu.memory_space<vmem>>, vector<2x8x32xf32>,
    return
  }
}

</mosaic_0001>

<bundles_post_ra>
// kernel: tnp_transformer_encoder.1
= control target key start
LH: loop header
LB: loop body
LE: loop exit
PB: predicated region body
PF: predicated region fallthrough
CT: control target
= control target key end

     0   :  { %vm79_vm0 = vcmask 261120   ;;  %s8764_s0 = inlined_call_operand.vmem [shape: f32[2,16,32], index: 0, kind: input, shape index: {}]   ;;  %s8765_s1 = inlined_call_operand.vmem [shape: f32[2,8,32], index: 1, kind: input, shape index: {}]   ;;  %s8766_s2 = inlined_call_operand.vmem [shape: bf16[2,2,32,96], index: 2, kind: input, shape index: {}]   ;;  %s8767_s3 = inlined_call_operand.vmem [shape: bf16[2,2,32,32], index: 3, kind: input, shape index: {}]   ;;  %s8768_s4 = inlined_call_operand.vmem [shape: bf16[2,2,32,32], index: 4, kind: input, shape index: {}]   ;;  %s8769_s5 = inlined_call_operand.vmem [shape: bf16[2,2,32,32], index: 5, kind: input, shape index: {}]   ;;  %s8770_s6 = inlined_call_operand.vmem [shape: f32[2,2,1,96], index: 6, kind: input, shape index: {}]   ;;  %s8771_s7 = inlined_call_operand.vmem [shape: f32[2,2,6,32], index: 7, kind: input, shape index: {}]   ;;  %s8772_s8 = inlined_call_operand.vmem [shape: f32[2,2,1,32], index: 8, kind: input, shape index: {}]   ;;  %s8773_s9 = inlined_call_operand.hbm [shape: f32[2,8,32], index: 9, kind: output, shape index: {}]  }
   0x1   :  { %v7201_v0 = vld [vmem:[%s8766_s2] sm:$0xff]   ;;  %v7202_v1 = vld [vmem:[%s8766_s2 + $0x8] sm:$0xff]   ;;  %v36_v4 = vld [vmem:[%s8764_s0 + $0x10] sm:$0xff] }
   0x2   :  { %6561 = vmatprep.subr.bf16.mxu0 %v7201_v0  ;;  %v34_v2 = vld [vmem:[%s8764_s0] sm:$0xff]  ;;  %v35_v3 = vld [vmem:[%s8764_s0 + $0x8] sm:$0xff]  ;;  %v37_v6 = vld [vmem:[%s8764_s0 + $0x18] sm:$0xff] }
   0x3   :  { %6562 = vmatpush3.bf16.msra.mxu0 %v7201_v0  ;;  %v59_v5 = vpack.c.bf16 %v35_v3, %v34_v2  ;;  %v60_v7 = vpack.c.bf16 %v37_v6, %v36_v4 }
   0x4   :  { %6563 = vmatprep.subr.bf16.mxu0 %v7202_v1 }
   0x5   :  { %6565 = vmatprep.mubr.msk.bf16.mxu0 %vm79_vm0, %v59_v5 }
   0x7   :  { %6564 = vmatpush3.bf16.msra.mxu0 %v7202_v1 }
   0xa   :  { %6566 = vmatmul.mubr.msk.bf16.vlgmr.msra.gmra.mrb[0].mxu0 %vm79_vm0, %v60_v7 }
   0xb   :  { %14 = vsyncpa [#allocation3], 0  ;;  %v7494_v8 = vmov 0.0   ;;  %v6144_v10 = vld [vmem:[%s8770_s6] ss:$0 sm:$0xff]  ;;  %vm7495_vm1 = vmmov 0  }
   0xc   :  { %6575 = vmatprep.subr.bf16.mxu0 %v7494_v8  ;;  %6569 = vmatprep.subr.bf16.mxu1 %v7494_v8  ;;  %s7496_s23 = smov 96   ;;  %vm140_vm2 = vcmask 64512   ;;  %vm238_vm3 = vcmask 130048   ;;  %s7497_s24 = smov 64   ;;  %vm631_vm4 = vcmask 1043456  }
   0xd   :  { %6577 = vmatprep.mubr.msk.bf16.mxu0 %vm7495_vm1, %v7494_v8  ;;  %6571 = vmatprep.mubr.msk.bf16.mxu1 %vm7495_vm1, %v7494_v8  ;;  %s7498_s25 = smov 88   ;;  %s7499_s26 = smov 120  }
   0xe   :  { %s7500_s27 = smov 80   ;;  %s7501_s28 = smov 112  }
   0xf   :  { %s7502_s29 = smov 56   ;;  %s7503_s30 = smov 48  }
  0x10   :  { %s7504_s14 = smov 72   ;;  %s7505_s15 = smov 104  }
  0x11   :  { %s7506_s18 = smov 40  }
  0xdd   :  { %v6567_v9 = vpop.f32.mrb[0].mxu0 }
  0xde   :  { %v120_v11 = vpop.f32.mrb[1].mxu0  ;;  %v129_v13 = vadd.f32 %v6567_v9, %v6144_v10 }
  0xdf   :  { %v6568_v12 = vpop.f32.mrb[2].mxu0  ;;  %v121_v16 = vadd.f32 %v6144_v10, %v120_v11 }
  0xe0   :  { %v132_v14 = vadd.f32 %v6568_v12, %v6144_v10  ;;  %v123_v15 = vpop.f32.mrb[3].mxu0 }
  0xe1   :  { %v124_v17 = vadd.f32 %v6144_v10, %v123_v15 }
  0xe2   :  { %v7589_v18 = vpack.c.bf16 %v132_v14, %v129_v13 }
  0xe3   :  { %v7591_v19 = vpack.c.bf16 %v124_v17, %v121_v16 }
  0xe4   :  { %189 = vrot.lane.b32.xlu0 %v7589_v18, %s7496_s23 }
  0xe8   :  { %138 = vrot.lane.b32.xlu0 %v7591_v19, %s7496_s23 }
 0x156   :  { %v190_v20 = vpop.permute.xlu0 %189 }
 0x157   :  { %v195_v21 = vsel %vm140_vm2, %v190_v20, 0 }
 0x158   :  { %6576 = vmatpush3.bf16.xpose.msra.mxu0 %v195_v21 }
 0x159   :  { %6587 = vmatprep.subr.bf16.mxu0 %v7494_v8 }
 0x15a   :  { %v139_v22 = vpop.permute.xlu0 %138 }
 0x15b   :  { %v145_v23 = vsel %vm140_vm2, %v139_v22, 0 }
 0x15c   :  { %6570 = vmatpush3.bf16.xpose.msra.mxu1 %v145_v23 }
 0x15d   :  { %6581 = vmatprep.subr.bf16.mxu1 %v7494_v8 }
 0x15f   :  { %6578 = vmatmul.mubr.msk.bf16.vlgmr.msra.gmra.mrb[4].mxu0 %vm140_vm2, %v7589_v18 }
 0x160   :  { %6589 = vmatprep.mubr.msk.bf16.mxu0 %vm7495_vm1, %v7494_v8 }
 0x163   :  { %6572 = vmatmul.mubr.msk.bf16.vlgmr.msra.gmra.mrb[0].mxu1 %vm140_vm2, %v7591_v19 }
 0x164   :  { %6583 = vmatprep.mubr.msk.bf16.mxu1 %vm7495_vm1, %v7494_v8 }
 0x232   :  { %v231_v24 = vpop.f32.mrb[4].mxu0 }
 0x233   :  { %v6579_v25 = vpop.f32.mrb[5].mxu0  ;;  %v245_v26 = vsel %vm238_vm3, %v231_v24, -inf }
 0x234   :  { %246 = vmax.xlane.f32.xlu1 %v245_v26  ;;  %v234_v27 = vpop.f32.mrb[6].mxu0 }
 0x235   :  { %v6580_v28 = vpop.f32.mrb[7].mxu0  ;;  %v248_v31 = vsel %vm238_vm3, %v234_v27, -inf }
 0x236   :  { %v181_v29 = vpop.f32.mrb[0].mxu1 }
 0x237   :  { %v6573_v30 = vpop.f32.mrb[1].mxu1  ;;  %v239_v46 = vsel %vm238_vm3, %v181_v29, -inf }
 0x238   :  { %249 = vmax.xlane.f32.xlu1 %v248_v31  ;;  %v184_v32 = vpop.f32.mrb[2].mxu1 }
 0x239   :  { %v6574_v33 = vpop.f32.mrb[3].mxu1  ;;  %v242_v45 = vsel %vm238_vm3, %v184_v32, -inf }
 0x249   :  { %332 = vrot.lane.b32.xlu1 %v7589_v18, %s7497_s24 }
 0x2c1   :  { %v247_v34 = vpop.xlane.xlu1 %246 }
 0x2c2   :  { %v253_v35 = vsub.f32 %v231_v24, %v247_v34 }
 0x2c4   :  { %v259_v36 = vmul.f32 1.442695, %v253_v35 }
 0x2c5   :  { %v250_v37 = vpop.xlane.xlu1 %249 }
 0x2c6   :  { %7225 = vpow2.f32 %v259_v36  ;;  %v254_v38 = vsub.f32 %v234_v27, %v250_v37 }
 0x2c8   :  { %v261_v39 = vmul.f32 1.442695, %v254_v38 }
 0x2c9   :  { %v333_v40 = vpop.permute.xlu1 %332 }
 0x2ca   :  { %7227 = vpow2.f32 %v261_v39  ;;  %6588 = vmatpush3.bf16.msra.mxu0 %v333_v40 }
 0x2cb   :  { %6599 = vmatprep.subr.bf16.mxu0 %v7494_v8 }
 0x2d0   :  { %v7226_v41 = vpop.eup %7225 }
 0x2d1   :  { %v269_v42 = vsel %vm238_vm3, %v7226_v41, 0.0 }
 0x2d2   :  { %270 = vadd.xlane.f32.xlu0 %v269_v42 }
 0x2d4   :  { %v7228_v43 = vpop.eup %7227 }
 0x2d5   :  { %v272_v44 = vsel %vm238_vm3, %v7228_v43, 0.0 }
 0x2d6   :  { %273 = vadd.xlane.f32.xlu1 %v272_v44  ;;  %243 = vmax.xlane.f32.xlu0 %v242_v45 }
 0x2e7   :  { %434 = vrot.lane.b32.xlu1 %v7589_v18, %s7498_s25 }
 0x2eb   :  { %432 = vrot.lane.b32.xlu1 %v7589_v18, %s7499_s26 }
 0x30f   :  { %240 = vmax.xlane.f32.xlu1 %v239_v46 }
 0x320   :  { %381 = vrot.lane.b32.xlu1 %v7591_v19, %s7499_s26 }
 0x35f   :  { %v271_v47 = vpop.xlane.xlu0 %270 }
 0x360   :  { %7229 = vrcp.f32 %v271_v47 }
 0x363   :  { %v274_v48 = vpop.xlane.xlu1 %273  ;;  %v244_v62 = vpop.xlane.xlu0 %243 }
 0x364   :  { %7231 = vrcp.f32 %v274_v48  ;;  %v252_v63 = vsub.f32 %v184_v32, %v244_v62 }
 0x366   :  { %v257_v0 = vmul.f32 1.442695, %v252_v63 }
 0x367   :  { %v435_v53 = vpop.permute.xlu1 %434 }
 0x368   :  { %v440_v55 = vsel %vm140_vm2, %v435_v53, 0 }
 0x36a   :  { %v7230_v49 = vpop.eup %7229 }
 0x36b   :  { %v281_v51 = vmul.f32 %v7230_v49, %v7226_v41  ;;  %v433_v56 = vpop.permute.xlu1 %432 }
 0x36e   :  { %v7232_v50 = vpop.eup %7231 }
 0x36f   :  { %v282_v52 = vmul.f32 %v7232_v50, %v7228_v43 }
 0x371   :  { %v284_v54 = vpack.c.bf16 %v282_v52, %v281_v51 }
 0x373   :  { %6590 = vmatmul.mubr.msk.bf16.vlgmr.msra.gmra.mrb[8].mxu0 %vm238_vm3, %v284_v54 }
 0x374   :  { %6600 = vmatpush3.bf16.xpose.msra.mxu0 %v440_v55  ;;  %6601 = vmatprep.mubr.msk.bf16.mxu0 %vm7495_vm1, %v7494_v8 }
 0x375   :  { %6611 = vmatprep.subr.bf16.mxu0 %v7494_v8 }
 0x37b   :  { %6602 = vmatmul.mubr.msk.bf16.vlgmr.msra.gmra.mrb[12].mxu0 %vm140_vm2, %v433_v56 }
 0x37c   :  { %6613 = vmatprep.mubr.msk.bf16.mxu0 %vm7495_vm1, %v7494_v8 }
 0x39c   :  { %v241_v57 = vpop.xlane.xlu1 %240 }
 0x39d   :  { %v251_v58 = vsub.f32 %v181_v29, %v241_v57 }
 0x39f   :  { %v255_v59 = vmul.f32 1.442695, %v251_v58 }
 0x3a0   :  { %v382_v27 = vpop.permute.xlu1 %381 }
 0x3a1   :  { %7233 = vpow2.f32 %v255_v59 }
 0x3a2   :  { %7235 = vpow2.f32 %v257_v0 }
 0x3ab   :  { %v7234_v60 = vpop.eup %7233 }
 0x3ac   :  { %v263_v61 = vsel %vm238_vm3, %v7234_v60, 0.0  ;;  %v7236_v1 = vpop.eup %7235 }
 0x3ad   :  { %264 = vadd.xlane.f32.xlu0 %v263_v61  ;;  %v266_v2 = vsel %vm238_vm3, %v7236_v1, 0.0 }
 0x3c3   :  { %285 = vrot.lane.b32.xlu0 %v7591_v19, %s7497_s24 }
 0x3e2   :  { %267 = vadd.xlane.f32.xlu0 %v266_v2 }
 0x3f8   :  { %383 = vrot.lane.b32.xlu0 %v7591_v19, %s7498_s25 }
 0x43a   :  { %v265_v3 = vpop.xlane.xlu0 %264 }
 0x43b   :  { %7237 = vrcp.f32 %v265_v3 }
 0x43e   :  { %v286_v4 = vpop.permute.xlu0 %285 }
 0x43f   :  { %6582 = vmatpush3.bf16.msra.mxu1 %v286_v4 }
 0x440   :  { %6593 = vmatprep.subr.bf16.mxu1 %v7494_v8 }
 0x445   :  { %v7238_v20 = vpop.eup %7237 }
 0x446   :  { %v7639_v5 = vpop.f32.mrb[8].mxu0  ;;  %v279_v22 = vmul.f32 %v7238_v20, %v7234_v60 }
 0x447   :  { %v6591_v6 = vpop.f32.mrb[9].mxu0 }
 0x448   :  { %v7641_v7 = vpop.f32.mrb[10].mxu0 }
 0x449   :  { %v380_v9 = vpack.c.bf16 %v7641_v7, %v7639_v5  ;;  %v6592_v10 = vpop.f32.mrb[11].mxu0 }
 0x44e   :  { %v476_v11 = vpop.f32.mrb[12].mxu0 }
 0x44f   :  { %v6603_v12 = vpop.f32.mrb[13].mxu0  ;;  %v489_v13 = vsel %vm238_vm3, %v476_v11, -inf }
 0x450   :  { %v479_v14 = vpop.f32.mrb[14].mxu0  ;;  %490 = vmax.xlane.f32.xlu0 %v489_v13 }
 0x451   :  { %v6604_v15 = vpop.f32.mrb[15].mxu0  ;;  %v492_v16 = vsel %vm238_vm3, %v479_v14, -inf }
 0x452   :  { %493 = vmax.xlane.f32.xlu1 %v492_v16 }
 0x463   :  { %744 = vrot.lane.b32.xlu1 %v7591_v19, %s7500_s27 }
 0x467   :  { %793 = vrot.lane.b32.xlu1 %v7589_v18, %s7501_s28 }
 0x46f   :  { %v268_v17 = vpop.xlane.xlu0 %267 }
 0x470   :  { %7239 = vrcp.f32 %v268_v17 }
 0x473   :  { %v384_v24 = vpop.permute.xlu0 %383 }
 0x474   :  { %v389_v26 = vsel %vm140_vm2, %v384_v24, 0 }
 0x47a   :  { %v7240_v21 = vpop.eup %7239 }
 0x47b   :  { %v280_v23 = vmul.f32 %v7240_v21, %v7236_v1 }
 0x47d   :  { %v283_v25 = vpack.c.bf16 %v280_v23, %v279_v22 }
 0x47f   :  { %6584 = vmatmul.mubr.msk.bf16.vlgmr.msra.gmra.mrb[4].mxu1 %vm238_vm3, %v283_v25 }
 0x480   :  { %6594 = vmatpush3.bf16.xpose.msra.mxu1 %v389_v26  ;;  %6595 = vmatprep.mubr.msk.bf16.mxu1 %vm7495_vm1, %v7494_v8 }
 0x481   :  { %6605 = vmatprep.subr.bf16.mxu1 %v7494_v8 }
 0x487   :  { %6596 = vmatmul.mubr.msk.bf16.vlgmr.msra.gmra.mrb[8].mxu1 %vm140_vm2, %v382_v27 }
 0x488   :  { %6607 = vmatprep.mubr.msk.bf16.mxu1 %vm7495_vm1, %v7494_v8 }
 0x4dd   :  { %v491_v28 = vpop.xlane.xlu0 %490 }
 0x4de   :  { %v497_v29 = vsub.f32 %v476_v11, %v491_v28 }
 0x4df   :  { %v494_v30 = vpop.xlane.xlu1 %493 }
 0x4e0   :  { %v503_v31 = vmul.f32 1.442695, %v497_v29  ;;  %v498_v32 = vsub.f32 %v479_v14, %v494_v30 }
 0x4e2   :  { %7241 = vpow2.f32 %v503_v31  ;;  %v505_v33 = vmul.f32 1.442695, %v498_v32 }
 0x4e3   :  { %v745_v56 = vpop.permute.xlu1 %744 }
 0x4e4   :  { %7243 = vpow2.f32 %v505_v33  ;;  %v750_v59 = vsel %vm140_vm2, %v745_v56, 0 }
 0x4e7   :  { %v794_v62 = vpop.permute.xlu1 %793 }
 0x4ec   :  { %v7242_v34 = vpop.eup %7241 }
 0x4ed   :  { %v513_v35 = vsel %vm238_vm3, %v7242_v34, 0.0 }
 0x4ee   :  { %v7244_v36 = vpop.eup %7243  ;;  %514 = vadd.xlane.f32.xlu0 %v513_v35 }
 0x4ef   :  { %v516_v37 = vsel %vm238_vm3, %v7244_v36, 0.0 }
 0x4f2   :  { %517 = vadd.xlane.f32.xlu0 %v516_v37 }
 0x508   :  { %576 = vrot.lane.b32.xlu0 %v7589_v18, %s7502_s29 }
 0x50c   :  { %742 = vrot.lane.b32.xlu0 %v7591_v19, %s7501_s28 }
 0x510   :  { %795 = vrot.lane.b32.xlu0 %v7589_v18, %s7500_s27 }
 0x552   :  { %v7667_v38 = vpop.f32.mrb[4].mxu1 }
 0x553   :  { %v6585_v39 = vpop.f32.mrb[5].mxu1 }
 0x554   :  { %v7669_v40 = vpop.f32.mrb[6].mxu1 }
 0x555   :  { %v379_v41 = vpack.c.bf16 %v7669_v40, %v7667_v38  ;;  %v6586_v42 = vpop.f32.mrb[7].mxu1 }
 0x55a   :  { %v425_v43 = vpop.f32.mrb[8].mxu1 }
 0x55b   :  { %v6597_v44 = vpop.f32.mrb[9].mxu1  ;;  %v483_v45 = vsel %vm238_vm3, %v425_v43, -inf }
 0x55c   :  { %v428_v46 = vpop.f32.mrb[10].mxu1  ;;  %484 = vmax.xlane.f32.xlu0 %v483_v45  ;;  %v45_v45 = vld [vmem:[%s8767_s3] sm:$0xf] }
 0x55d   :  { %v6598_v47 = vpop.f32.mrb[11].mxu1  ;;  %v486_v48 = vsel %vm238_vm3, %v428_v46, -inf }
 0x55e   :  { %487 = vmax.xlane.f32.xlu1 %v486_v48 }
 0x56f   :  { %529 = vrot.lane.b32.xlu1 %v7591_v19, %s7502_s29 }
 0x57b   :  { %v515_v49 = vpop.xlane.xlu0 %514 }
 0x57c   :  { %7245 = vrcp.f32 %v515_v49 }
 0x57f   :  { %v518_v50 = vpop.xlane.xlu0 %517 }
 0x580   :  { %7247 = vrcp.f32 %v518_v50 }
 0x583   :  { %v577_v51 = vpop.permute.xlu0 %576 }
 0x584   :  { %6612 = vmatpush3.bf16.msra.mxu0 %v577_v51 }
 0x585   :  { %6629 = vmatprep.subr.bf16.mxu0 %v7494_v8 }
 0x586   :  { %v7246_v52 = vpop.eup %7245 }
 0x587   :  { %v525_v54 = vmul.f32 %v7246_v52, %v7242_v34  ;;  %v743_v58 = vpop.permute.xlu0 %742 }
 0x58a   :  { %v7248_v53 = vpop.eup %7247 }
 0x58b   :  { %v526_v55 = vmul.f32 %v7248_v53, %v7244_v36  ;;  %v796_v60 = vpop.permute.xlu0 %795 }
 0x58c   :  { %v801_v61 = vsel %vm140_vm2, %v796_v60, 0 }
 0x58d   :  { %v528_v57 = vpack.c.bf16 %v526_v55, %v525_v54 }
 0x58f   :  { %6614 = vmatmul.mubr.msk.bf16.vlgmr.msra.gmra.mrb[16].mxu0 %vm238_vm3, %v528_v57 }
 0x590   :  { %6630 = vmatpush3.bf16.xpose.msra.mxu0 %v750_v59  ;;  %6631 = vmatprep.mubr.msk.bf16.mxu0 %vm7495_vm1, %v7494_v8 }
 0x591   :  { %6635 = vmatprep.subr.bf16.mxu0 %v7494_v8 }
 0x597   :  { %6632 = vmatmul.mubr.msk.bf16.vlgmr.msra.gmra.mrb[20].mxu0 %vm140_vm2, %v743_v58 }
 0x598   :  { %6636 = vmatpush3.bf16.xpose.msra.mxu0 %v801_v61  ;;  %6637 = vmatprep.mubr.msk.bf16.mxu0 %vm7495_vm1, %v7494_v8 }
 0x599   :  { %6647 = vmatprep.subr.bf16.mxu0 %v7494_v8 }
 0x59f   :  { %6638 = vmatmul.mubr.msk.bf16.vlgmr.msra.gmra.mrb[24].mxu0 %vm140_vm2, %v794_v62 }
 0x5a0   :  { %6649 = vmatprep.mubr.msk.bf16.mxu0 %vm7495_vm1, %v7494_v8 }
 0x5e9   :  { %v485_v63 = vpop.xlane.xlu0 %484 }
 0x5ea   :  { %v495_v0 = vsub.f32 %v425_v43, %v485_v63  ;;  %v46_v43 = vld [vmem:[%s8767_s3 + $0x4] sm:$0xf] }
 0x5eb   :  { %v488_v1 = vpop.xlane.xlu1 %487  ;;  %v633_v44 = vsel %vm631_vm4, %v46_v43, 0 }
 0x5ec   :  { %v499_v2 = vmul.f32 1.442695, %v495_v0  ;;  %v496_v3 = vsub.f32 %v428_v46, %v488_v1 }
 0x5ee   :  { %7249 = vpow2.f32 %v499_v2  ;;  %v501_v4 = vmul.f32 1.442695, %v496_v3 }
 0x5ef   :  { %v530_v6 = vpop.permute.xlu1 %529 }
 0x5f0   :  { %7251 = vpow2.f32 %v501_v4  ;;  %6606 = vmatpush3.bf16.msra.mxu1 %v530_v6 }
 0x5f1   :  { %7177 = vmatprep.subr.msk.bf16.mxu1 %vm631_vm4, %v46_v43 }
 0x5f8   :  { %v7250_v10 = vpop.eup %7249 }
 0x5f9   :  { %v507_v11 = vsel %vm238_vm3, %v7250_v10, 0.0 }
 0x5fa   :  { %v7252_v12 = vpop.eup %7251  ;;  %508 = vadd.xlane.f32.xlu0 %v507_v11  ;;  %v691_v11 = vsel %vm631_vm4, %v45_v45, 0 }
 0x5fb   :  { %v510_v13 = vsel %vm238_vm3, %v7252_v12, 0.0 }
 0x5fe   :  { %511 = vadd.xlane.f32.xlu0 %v510_v13 }
 0x662   :  { %v7693_v14 = vpop.f32.mrb[16].mxu0 }
 0x663   :  { %v6615_v15 = vpop.f32.mrb[17].mxu0 }
 0x664   :  { %v7695_v16 = vpop.f32.mrb[18].mxu0 }
 0x665   :  { %v624_v17 = vpack.c.bf16 %v7695_v16, %v7693_v14  ;;  %v6616_v20 = vpop.f32.mrb[19].mxu0 }
 0x66a   :  { %v786_v21 = vpop.f32.mrb[20].mxu0 }
 0x66b   :  { %v6633_v22 = vpop.f32.mrb[21].mxu0  ;;  %v844_v23 = vsel %vm238_vm3, %v786_v21, -inf }
 0x66c   :  { %v789_v24 = vpop.f32.mrb[22].mxu0  ;;  %845 = vmax.xlane.f32.xlu0 %v844_v23 }
 0x66d   :  { %v6634_v25 = vpop.f32.mrb[23].mxu0  ;;  %v847_v26 = vsel %vm238_vm3, %v789_v24, -inf }
 0x670   :  { %848 = vmax.xlane.f32.xlu0 %v847_v26 }
 0x672   :  { %v837_v27 = vpop.f32.mrb[24].mxu0 }
 0x673   :  { %v6639_v28 = vpop.f32.mrb[25].mxu0  ;;  %v850_v29 = vsel %vm238_vm3, %v837_v27, -inf }
 0x674   :  { %v840_v30 = vpop.f32.mrb[26].mxu0  ;;  %851 = vmax.xlane.f32.xlu0 %v850_v29  ;;  %v47_v28 = vld [vmem:[%s8767_s3 + $0x8] sm:$0xf] }
 0x675   :  { %v6640_v31 = vpop.f32.mrb[27].mxu0  ;;  %v853_v32 = vsel %vm238_vm3, %v840_v30, -inf  ;;  %v993_v29 = vsel %vm631_vm4, %v47_v28, 0 }
 0x678   :  { %854 = vmax.xlane.f32.xlu0 %v853_v32 }
 0x687   :  { %v509_v33 = vpop.xlane.xlu0 %508 }
 0x688   :  { %7253 = vrcp.f32 %v509_v33 }
 0x68b   :  { %v512_v34 = vpop.xlane.xlu0 %511 }
 0x68c   :  { %7255 = vrcp.f32 %v512_v34 }
 0x68e   :  { %890 = vrot.lane.b32.xlu0 %v7591_v19, %s7503_s30 }
 0x692   :  { %v7254_v35 = vpop.eup %7253 }
 0x693   :  { %v523_v37 = vmul.f32 %v7254_v35, %v7250_v10 }
 0x696   :  { %v7256_v36 = vpop.eup %7255 }
 0x697   :  { %v524_v39 = vmul.f32 %v7256_v36, %v7252_v12 }
 0x699   :  { %v527_v42 = vpack.c.bf16 %v524_v39, %v523_v37 }
 0x69b   :  { %6608 = vmatmul.mubr.msk.bf16.vlgmr.msra.gmra.mrb[12].mxu1 %vm238_vm3, %v527_v42 }
 0x69c   :  { %6618 = vmatpush3.bf16.msra.mxu1 %v633_v44 }
 0x69d   :  { %7178 = vmatprep.subr.msk.bf16.mxu1 %vm631_vm4, %v45_v45 }
 0x6f9   :  { %v846_v46 = vpop.xlane.xlu0 %845 }
 0x6fa   :  { %v856_v47 = vsub.f32 %v786_v21, %v846_v46 }
 0x6fc   :  { %v860_v48 = vmul.f32 1.442695, %v856_v47 }
 0x6fd   :  { %v849_v49 = vpop.xlane.xlu0 %848 }
 0x6fe   :  { %7257 = vpow2.f32 %v860_v48  ;;  %v857_v50 = vsub.f32 %v789_v24, %v849_v49 }
 0x700   :  { %v862_v51 = vmul.f32 1.442695, %v857_v50 }
 0x701   :  { %v852_v52 = vpop.xlane.xlu0 %851 }
 0x702   :  { %7259 = vpow2.f32 %v862_v51  ;;  %v858_v53 = vsub.f32 %v837_v27, %v852_v52 }
 0x704   :  { %v864_v54 = vmul.f32 1.442695, %v858_v53 }
 0x705   :  { %v855_v55 = vpop.xlane.xlu0 %854 }
 0x706   :  { %7261 = vpow2.f32 %v864_v54  ;;  %v859_v56 = vsub.f32 %v840_v30, %v855_v55 }
 0x708   :  { %v7258_v57 = vpop.eup %7257  ;;  %v866_v58 = vmul.f32 1.442695, %v859_v56 }
 0x709   :  { %v868_v59 = vsel %vm238_vm3, %v7258_v57, 0.0  ;;  %v891_v12 = vpop.permute.xlu0 %890 }
 0x70a   :  { %7263 = vpow2.f32 %v866_v58  ;;  %869 = vadd.xlane.f32.xlu1 %v868_v59 }
 0x70c   :  { %v7260_v60 = vpop.eup %7259 }
 0x70d   :  { %v871_v61 = vsel %vm238_vm3, %v7260_v60, 0.0 }
 0x70e   :  { %872 = vadd.xlane.f32.xlu0 %v871_v61 }
 0x710   :  { %v7262_v62 = vpop.eup %7261 }
 0x711   :  { %v874_v63 = vsel %vm238_vm3, %v7262_v62, 0.0 }
 0x712   :  { %875 = vadd.xlane.f32.xlu0 %v874_v63 }
 0x714   :  { %v7264_v0 = vpop.eup %7263 }
 0x715   :  { %v877_v1 = vsel %vm238_vm3, %v7264_v0, 0.0 }
 0x716   :  { %878 = vadd.xlane.f32.xlu0 %v877_v1 }
 0x71b   :  { %1050 = vrot.lane.b32.xlu1 %v7591_v19, %s7504_s14 }
 0x72c   :  { %937 = vrot.lane.b32.xlu0 %v7589_v18, %s7503_s30 }
 0x730   :  { %1101 = vrot.lane.b32.xlu0 %v7589_v18, %s7504_s14 }
 0x734   :  { %1048 = vrot.lane.b32.xlu0 %v7591_v19, %s7505_s15 }
 0x738   :  { %1099 = vrot.lane.b32.xlu0 %v7589_v18, %s7505_s15 }
 0x76e   :  { %v569_v2 = vpop.f32.mrb[12].mxu1 }
 0x76f   :  { %v6609_v3 = vpop.f32.mrb[13].mxu1 }
 0x770   :  { %v572_v4 = vpop.f32.mrb[14].mxu1 }
 0x771   :  { %v623_v6 = vpack.c.bf16 %v572_v4, %v569_v2  ;;  %v6610_v10 = vpop.f32.mrb[15].mxu1 }
 0x773   :  { %6619 = vmatprep.mubr.msk.bf16.mxu1 %vm140_vm2, %v623_v6 }
 0x774   :  { %6620 = vmatmul.mubr.msk.bf16.vlgmr.msra.gmra.mrb[16].mxu1 %vm140_vm2, %v624_v17 }
 0x775   :  { %6625 = vmatprep.mubr.msk.bf16.mxu1 %vm140_vm2, %v379_v41  ;;  %6624 = vmatpush3.bf16.msra.mxu1 %v691_v11 }
 0x776   :  { %6641 = vmatprep.subr.bf16.mxu1 %v7494_v8 }
 0x780   :  { %6626 = vmatmul.mubr.msk.bf16.vlgmr.msra.gmra.mrb[16].mxu1 %vm140_vm2, %v380_v9 }
 0x781   :  { %6642 = vmatpush3.bf16.msra.mxu1 %v891_v12  ;;  %6643 = vmatprep.mubr.msk.bf16.mxu1 %vm7495_vm1, %v7494_v8 }
 0x782   :  { %7179 = vmatprep.subr.msk.bf16.mxu1 %vm631_vm4, %v47_v28 }
 0x797   :  { %v870_v13 = vpop.xlane.xlu1 %869 }
 0x798   :  { %7265 = vrcp.f32 %v870_v13 }
 0x79b   :  { %v873_v14 = vpop.xlane.xlu0 %872  ;;  %v1051_v23 = vpop.permute.xlu1 %1050 }
 0x79c   :  { %7267 = vrcp.f32 %v873_v14  ;;  %v1056_v25 = vsel %vm140_vm2, %v1051_v23, 0 }
 0x79f   :  { %v876_v38 = vpop.xlane.xlu0 %875 }
 0x7a0   :  { %7269 = vrcp.f32 %v876_v38 }
 0x7a2   :  { %v7266_v41 = vpop.eup %7265 }
 0x7a3   :  { %v879_v40 = vpop.xlane.xlu0 %878  ;;  %v884_v16 = vmul.f32 %v7266_v41, %v7258_v57 }
 0x7a4   :  { %7271 = vrcp.f32 %v879_v40 }
 0x7a6   :  { %v7268_v15 = vpop.eup %7267 }
 0x7a7   :  { %v885_v17 = vmul.f32 %v7268_v15, %v7260_v60  ;;  %v938_v20 = vpop.permute.xlu0 %937 }
 0x7a8   :  { %6648 = vmatpush3.bf16.msra.mxu0 %v938_v20 }
 0x7a9   :  { %v888_v5 = vpack.c.bf16 %v885_v17, %v884_v16  ;;  %6659 = vmatprep.subr.bf16.mxu0 %v7494_v8 }
 0x7aa   :  { %v7270_v7 = vpop.eup %7269 }
 0x7ab   :  { %6644 = vmatmul.mubr.msk.bf16.vlgmr.msra.gmra.mrb[20].mxu1 %vm238_vm3, %v888_v5  ;;  %v886_v21 = vmul.f32 %v7270_v7, %v7262_v62  ;;  %v1102_v26 = vpop.permute.xlu0 %1101 }
 0x7ac   :  { %6654 = vmatpush3.bf16.msra.mxu1 %v993_v29  ;;  %v1107_v43 = vsel %vm140_vm2, %v1102_v26, 0 }
 0x7ad   :  { %6665 = vmatprep.subr.bf16.mxu1 %v7494_v8 }
 0x7ae   :  { %v7272_v9 = vpop.eup %7271 }
 0x7af   :  { %v887_v22 = vmul.f32 %v7272_v9, %v7264_v0  ;;  %v1049_v27 = vpop.permute.xlu0 %1048 }
 0x7b1   :  { %v889_v24 = vpack.c.bf16 %v887_v22, %v886_v21 }
 0x7b3   :  { %6650 = vmatmul.mubr.msk.bf16.vlgmr.msra.gmra.mrb[28].mxu0 %vm238_vm3, %v889_v24  ;;  %v1100_v50 = vpop.permute.xlu0 %1099 }
 0x7b4   :  { %6660 = vmatpush3.bf16.xpose.msra.mxu0 %v1056_v25  ;;  %6661 = vmatprep.mubr.msk.bf16.mxu0 %vm7495_vm1, %v7494_v8 }
 0x7b5   :  { %6671 = vmatprep.subr.bf16.mxu0 %v7494_v8 }
 0x7bb   :  { %6662 = vmatmul.mubr.msk.bf16.vlgmr.msra.gmra.mrb[32].mxu0 %vm140_vm2, %v1049_v27  ;;  %v48_v27 = vld [vmem:[%s8767_s3 + $0xc] sm:$0xf] }
 0x7bc   :  { %6673 = vmatprep.mubr.msk.bf16.mxu0 %vm7495_vm1, %v7494_v8  ;;  %v1299_v28 = vsel %vm631_vm4, %v48_v27, 0 }
 0x87e   :  { %v930_v30 = vpop.f32.mrb[20].mxu1 }
 0x87f   :  { %v6645_v31 = vpop.f32.mrb[21].mxu1 }
 0x880   :  { %v933_v32 = vpop.f32.mrb[22].mxu1 }
 0x881   :  { %v984_v33 = vpack.c.bf16 %v933_v32, %v930_v30  ;;  %v6646_v34 = vpop.f32.mrb[23].mxu1 }
 0x883   :  { %6655 = vmatprep.mubr.msk.bf16.mxu1 %vm140_vm2, %v984_v33 }
 0x886   :  { %v977_v35 = vpop.f32.mrb[28].mxu0 }
 0x887   :  { %v6651_v36 = vpop.f32.mrb[29].mxu0 }
 0x888   :  { %v980_v37 = vpop.f32.mrb[30].mxu0 }
 0x889   :  { %v985_v39 = vpack.c.bf16 %v980_v37, %v977_v35  ;;  %v6652_v42 = vpop.f32.mrb[31].mxu0 }
 0x88a   :  { %v1358_v42 = vlaneseq }
 0x88b   :  { %6656 = vmatmul.mubr.msk.bf16.vlgmr.msra.gmra.mrb[16].mxu1 %vm140_vm2, %v985_v39 }
 0x88c   :  { %6666 = vmatpush3.bf16.xpose.msra.mxu1 %v1107_v43  ;;  %6667 = vmatprep.mubr.msk.bf16.mxu1 %vm7495_vm1, %v7494_v8  ;;  %v7795_v43 = vshrl.u32 %v1358_v42, 7 }
 0x88d   :  { %6677 = vmatprep.subr.bf16.mxu1 %v7494_v8 }
 0x88e   :  { %v1092_v44 = vpop.f32.mrb[32].mxu0 }
 0x88f   :  { %v6663_v45 = vpop.f32.mrb[33].mxu0  ;;  %v1150_v46 = vsel %vm238_vm3, %v1092_v44, -inf }
 0x890   :  { %1151 = vmax.xlane.f32.xlu0 %v1150_v46  ;;  %v1095_v47 = vpop.f32.mrb[34].mxu0  ;;  %v7803_v45 = vld [vmem:[%s8771_s7] sm:$0x3f] }
 0x891   :  { %v6664_v48 = vpop.f32.mrb[35].mxu0  ;;  %v1153_v49 = vsel %vm238_vm3, %v1095_v47, -inf }
 0x892   :  { %1154 = vmax.xlane.f32.xlu1 %v1153_v49  ;;  %v7465_v49 = vld [vmem:[%s8764_s0 + $0x10] sm:$0xff] }
 0x893   :  { %6668 = vmatmul.mubr.msk.bf16.vlgmr.msra.gmra.mrb[24].mxu1 %vm140_vm2, %v1100_v50 }
 0x894   :  { %6679 = vmatprep.mubr.msk.bf16.mxu1 %vm7495_vm1, %v7494_v8 }
 0x91d   :  { %v1152_v51 = vpop.xlane.xlu0 %1151 }
 0x91e   :  { %v1162_v52 = vsub.f32 %v1092_v44, %v1152_v51  ;;  %v7798_v44 = vsub.s32 0, %v7795_v43  ;;  %v7466_v51 = vld [vmem:[%s8764_s0] sm:$0xff] }
 0x91f   :  { %v1155_v56 = vpop.xlane.xlu1 %1154 }
 0x920   :  { %v1166_v53 = vmul.f32 1.442695, %v1162_v52  ;;  %v1163_v57 = vsub.f32 %v1095_v47, %v1155_v56  ;;  %v1361_v47 = vrot.slane %v7803_v45, %v7798_v44 }
 0x922   :  { %7273 = vpow2.f32 %v1166_v53  ;;  %v1168_v58 = vmul.f32 1.442695, %v1163_v57  ;;  %v7468_v57 = vld [vmem:[%s8764_s0 + $0x8] sm:$0xff] }
 0x924   :  { %7275 = vpow2.f32 %v1168_v58 }
 0x92c   :  { %v7274_v54 = vpop.eup %7273 }
 0x92d   :  { %v1174_v55 = vsel %vm238_vm3, %v7274_v54, 0.0 }
 0x92e   :  { %1175 = vadd.xlane.f32.xlu1 %v1174_v55  ;;  %v7276_v1 = vpop.eup %7275  ;;  %v7467_v55 = vld [vmem:[%s8764_s0 + $0x18] sm:$0xff] }
 0x92f   :  { %v1177_v2 = vsel %vm238_vm3, %v7276_v1, 0.0 }
 0x966   :  { %v1143_v59 = vpop.f32.mrb[24].mxu1 }
 0x967   :  { %v6669_v60 = vpop.f32.mrb[25].mxu1  ;;  %v1156_v61 = vsel %vm238_vm3, %v1143_v59, -inf }
 0x968   :  { %1157 = vmax.xlane.f32.xlu0 %v1156_v61  ;;  %v1146_v62 = vpop.f32.mrb[26].mxu1 }
 0x969   :  { %v6670_v63 = vpop.f32.mrb[27].mxu1  ;;  %v1159_v0 = vsel %vm238_vm3, %v1146_v62, -inf }
 0x96c   :  { %1160 = vmax.xlane.f32.xlu0 %v1159_v0 }
 0x970   :  { %1178 = vadd.xlane.f32.xlu0 %v1177_v2 }
 0x9bb   :  { %v1176_v15 = vpop.xlane.xlu1 %1175 }
 0x9f5   :  { %v1158_v3 = vpop.xlane.xlu0 %1157 }
 0x9f6   :  { %v1164_v4 = vsub.f32 %v1143_v59, %v1158_v3 }
 0x9f8   :  { %v1170_v6 = vmul.f32 1.442695, %v1164_v4 }
 0x9f9   :  { %v1161_v10 = vpop.xlane.xlu0 %1160 }
 0x9fa   :  { %7277 = vpow2.f32 %v1170_v6  ;;  %v1165_v11 = vsub.f32 %v1146_v62, %v1161_v10 }
 0x9fc   :  { %v1172_v12 = vmul.f32 1.442695, %v1165_v11 }
 0x9fd   :  { %v1179_v41 = vpop.xlane.xlu0 %1178 }
 0x9fe   :  { %7279 = vpow2.f32 %v1172_v12 }
 0x9ff   :  { %7281 = vrcp.f32 %v1179_v41 }
 0xa00   :  { %7283 = vrcp.f32 %v1176_v15 }
 0xa04   :  { %v7278_v13 = vpop.eup %7277 }
 0xa05   :  { %v1180_v14 = vsel %vm238_vm3, %v7278_v13, 0.0 }
 0xa06   :  { %1181 = vadd.xlane.f32.xlu1 %v1180_v14 }
 0xa08   :  { %v7280_v38 = vpop.eup %7279 }
 0xa09   :  { %v1183_v40 = vsel %vm238_vm3, %v7280_v38, 0.0  ;;  %v7282_v16 = vpop.eup %7281 }
 0xa0a   :  { %1184 = vadd.xlane.f32.xlu0 %v1183_v40  ;;  %v7284_v20 = vpop.eup %7283  ;;  %v1191_v5 = vmul.f32 %v7282_v16, %v7276_v1 }
 0xa0b   :  { %v1190_v7 = vmul.f32 %v7284_v20, %v7274_v54 }
 0xa0d   :  { %v1194_v22 = vpack.c.bf16 %v1191_v5, %v1190_v7 }
 0xa17   :  { %1196 = vrot.lane.b32.xlu1 %v7591_v19, %s7506_s18 }
 0xa20   :  { %1243 = vrot.lane.b32.xlu0 %v7589_v18, %s7506_s18 }
 0xa93   :  { %v1182_v17 = vpop.xlane.xlu1 %1181 }
 0xa94   :  { %7285 = vrcp.f32 %v1182_v17 }
 0xa97   :  { %v1197_v9 = vpop.permute.xlu1 %1196  ;;  %v1185_v21 = vpop.xlane.xlu0 %1184 }
 0xa98   :  { %7287 = vrcp.f32 %v1185_v21  ;;  %6672 = vmatpush3.bf16.msra.mxu0 %v1197_v9 }
 0xa9b   :  { %6674 = vmatmul.mubr.msk.bf16.vlgmr.msra.gmra.mrb[36].mxu0 %vm238_vm3, %v1194_v22  ;;  %v1244_v19 = vpop.permute.xlu0 %1243 }
 0xa9c   :  { %6678 = vmatpush3.bf16.msra.mxu1 %v1244_v19  ;;  %v7203_v19 = vld [vmem:[%s8768_s4] sm:$0xff]  }
 0xa9d   :  { %7180 = vmatprep.subr.msk.bf16.mxu1 %vm631_vm4, %v48_v27  ;;  %6689 = vmatprep.subr.bf16.mxu0 %v7203_v19 }
 0xa9e   :  { %v7286_v18 = vpop.eup %7285  ;;  %6690 = vmatpush3.bf16.msra.mxu0 %v7203_v19 }
 0xa9f   :  { %v1192_v24 = vmul.f32 %v7286_v18, %v7278_v13  ;;  %v7204_v18 = vld [vmem:[%s8768_s4 + $0x8] sm:$0xff]  }
 0xaa0   :  { %6691 = vmatprep.subr.bf16.mxu0 %v7204_v18 }
 0xaa2   :  { %v7288_v23 = vpop.eup %7287  ;;  %6692 = vmatpush3.bf16.msra.mxu0 %v7204_v18 }
 0xaa3   :  { %v1193_v25 = vmul.f32 %v7288_v23, %v7280_v38 }
 0xaa5   :  { %v1195_v26 = vpack.c.bf16 %v1193_v25, %v1192_v24 }
 0xaa7   :  { %6680 = vmatmul.mubr.msk.bf16.vlgmr.msra.gmra.mrb[28].mxu1 %vm238_vm3, %v1195_v26 }
 0xaa8   :  { %6684 = vmatpush3.bf16.msra.mxu1 %v1299_v28 }
 0xaa9   :  { %6705 = vmatprep.subr.bf16.mxu1 %v7494_v8 }
 0xb6e   :  { %v1236_v29 = vpop.f32.mrb[36].mxu0 }
 0xb6f   :  { %v6675_v30 = vpop.f32.mrb[37].mxu0 }
 0xb70   :  { %v1239_v31 = vpop.f32.mrb[38].mxu0 }
 0xb71   :  { %v1290_v32 = vpack.c.bf16 %v1239_v31, %v1236_v29  ;;  %v6676_v33 = vpop.f32.mrb[39].mxu0 }
 0xb73   :  { %6685 = vmatprep.mubr.msk.bf16.mxu1 %vm140_vm2, %v1290_v32 }
 0xb7a   :  { %v1283_v34 = vpop.f32.mrb[28].mxu1 }
 0xb7b   :  { %v6681_v35 = vpop.f32.mrb[29].mxu1 }
 0xb7c   :  { %v1286_v36 = vpop.f32.mrb[30].mxu1  ;;  %v7834_v35 = vsub.s32 1, %v7795_v43 }
 0xb7d   :  { %v1291_v37 = vpack.c.bf16 %v1286_v36, %v1283_v34  ;;  %v6682_v39 = vpop.f32.mrb[31].mxu1 }
 0xb7e   :  { %v1422_v36 = vrot.slane %v7803_v45, %v7834_v35 }
 0xb7f   :  { %6686 = vmatmul.mubr.msk.bf16.vlgmr.msra.gmra.mrb[16].mxu1 %vm140_vm2, %v1291_v37  ;;  %v7839_v37 = vsub.s32 2, %v7795_v43 }
 0xb80   :  { %6709 = vmatprep.mubr.msk.bf16.mxu1 %vm7495_vm1, %v7494_v8 }
 0xc52   :  { %v6687_v46 = vpop.f32.mrb[16].mxu1 }
 0xc53   :  { %v1335_v48 = vpop.f32.mrb[17].mxu1  ;;  %v1356_v50 = vadd.f32 %v7465_v49, %v6687_v46  ;;  %v1430_v49 = vrot.slane %v7803_v45, %v7839_v37 }
 0xc54   :  { %v1354_v52 = vadd.f32 %v7466_v51, %v1335_v48  ;;  %v6688_v53 = vpop.f32.mrb[18].mxu1 }
 0xc55   :  { %v1338_v54 = vpop.f32.mrb[19].mxu1  ;;  %v1357_v56 = vadd.f32 %v7467_v55, %v6688_v53  ;;  %v1364_v62 = vadd.f32 %v1361_v47, %v1356_v50 }
 0xc56   :  { %v1355_v58 = vadd.f32 %v7468_v57, %v1338_v54  ;;  %v1362_v59 = vadd.f32 %v1361_v47, %v1354_v52 }
 0xc57   :  { %v1365_v0 = vadd.f32 %v1361_v47, %v1357_v56  ;;  %v1372_v1 = vsel %vm79_vm0, %v1364_v62, 0.0 }
 0xc58   :  { %v1366_v60 = vsel %vm79_vm0, %v1362_v59, 0.0  ;;  %v1363_v61 = vadd.f32 %v1361_v47, %v1355_v58 }
 0xc59   :  { %1367 = vadd.xlane.f32.xlu1 %v1366_v60  ;;  %v1375_v2 = vsel %vm79_vm0, %v1365_v0, 0.0 }
 0xc5a   :  { %v1369_v63 = vsel %vm79_vm0, %v1363_v61, 0.0 }
 0xc5b   :  { %1370 = vadd.xlane.f32.xlu0 %v1369_v63  ;;  %v7205_v63 = vld [vmem:[%s8769_s5] sm:$0xff]  }
 0xc5c   :  { %6697 = vmatprep.subr.bf16.mxu0 %v7205_v63 }
 0xc5d   :  { %1373 = vadd.xlane.f32.xlu1 %v1372_v1  ;;  %v6173_v1 = vld [vmem:[%s8772_s8] ss:$0 sm:$0xff] }
 0xc5f   :  { %1376 = vadd.xlane.f32.xlu0 %v1375_v2 }
 0xce6   :  { %v1368_v3 = vpop.xlane.xlu1 %1367 }
 0xce7   :  { %v1379_v4 = vmul.f32 0.03125, %v1368_v3 }
 0xce8   :  { %v1371_v6 = vpop.xlane.xlu0 %1370 }
 0xce9   :  { %v1383_v10 = vsub.f32 %v1362_v59, %v1379_v4  ;;  %v1380_v11 = vmul.f32 0.03125, %v1371_v6 }
 0xcea   :  { %v1374_v12 = vpop.xlane.xlu1 %1373 }
 0xceb   :  { %v1384_v13 = vsub.f32 %v1363_v61, %v1380_v11  ;;  %v1381_v14 = vmul.f32 0.03125, %v1374_v12  ;;  %v1387_v38 = vmul.f32 %v1383_v10, %v1383_v10 }
 0xcec   :  { %v1377_v40 = vpop.xlane.xlu0 %1376 }
 0xced   :  { %v1385_v41 = vsub.f32 %v1364_v62, %v1381_v14  ;;  %v1382_v15 = vmul.f32 0.03125, %v1377_v40  ;;  %v1391_v16 = vsel %vm79_vm0, %v1387_v38, 0.0  ;;  %v1388_v17 = vmul.f32 %v1384_v13, %v1384_v13 }
 0xcee   :  { %1392 = vadd.xlane.f32.xlu1 %v1391_v16 }
 0xcef   :  { %v1386_v20 = vsub.f32 %v1365_v0, %v1382_v15  ;;  %v1394_v5 = vsel %vm79_vm0, %v1388_v17, 0.0  ;;  %v1389_v7 = vmul.f32 %v1385_v41, %v1385_v41  ;;  %v7206_v0 = vld [vmem:[%s8769_s5 + $0x8] sm:$0xff]   ;;  %v7857_v17 = vsub.s32 3, %v7795_v43 }
 0xcf0   :  { %1395 = vadd.xlane.f32.xlu0 %v1394_v5 }
 0xcf1   :  { %v1397_v9 = vsel %vm79_vm0, %v1389_v7, 0.0  ;;  %v1390_v21 = vmul.f32 %v1386_v20, %v1386_v20 }
 0xcf2   :  { %1398 = vadd.xlane.f32.xlu1 %v1397_v9 }
 0xcf3   :  { %v1400_v22 = vsel %vm79_vm0, %v1390_v21, 0.0 }
 0xcf4   :  { %1401 = vadd.xlane.f32.xlu0 %v1400_v22 }
 0xd7b   :  { %v1393_v23 = vpop.xlane.xlu1 %1392 }
 0xd7c   :  { %v1403_v24 = vmul.f32 0.03125, %v1393_v23 }
 0xd7d   :  { %v1396_v25 = vpop.xlane.xlu0 %1395 }
 0xd7e   :  { %v1407_v26 = vadd.f32 1e-05, %v1403_v24  ;;  %v1404_v27 = vmul.f32 0.03125, %v1396_v25 }
 0xd7f   :  { %v1399_v28 = vpop.xlane.xlu1 %1398 }
 0xd80   :  { %7289 = vrsqrt.f32 %v1407_v26  ;;  %v1408_v29 = vadd.f32 1e-05, %v1404_v27  ;;  %v1405_v30 = vmul.f32 0.03125, %v1399_v28 }
 0xd81   :  { %v1402_v31 = vpop.xlane.xlu0 %1401 }
 0xd82   :  { %7291 = vrsqrt.f32 %v1408_v29  ;;  %v1409_v32 = vadd.f32 1e-05, %v1405_v30  ;;  %v1406_v33 = vmul.f32 0.03125, %v1402_v31 }
 0xd84   :  { %7293 = vrsqrt.f32 %v1409_v32  ;;  %v1410_v34 = vadd.f32 1e-05, %v1406_v33  ;;  %v7207_v32 = vld [vmem:[%s8766_s2 + $0x20] sm:$0xff]   ;;  %v7208_v33 = vld [vmem:[%s8766_s2 + $0x28] sm:$0xff]  }
 0xd85   :  { %6706 = vmatpush3.bf16.msra.mxu1 %v7207_v32 }
 0xd86   :  { %7295 = vrsqrt.f32 %v1410_v34  ;;  %6707 = vmatprep.subr.bf16.mxu1 %v7494_v8 }
 0xd89   :  { %6708 = vmatpush3.bf16.msra.mxu1 %v7208_v33 }
 0xd8a   :  { %v7290_v39 = vpop.eup %7289  ;;  %6721 = vmatprep.subr.bf16.mxu1 %v7494_v8 }
 0xd8b   :  { %v1415_v42 = vmul.f32 %v7290_v39, %v1383_v10 }
 0xd8c   :  { %v7292_v46 = vpop.eup %7291 }
 0xd8d   :  { %v1416_v47 = vmul.f32 %v7292_v46, %v1384_v13  ;;  %v1423_v48 = vmul.f32 %v1422_v36, %v1415_v42 }
 0xd8e   :  { %v7294_v50 = vpop.eup %7293 }
 0xd8f   :  { %v1417_v51 = vmul.f32 %v7294_v50, %v1385_v41  ;;  %v1424_v52 = vmul.f32 %v1422_v36, %v1416_v47  ;;  %v1431_v56 = vadd.f32 %v1430_v49, %v1423_v48 }
 0xd90   :  { %v7296_v53 = vpop.eup %7295 }
 0xd91   :  { %v1425_v54 = vmul.f32 %v1422_v36, %v1417_v51  ;;  %v1418_v55 = vmul.f32 %v7296_v53, %v1386_v20  ;;  %v1432_v57 = vadd.f32 %v1430_v49, %v1424_v52  ;;  %v1519_v20 = vrot.slane %v7803_v45, %v7857_v17 }
 0xd93   :  { %v1426_v58 = vmul.f32 %v1422_v36, %v1418_v55  ;;  %v1435_v59 = vpack.c.bf16 %v1432_v57, %v1431_v56  ;;  %v1433_v60 = vadd.f32 %v1430_v49, %v1425_v54 }
 0xd95   :  { %6693 = vmatprep.mubr.msk.bf16.mxu0 %vm79_vm0, %v1435_v59  ;;  %v1434_v61 = vadd.f32 %v1430_v49, %v1426_v58 }
 0xd97   :  { %v1436_v62 = vpack.c.bf16 %v1434_v61, %v1433_v60 }
 0xd99   :  { %6694 = vmatmul.mubr.msk.bf16.vlgmr.msra.gmra.mrb[40].mxu0 %vm79_vm0, %v1436_v62  ;;  %v7882_v62 = vld [vmem:[%s8765_s1] sm:$0xff] }
 0xd9a   :  { %6698 = vmatpush3.bf16.msra.mxu0 %v7205_v63  ;;  %v7887_v63 = vld [vmem:[%s8765_s1 + $0x8] sm:$0xff] }
 0xd9b   :  { %6699 = vmatprep.subr.bf16.mxu0 %v7206_v0 }
 0xd9e   :  { %6700 = vmatpush3.bf16.msra.mxu0 %v7206_v0  ;;  %v7892_v0 = vld [vmem:[%s8770_s6 + $0x2] ss:$0 sm:$0xff] }
 0xe6c   :  { %v6695_v2 = vpop.f32.mrb[40].mxu0 }
 0xe6d   :  { %v1504_v3 = vadd.f32 %v6695_v2, %v6173_v1  ;;  %v1495_v4 = vpop.f32.mrb[41].mxu0 }
 0xe6e   :  { %v1496_v6 = vadd.f32 %v6173_v1, %v1495_v4  ;;  %v6696_v10 = vpop.f32.mrb[42].mxu0 }
 0xe6f   :  { %v1507_v11 = vadd.f32 %v6696_v10, %v6173_v1  ;;  %v1498_v12 = vpop.f32.mrb[43].mxu0  ;;  %v1512_v14 = vmax.f32 %v1504_v3, 0.0 }
 0xe70   :  { %v1499_v13 = vadd.f32 %v6173_v1, %v1498_v12  ;;  %v1510_v40 = vmax.f32 %v1496_v6, 0.0  ;;  %v1685_v1 = vpack.c.bf16 %v7887_v63, %v7882_v62 }
 0xe71   :  { %v1513_v38 = vmax.f32 %v1507_v11, 0.0 }
 0xe72   :  { %v1511_v41 = vmax.f32 %v1499_v13, 0.0  ;;  %6710 = vmatmul.mubr.msk.bf16.vlgmr.msra.gmra.mrb[32].mxu1 %vm79_vm0, %v1685_v1 }
 0xe73   :  { %v1515_v15 = vpack.c.bf16 %v1513_v38, %v1512_v14  ;;  %6723 = vmatprep.mubr.msk.bf16.mxu1 %vm7495_vm1, %v7494_v8 }
 0xe74   :  { %v1514_v16 = vpack.c.bf16 %v1511_v41, %v1510_v40 }
 0xe76   :  { %6701 = vmatprep.mubr.msk.bf16.mxu0 %vm79_vm0, %v1514_v16 }
 0xe77   :  { %6702 = vmatmul.mubr.msk.bf16.vlgmr.msra.gmra.mrb[44].mxu0 %vm79_vm0, %v1515_v15 }
 0xf4a   :  { %v6703_v5 = vpop.f32.mrb[44].mxu0 }
 0xf4b   :  { %v1572_v7 = vpop.f32.mrb[45].mxu0  ;;  %v1581_v9 = vadd.f32 %v6703_v5, %v1519_v20 }
 0xf4c   :  { %v1573_v21 = vadd.f32 %v1572_v7, %v1519_v20  ;;  %v6704_v22 = vpop.f32.mrb[46].mxu0 }
 0xf4d   :  { %v1575_v19 = vpop.f32.mrb[47].mxu0  ;;  %v1584_v18 = vadd.f32 %v6704_v22, %v1519_v20  ;;  %v1589_v27 = vadd.f32 %v1581_v9, %v1433_v60  ;;  %v7908_v22 = vsub.s32 5, %v7795_v43 }
 0xf4e   :  { %v1576_v23 = vadd.f32 %v1575_v19, %v1519_v20  ;;  %v1587_v24 = vadd.f32 %v1573_v21, %v1431_v56  ;;  %v7902_v20 = vsub.s32 4, %v7795_v43 }
 0xf4f   :  { %v1590_v29 = vadd.f32 %v1584_v18, %v1434_v61  ;;  %v1597_v30 = vsel %vm79_vm0, %v1589_v27, 0.0 }
 0xf50   :  { %v1591_v25 = vsel %vm79_vm0, %v1587_v24, 0.0  ;;  %v1588_v26 = vadd.f32 %v1576_v23, %v1432_v57  ;;  %v1646_v9 = vrot.slane %v7803_v45, %v7902_v20 }
 0xf51   :  { %1592 = vadd.xlane.f32.xlu1 %v1591_v25  ;;  %v1600_v31 = vsel %vm79_vm0, %v1590_v29, 0.0 }
 0xf52   :  { %v1594_v28 = vsel %vm79_vm0, %v1588_v26, 0.0 }
 0xf53   :  { %1595 = vadd.xlane.f32.xlu0 %v1594_v28  ;;  %v1654_v28 = vrot.slane %v7803_v45, %v7908_v22  ;;  %v1741_v45 = vpop.f32.mrb[32].mxu1 }
 0xf55   :  { %1598 = vadd.xlane.f32.xlu1 %v1597_v30 }
 0xf57   :  { %1601 = vadd.xlane.f32.xlu0 %v1600_v31 }
 0xfde   :  { %v1593_v34 = vpop.xlane.xlu1 %1592 }
 0xfdf   :  { %v1603_v39 = vmul.f32 0.03125, %v1593_v34 }
 0xfe0   :  { %v1596_v36 = vpop.xlane.xlu0 %1595 }
 0xfe1   :  { %v1604_v42 = vmul.f32 0.03125, %v1596_v36  ;;  %v1607_v50 = vsub.f32 %v1587_v24, %v1603_v39  ;;  %v6711_v39 = vpop.f32.mrb[33].mxu1 }
 0xfe2   :  { %v1599_v46 = vpop.xlane.xlu1 %1598 }
 0xfe3   :  { %v1608_v47 = vsub.f32 %v1588_v26, %v1604_v42  ;;  %v1605_v48 = vmul.f32 0.03125, %v1599_v46  ;;  %v1611_v59 = vmul.f32 %v1607_v50, %v1607_v50  ;;  %v1744_v42 = vpop.f32.mrb[34].mxu1 }
 0xfe4   :  { %v1602_v49 = vpop.xlane.xlu0 %1601  ;;  %v6712_v46 = vpop.f32.mrb[35].mxu1 }
 0xfe5   :  { %v1609_v51 = vsub.f32 %v1589_v27, %v1605_v48  ;;  %v1606_v52 = vmul.f32 0.03125, %v1602_v49  ;;  %v1612_v53 = vmul.f32 %v1608_v47, %v1608_v47  ;;  %v1615_v61 = vsel %vm79_vm0, %v1611_v59, 0.0 }
 0xfe7   :  { %v1610_v54 = vsub.f32 %v1590_v29, %v1606_v52  ;;  %v1618_v55 = vsel %vm79_vm0, %v1612_v53, 0.0  ;;  %v1613_v56 = vmul.f32 %v1609_v51, %v1609_v51 }
 0xfe8   :  { %1619 = vadd.xlane.f32.xlu0 %v1618_v55 }
 0xfe9   :  { %v1621_v57 = vsel %vm79_vm0, %v1613_v56, 0.0  ;;  %v1614_v58 = vmul.f32 %v1610_v54, %v1610_v54 }
 0xfea   :  { %1622 = vadd.xlane.f32.xlu1 %v1621_v57 }
 0xfeb   :  { %v1624_v60 = vsel %vm79_vm0, %v1614_v58, 0.0  ;;  %v1745_v58 = vadd.f32 %v7892_v0, %v1744_v42 }
 0xfec   :  { %1625 = vadd.xlane.f32.xlu0 %v1624_v60 }
 0xfed   :  { %v7946_v1 = vpack.c.bf16 %v1745_v58, %v1745_v58 }
 0xfee   :  { %1616 = vadd.xlane.f32.xlu1 %v1615_v61  ;;  %v1742_v61 = vadd.f32 %v7892_v0, %v1741_v45 }
 0xfff   :  { %1750 = vrot.lane.b32.xlu1 %v7207_v32, %s7496_s23 }
0x1002   :  { %1752 = vrot.lane.b32.xlu0 %v7208_v33, %s7496_s23 }
0x1003   :  { %1756 = vrot.lane.b32.xlu1 %v7892_v0, %s7496_s23 }
0x1075   :  { %v1620_v2 = vpop.xlane.xlu0 %1619 }
0x1076   :  { %v1628_v3 = vmul.f32 0.03125, %v1620_v2  ;;  %v7948_v2 = vpack.c.bf16 %v1742_v61, %v1742_v61 }
0x1077   :  { %v1623_v4 = vpop.xlane.xlu1 %1622 }
0x1078   :  { %v1632_v6 = vadd.f32 1e-05, %v1628_v3  ;;  %v1629_v10 = vmul.f32 0.03125, %v1623_v4 }
0x1079   :  { %v1626_v11 = vpop.xlane.xlu0 %1625 }
0x107a   :  { %7297 = vrsqrt.f32 %v1632_v6  ;;  %v1633_v12 = vadd.f32 1e-05, %v1629_v10  ;;  %v1630_v13 = vmul.f32 0.03125, %v1626_v11 }
0x107b   :  { %v1617_v14 = vpop.xlane.xlu1 %1616 }
0x107c   :  { %7299 = vrsqrt.f32 %v1633_v12  ;;  %v1634_v38 = vadd.f32 1e-05, %v1630_v13  ;;  %v1627_v40 = vmul.f32 0.03125, %v1617_v14 }
0x107d   :  { %v1753_v16 = vpop.permute.xlu0 %1752 }
0x107e   :  { %7301 = vrsqrt.f32 %v1634_v38  ;;  %v1631_v41 = vadd.f32 1e-05, %v1627_v40 }
0x107f   :  { %v1751_v15 = vpop.permute.xlu1 %1750 }
0x1080   :  { %7303 = vrsqrt.f32 %v1631_v41  ;;  %6713 = vmatprep.subr.bf16.mxu0 %v1751_v15 }
0x1081   :  { %6714 = vmatpush3.bf16.msra.mxu0 %v1751_v15 }
0x1082   :  { %6715 = vmatprep.subr.bf16.mxu0 %v1753_v16 }
0x1083   :  { %v1757_v48 = vpop.permute.xlu1 %1756 }
0x1084   :  { %v7298_v5 = vpop.eup %7297 }
0x1085   :  { %6716 = vmatpush3.bf16.msra.mxu0 %v1753_v16  ;;  %v1640_v21 = vmul.f32 %v7298_v5, %v1608_v47 }
0x1086   :  { %v7300_v7 = vpop.eup %7299  ;;  %6727 = vmatprep.subr.bf16.mxu0 %v7494_v8 }
0x1087   :  { %v1641_v18 = vmul.f32 %v7300_v7, %v1609_v51  ;;  %v1648_v27 = vmul.f32 %v1646_v9, %v1640_v21 }
0x1088   :  { %v7302_v19 = vpop.eup %7301 }
0x1089   :  { %v1642_v23 = vmul.f32 %v7302_v19, %v1610_v54  ;;  %v1649_v29 = vmul.f32 %v1646_v9, %v1641_v18  ;;  %v7916_v33 = vadd.f32 %v1654_v28, %v1648_v27 }
0x108a   :  { %v7304_v24 = vpop.eup %7303 }
0x108b   :  { %v1650_v25 = vmul.f32 %v1646_v9, %v1642_v23  ;;  %v1639_v26 = vmul.f32 %v7304_v24, %v1607_v50  ;;  %v7918_v43 = vadd.f32 %v1654_v28, %v1649_v29 }
0x108d   :  { %v1647_v30 = vmul.f32 %v1646_v9, %v1639_v26  ;;  %v7912_v31 = vadd.f32 %v1654_v28, %v1650_v25 }
0x108f   :  { %v7914_v32 = vadd.f32 %v1654_v28, %v1647_v30  ;;  %v7926_v36 = vpack.c.bf16 %v7912_v31, %v7918_v43 }
0x1091   :  { %v7922_v34 = vpack.c.bf16 %v7916_v33, %v7914_v32 }
0x1093   :  { %6717 = vmatprep.mubr.msk.bf16.mxu0 %vm79_vm0, %v7922_v34 }
0x1094   :  { %6718 = vmatmul.mubr.msk.bf16.vlgmr.msra.gmra.mrb[48].mxu0 %vm79_vm0, %v7926_v36 }
0x1095   :  { %6729 = vmatprep.mubr.msk.bf16.mxu0 %vm7495_vm1, %v7494_v8 }
0x1167   :  { %v6719_v47 = vpop.f32.mrb[48].mxu0 }
0x1168   :  { %v1799_v49 = vpop.f32.mrb[49].mxu0  ;;  %v1808_v51 = vadd.f32 %v6719_v47, %v1757_v48 }
0x1169   :  { %v6720_v50 = vpop.f32.mrb[50].mxu0  ;;  %v1800_v54 = vadd.f32 %v1799_v49, %v1757_v48 }
0x116a   :  { %v1811_v52 = vadd.f32 %v6720_v50, %v1757_v48  ;;  %v1802_v53 = vpop.f32.mrb[51].mxu0 }
0x116b   :  { %v1803_v55 = vadd.f32 %v1802_v53, %v1757_v48 }
0x116c   :  { %v7934_v56 = vpack.c.bf16 %v1811_v52, %v1808_v51 }
0x116d   :  { %v7936_v57 = vpack.c.bf16 %v1803_v55, %v1800_v54 }
0x116e   :  { %v1868_v59 = vsel %vm140_vm2, %v7934_v56, 0 }
0x116f   :  { %6728 = vmatpush3.bf16.xpose.msra.mxu0 %v1868_v59  ;;  %v1822_v60 = vsel %vm140_vm2, %v7936_v57, 0 }
0x1170   :  { %6722 = vmatpush3.bf16.xpose.msra.mxu1 %v1822_v60  ;;  %6739 = vmatprep.subr.bf16.mxu0 %v7494_v8 }
0x1171   :  { %6733 = vmatprep.subr.bf16.mxu1 %v7494_v8 }
0x1176   :  { %6730 = vmatmul.mubr.msk.bf16.vlgmr.msra.gmra.mrb[52].mxu0 %vm140_vm2, %v7946_v1 }
0x1177   :  { %6724 = vmatmul.mubr.msk.bf16.vlgmr.msra.gmra.mrb[36].mxu1 %vm140_vm2, %v7948_v2  ;;  %6741 = vmatprep.mubr.msk.bf16.mxu0 %vm7495_vm1, %v7494_v8 }
0x1178   :  { %6735 = vmatprep.mubr.msk.bf16.mxu1 %vm7495_vm1, %v7494_v8 }
0x1249   :  { %v1904_v3 = vpop.f32.mrb[52].mxu0 }
0x124a   :  { %v1858_v0 = vpop.f32.mrb[36].mxu1  ;;  %v6731_v4 = vpop.f32.mrb[53].mxu0  ;;  %v1913_v6 = vsel %vm238_vm3, %v1904_v3, -inf }
0x124b   :  { %1914 = vmax.xlane.f32.xlu0 %v1913_v6  ;;  %v6725_v10 = vpop.f32.mrb[37].mxu1  ;;  %v1907_v11 = vpop.f32.mrb[54].mxu0  ;;  %v1910_v12 = vsel %vm238_vm3, %v1858_v0, -inf }
0x124c   :  { %v6732_v13 = vpop.f32.mrb[55].mxu0  ;;  %1911 = vmax.xlane.f32.xlu1 %v1910_v12  ;;  %v1861_v14 = vpop.f32.mrb[38].mxu1 }
0x124d   :  { %v6726_v38 = vpop.f32.mrb[39].mxu1 }
0x125d   :  { %1982 = vrot.lane.b32.xlu1 %v7934_v56, %s7496_s23 }
0x1261   :  { %1935 = vrot.lane.b32.xlu0 %v7936_v57, %s7496_s23 }
0x12d8   :  { %v1915_v40 = vpop.xlane.xlu0 %1914 }
0x12d9   :  { %v1917_v41 = vsub.f32 %v1904_v3, %v1915_v40  ;;  %v1912_v15 = vpop.xlane.xlu1 %1911 }
0x12da   :  { %v1916_v16 = vsub.f32 %v1858_v0, %v1912_v15 }
0x12db   :  { %v1920_v5 = vmul.f32 1.442695, %v1917_v41 }
0x12dc   :  { %v1918_v7 = vmul.f32 1.442695, %v1916_v16  ;;  %v1936_v9 = vpop.permute.xlu0 %1935 }
0x12dd   :  { %7305 = vpow2.f32 %v1920_v5  ;;  %6734 = vmatpush3.bf16.msra.mxu1 %v1936_v9  ;;  %v1983_v21 = vpop.permute.xlu1 %1982 }
0x12de   :  { %7307 = vpow2.f32 %v1918_v7  ;;  %6740 = vmatpush3.bf16.msra.mxu0 %v1983_v21  ;;  %6745 = vmatprep.subr.bf16.mxu1 %v7494_v8 }
0x12df   :  { %6751 = vmatprep.subr.bf16.mxu0 %v7494_v8 }
0x12e7   :  { %v7306_v19 = vpop.eup %7305 }
0x12e8   :  { %v7308_v18 = vpop.eup %7307  ;;  %v1925_v23 = vsel %vm238_vm3, %v7306_v19, 0.0 }
0x12e9   :  { %1926 = vadd.xlane.f32.xlu1 %v1925_v23  ;;  %v1922_v24 = vsel %vm238_vm3, %v7308_v18, 0.0 }
0x12ea   :  { %1923 = vadd.xlane.f32.xlu0 %v1922_v24 }
0x12fa   :  { %2032 = vrot.lane.b32.xlu1 %v7936_v57, %s7499_s26 }
0x12fe   :  { %2030 = vrot.lane.b32.xlu1 %v7948_v2, %s7499_s26 }
0x1300   :  { %2083 = vrot.lane.b32.xlu0 %v7934_v56, %s7499_s26 }
0x1304   :  { %2081 = vrot.lane.b32.xlu0 %v7946_v1, %s7499_s26 }
0x1376   :  { %v1927_v25 = vpop.xlane.xlu1 %1926 }
0x1377   :  { %7309 = vrcp.f32 %v1927_v25  ;;  %v1924_v26 = vpop.xlane.xlu0 %1923 }
0x1378   :  { %7311 = vrcp.f32 %v1924_v26 }
0x137a   :  { %v2033_v39 = vpop.permute.xlu1 %2032 }
0x137b   :  { %v2084_v30 = vpop.permute.xlu0 %2083  ;;  %v2038_v48 = vsel %vm140_vm2, %v2033_v39, 0  ;;  %v6188_v39 = vld [vmem:[%s8767_s3 + $0x24] sm:$0xf] }
0x137c   :  { %v2089_v47 = vsel %vm140_vm2, %v2084_v30, 0 }
0x137e   :  { %v2031_v50 = vpop.permute.xlu1 %2030 }
0x137f   :  { %v2082_v49 = vpop.permute.xlu0 %2081 }
0x1381   :  { %v7310_v27 = vpop.eup %7309 }
0x1382   :  { %v7312_v28 = vpop.eup %7311  ;;  %v1931_v29 = vmul.f32 %v7310_v27, %v7306_v19 }
0x1383   :  { %v1930_v45 = vmul.f32 %v7312_v28, %v7308_v18  ;;  %v6187_v28 = vld [vmem:[%s8767_s3 + $0x20] sm:$0xf] }
0x1384   :  { %v1933_v42 = vpack.c.bf16 %v1931_v29, %v1931_v29 }
0x1385   :  { %v1932_v46 = vpack.c.bf16 %v1930_v45, %v1930_v45 }
0x1386   :  { %6742 = vmatmul.mubr.msk.bf16.vlgmr.msra.gmra.mrb[56].mxu0 %vm238_vm3, %v1933_v42 }
0x1387   :  { %6752 = vmatpush3.bf16.xpose.msra.mxu0 %v2089_v47  ;;  %6736 = vmatmul.mubr.msk.bf16.vlgmr.msra.gmra.mrb[40].mxu1 %vm238_vm3, %v1932_v46  ;;  %v2299_v46 = vsel %vm631_vm4, %v6187_v28, 0 }
0x1388   :  { %6746 = vmatpush3.bf16.xpose.msra.mxu1 %v2038_v48  ;;  %6753 = vmatprep.mubr.msk.bf16.mxu0 %vm7495_vm1, %v7494_v8  ;;  %v2252_v48 = vsel %vm631_vm4, %v6188_v39, 0 }
0x1389   :  { %6747 = vmatprep.mubr.msk.bf16.mxu1 %vm7495_vm1, %v7494_v8  ;;  %6763 = vmatprep.subr.bf16.mxu0 %v7494_v8 }
0x138a   :  { %6757 = vmatprep.subr.bf16.mxu1 %v7494_v8 }
0x138e   :  { %6754 = vmatmul.mubr.msk.bf16.vlgmr.msra.gmra.mrb[60].mxu0 %vm140_vm2, %v2082_v49 }
0x138f   :  { %6748 = vmatmul.mubr.msk.bf16.vlgmr.msra.gmra.mrb[44].mxu1 %vm140_vm2, %v2031_v50  ;;  %6765 = vmatprep.mubr.msk.bf16.mxu0 %vm7495_vm1, %v7494_v8 }
0x1390   :  { %6759 = vmatprep.mubr.msk.bf16.mxu1 %vm7495_vm1, %v7494_v8 }
0x1459   :  { %v7992_v51 = vpop.f32.mrb[56].mxu0 }
0x145a   :  { %v7994_v52 = vpop.f32.mrb[40].mxu1  ;;  %v6743_v53 = vpop.f32.mrb[57].mxu0 }
0x145b   :  { %v2028_v54 = vpack.c.bf16 %v7992_v51, %v7994_v52  ;;  %v6737_v55 = vpop.f32.mrb[41].mxu1  ;;  %v2025_v58 = vpop.f32.mrb[58].mxu0 }
0x145c   :  { %v1978_v59 = vpop.f32.mrb[42].mxu1  ;;  %v6744_v60 = vpop.f32.mrb[59].mxu0 }
0x145d   :  { %v6738_v61 = vpop.f32.mrb[43].mxu1 }
0x1461   :  { %v2125_v3 = vpop.f32.mrb[60].mxu0 }
0x1462   :  { %v2074_v0 = vpop.f32.mrb[44].mxu1  ;;  %v6755_v4 = vpop.f32.mrb[61].mxu0  ;;  %v2134_v6 = vsel %vm238_vm3, %v2125_v3, -inf }
0x1463   :  { %2135 = vmax.xlane.f32.xlu0 %v2134_v6  ;;  %v6749_v10 = vpop.f32.mrb[45].mxu1  ;;  %v2128_v11 = vpop.f32.mrb[62].mxu0  ;;  %v2131_v12 = vsel %vm238_vm3, %v2074_v0, -inf }
0x1464   :  { %v6756_v13 = vpop.f32.mrb[63].mxu0  ;;  %2132 = vmax.xlane.f32.xlu1 %v2131_v12  ;;  %v2077_v14 = vpop.f32.mrb[46].mxu1 }
0x1465   :  { %v6750_v38 = vpop.f32.mrb[47].mxu1 }
0x14f0   :  { %v2136_v40 = vpop.xlane.xlu0 %2135 }
0x14f1   :  { %v2138_v41 = vsub.f32 %v2125_v3, %v2136_v40  ;;  %v2133_v15 = vpop.xlane.xlu1 %2132 }
0x14f2   :  { %v2137_v16 = vsub.f32 %v2074_v0, %v2133_v15 }
0x14f3   :  { %v2141_v5 = vmul.f32 1.442695, %v2138_v41 }
0x14f4   :  { %v2139_v7 = vmul.f32 1.442695, %v2137_v16 }
0x14f5   :  { %7313 = vpow2.f32 %v2141_v5 }
0x14f6   :  { %7315 = vpow2.f32 %v2139_v7 }
0x14ff   :  { %v7314_v9 = vpop.eup %7313 }
0x1500   :  { %v7316_v21 = vpop.eup %7315  ;;  %v2146_v19 = vsel %vm238_vm3, %v7314_v9, 0.0 }
0x1501   :  { %2147 = vadd.xlane.f32.xlu1 %v2146_v19  ;;  %v2143_v18 = vsel %vm238_vm3, %v7316_v21, 0.0 }
0x1502   :  { %2144 = vadd.xlane.f32.xlu0 %v2143_v18 }
0x1512   :  { %2201 = vrot.lane.b32.xlu1 %v7934_v56, %s7498_s25 }
0x1516   :  { %2344 = vrot.lane.b32.xlu1 %v7936_v57, %s7501_s28 }
0x1518   :  { %2155 = vrot.lane.b32.xlu0 %v7936_v57, %s7498_s25 }
0x151a   :  { %2342 = vrot.lane.b32.xlu1 %v7948_v2, %s7501_s28 }
0x151c   :  { %2394 = vrot.lane.b32.xlu0 %v7934_v56, %s7501_s28 }
0x1520   :  { %2392 = vrot.lane.b32.xlu0 %v7946_v1, %s7501_s28 }
0x158e   :  { %v2148_v23 = vpop.xlane.xlu1 %2147 }
0x158f   :  { %7317 = vrcp.f32 %v2148_v23  ;;  %v2145_v24 = vpop.xlane.xlu0 %2144 }
0x1590   :  { %7319 = vrcp.f32 %v2145_v24 }
0x1592   :  { %v2202_v25 = vpop.permute.xlu1 %2201 }
0x1593   :  { %v2156_v26 = vpop.permute.xlu0 %2155  ;;  %6764 = vmatpush3.bf16.msra.mxu0 %v2202_v25 }
0x1594   :  { %6758 = vmatpush3.bf16.msra.mxu1 %v2156_v26  ;;  %6775 = vmatprep.subr.bf16.mxu0 %v7494_v8 }
0x1595   :  { %6769 = vmatprep.subr.bf16.mxu1 %v7494_v8 }
0x1596   :  { %v2345_v55 = vpop.permute.xlu1 %2344 }
0x1597   :  { %v2395_v49 = vpop.permute.xlu0 %2394  ;;  %v2350_v0 = vsel %vm140_vm2, %v2345_v55, 0 }
0x1598   :  { %v2400_v50 = vsel %vm140_vm2, %v2395_v49, 0 }
0x1599   :  { %v7318_v27 = vpop.eup %7317 }
0x159a   :  { %v7320_v29 = vpop.eup %7319  ;;  %v2152_v30 = vmul.f32 %v7318_v27, %v7314_v9  ;;  %v2343_v12 = vpop.permute.xlu1 %2342 }
0x159b   :  { %v2151_v45 = vmul.f32 %v7320_v29, %v7316_v21  ;;  %v2393_v53 = vpop.permute.xlu0 %2392 }
0x159c   :  { %v2154_v42 = vpack.c.bf16 %v2152_v30, %v2152_v30 }
0x159d   :  { %v2153_v47 = vpack.c.bf16 %v2151_v45, %v2151_v45 }
0x159e   :  { %6766 = vmatmul.mubr.msk.bf16.vlgmr.msra.gmra.mrb[64].mxu0 %vm238_vm3, %v2154_v42 }
0x159f   :  { %6776 = vmatpush3.bf16.msra.mxu0 %v2299_v46  ;;  %6760 = vmatmul.mubr.msk.bf16.vlgmr.msra.gmra.mrb[48].mxu1 %vm238_vm3, %v2153_v47 }
0x15a0   :  { %6777 = vmatprep.mubr.msk.bf16.mxu0 %vm7495_vm1, %v7494_v8  ;;  %6787 = vmatprep.subr.bf16.mxu0 %v7494_v8 }
0x15a1   :  { %6770 = vmatpush3.bf16.msra.mxu1 %v2252_v48  ;;  %6771 = vmatprep.mubr.msk.bf16.mxu1 %vm7495_vm1, %v7494_v8 }
0x15a2   :  { %6781 = vmatprep.subr.bf16.mxu1 %v7494_v8 }
0x15a6   :  { %6778 = vmatmul.mubr.msk.bf16.vlgmr.msra.gmra.mrb[68].mxu0 %vm140_vm2, %v2028_v54 }
0x15a7   :  { %6789 = vmatprep.mubr.msk.bf16.mxu0 %vm7495_vm1, %v7494_v8 }
0x15a8   :  { %6788 = vmatpush3.bf16.xpose.msra.mxu0 %v2400_v50 }
0x15a9   :  { %6799 = vmatprep.subr.bf16.mxu0 %v7494_v8 }
0x15af   :  { %6790 = vmatmul.mubr.msk.bf16.vlgmr.msra.gmra.mrb[72].mxu0 %vm140_vm2, %v2393_v53 }
0x15b0   :  { %6801 = vmatprep.mubr.msk.bf16.mxu0 %vm7495_vm1, %v7494_v8 }
0x1671   :  { %v2241_v58 = vpop.f32.mrb[64].mxu0 }
0x1672   :  { %v2195_v59 = vpop.f32.mrb[48].mxu1  ;;  %v6767_v51 = vpop.f32.mrb[65].mxu0 }
0x1673   :  { %v2247_v52 = vpack.c.bf16 %v2241_v58, %v2195_v59  ;;  %v6761_v54 = vpop.f32.mrb[49].mxu1  ;;  %v2244_v60 = vpop.f32.mrb[66].mxu0 }
0x1674   :  { %v2198_v61 = vpop.f32.mrb[50].mxu1  ;;  %v6768_v3 = vpop.f32.mrb[67].mxu0 }
0x1675   :  { %v6762_v4 = vpop.f32.mrb[51].mxu1  ;;  %6772 = vmatmul.mubr.msk.bf16.vlgmr.msra.gmra.mrb[52].mxu1 %vm140_vm2, %v2247_v52  ;;  %v6189_v61 = vld [vmem:[%s8767_s3 + $0x28] sm:$0xf] }
0x1676   :  { %6782 = vmatpush3.bf16.xpose.msra.mxu1 %v2350_v0  ;;  %6783 = vmatprep.mubr.msk.bf16.mxu1 %vm7495_vm1, %v7494_v8  ;;  %v2563_v4 = vsel %vm631_vm4, %v6189_v61, 0 }
0x1677   :  { %6793 = vmatprep.subr.bf16.mxu1 %v7494_v8 }
0x1679   :  { %v2335_v6 = vpop.f32.mrb[68].mxu0 }
0x167a   :  { %v6779_v10 = vpop.f32.mrb[69].mxu0 }
0x167b   :  { %v2338_v11 = vpop.f32.mrb[70].mxu0 }
0x167c   :  { %v6780_v13 = vpop.f32.mrb[71].mxu0 }
0x167d   :  { %6784 = vmatmul.mubr.msk.bf16.vlgmr.msra.gmra.mrb[56].mxu1 %vm140_vm2, %v2343_v12 }
0x167e   :  { %6795 = vmatprep.mubr.msk.bf16.mxu1 %vm7495_vm1, %v7494_v8 }
0x1682   :  { %v2436_v14 = vpop.f32.mrb[72].mxu0 }
0x1683   :  { %v6791_v38 = vpop.f32.mrb[73].mxu0  ;;  %v2445_v40 = vsel %vm238_vm3, %v2436_v14, -inf }
0x1684   :  { %2446 = vmax.xlane.f32.xlu0 %v2445_v40  ;;  %v2439_v41 = vpop.f32.mrb[74].mxu0 }
0x1685   :  { %v6792_v15 = vpop.f32.mrb[75].mxu0 }
0x1711   :  { %v2447_v16 = vpop.xlane.xlu0 %2446 }
0x1712   :  { %v2449_v5 = vsub.f32 %v2436_v14, %v2447_v16 }
0x1714   :  { %v2452_v7 = vmul.f32 1.442695, %v2449_v5 }
0x1716   :  { %7321 = vpow2.f32 %v2452_v7 }
0x1720   :  { %v7322_v28 = vpop.eup %7321 }
0x1721   :  { %v2457_v45 = vsel %vm238_vm3, %v7322_v28, 0.0 }
0x1748   :  { %v2288_v9 = vpop.f32.mrb[52].mxu1 }
0x1749   :  { %v8052_v21 = vadd.f32 %v2335_v6, %v2288_v9  ;;  %v6773_v19 = vpop.f32.mrb[53].mxu1 }
0x174a   :  { %v2291_v18 = vpop.f32.mrb[54].mxu1 }
0x174b   :  { %v8054_v23 = vadd.f32 %v2338_v11, %v2291_v18  ;;  %v6774_v24 = vpop.f32.mrb[55].mxu1 }
0x1750   :  { %v2386_v25 = vpop.f32.mrb[56].mxu1 }
0x1751   :  { %v6785_v26 = vpop.f32.mrb[57].mxu1  ;;  %v2442_v27 = vsel %vm238_vm3, %v2386_v25, -inf }
0x1752   :  { %2443 = vmax.xlane.f32.xlu1 %v2442_v27  ;;  %v2389_v29 = vpop.f32.mrb[58].mxu1 }
0x1753   :  { %v6786_v30 = vpop.f32.mrb[59].mxu1 }
0x1756   :  { %2458 = vadd.xlane.f32.xlu1 %v2457_v45 }
0x1767   :  { %2512 = vrot.lane.b32.xlu1 %v7934_v56, %s7500_s27 }
0x176b   :  { %2610 = vrot.lane.b32.xlu1 %v7936_v57, %s7505_s15 }
0x176f   :  { %2608 = vrot.lane.b32.xlu1 %v7948_v2, %s7505_s15 }
0x17df   :  { %v2444_v39 = vpop.xlane.xlu1 %2443 }
0x17e0   :  { %v2448_v42 = vsub.f32 %v2386_v25, %v2444_v39 }
0x17e2   :  { %v2450_v46 = vmul.f32 1.442695, %v2448_v42 }
0x17e3   :  { %v2459_v47 = vpop.xlane.xlu1 %2458 }
0x17e4   :  { %7323 = vpow2.f32 %v2450_v46 }
0x17e5   :  { %7325 = vrcp.f32 %v2459_v47 }
0x17e7   :  { %v2513_v48 = vpop.permute.xlu1 %2512 }
0x17e8   :  { %6800 = vmatpush3.bf16.msra.mxu0 %v2513_v48 }
0x17e9   :  { %6811 = vmatprep.subr.bf16.mxu0 %v7494_v8 }
0x17eb   :  { %v2611_v58 = vpop.permute.xlu1 %2610 }
0x17ec   :  { %v2616_v2 = vsel %vm140_vm2, %v2611_v58, 0 }
0x17ee   :  { %v7324_v49 = vpop.eup %7323 }
0x17ef   :  { %v7326_v50 = vpop.eup %7325  ;;  %v2454_v53 = vsel %vm238_vm3, %v7324_v49, 0.0  ;;  %v2609_v51 = vpop.permute.xlu1 %2608 }
0x17f0   :  { %2455 = vadd.xlane.f32.xlu0 %v2454_v53  ;;  %v2463_v55 = vmul.f32 %v7326_v50, %v7322_v28 }
0x17f2   :  { %v2465_v59 = vpack.c.bf16 %v2463_v55, %v2463_v55 }
0x17f4   :  { %6802 = vmatmul.mubr.msk.bf16.vlgmr.msra.gmra.mrb[76].mxu0 %vm238_vm3, %v2465_v59 }
0x17f5   :  { %6812 = vmatpush3.bf16.xpose.msra.mxu0 %v2616_v2  ;;  %6813 = vmatprep.mubr.msk.bf16.mxu0 %vm7495_vm1, %v7494_v8 }
0x17f6   :  { %6823 = vmatprep.subr.bf16.mxu0 %v7494_v8 }
0x17fc   :  { %6814 = vmatmul.mubr.msk.bf16.vlgmr.msra.gmra.mrb[80].mxu0 %vm140_vm2, %v2609_v51 }
0x17fd   :  { %6825 = vmatprep.mubr.msk.bf16.mxu0 %vm7495_vm1, %v7494_v8 }
0x1806   :  { %2466 = vrot.lane.b32.xlu0 %v7936_v57, %s7500_s27 }
0x180a   :  { %2660 = vrot.lane.b32.xlu0 %v7934_v56, %s7505_s15 }
0x180e   :  { %2658 = vrot.lane.b32.xlu0 %v7946_v1, %s7505_s15 }
0x187d   :  { %v2456_v52 = vpop.xlane.xlu0 %2455 }
0x187e   :  { %7327 = vrcp.f32 %v2456_v52 }
0x1881   :  { %v2467_v54 = vpop.permute.xlu0 %2466 }
0x1882   :  { %6794 = vmatpush3.bf16.msra.mxu1 %v2467_v54 }
0x1883   :  { %6805 = vmatprep.subr.bf16.mxu1 %v7494_v8 }
0x1885   :  { %v2661_v41 = vpop.permute.xlu0 %2660 }
0x1886   :  { %v2666_v9 = vsel %vm140_vm2, %v2661_v41, 0 }
0x1888   :  { %v7328_v60 = vpop.eup %7327 }
0x1889   :  { %v2462_v3 = vmul.f32 %v7328_v60, %v7324_v49  ;;  %v2659_v18 = vpop.permute.xlu0 %2658 }
0x188b   :  { %v2464_v0 = vpack.c.bf16 %v2462_v3, %v2462_v3 }
0x188d   :  { %6796 = vmatmul.mubr.msk.bf16.vlgmr.msra.gmra.mrb[60].mxu1 %vm238_vm3, %v2464_v0 }
0x188e   :  { %6806 = vmatpush3.bf16.msra.mxu1 %v2563_v4  ;;  %6807 = vmatprep.mubr.msk.bf16.mxu1 %vm7495_vm1, %v7494_v8 }
0x188f   :  { %6817 = vmatprep.subr.bf16.mxu1 %v7494_v8 }
0x18c7   :  { %v2552_v1 = vpop.f32.mrb[76].mxu0 }
0x18c8   :  { %v6803_v6 = vpop.f32.mrb[77].mxu0 }
0x18c9   :  { %v2555_v10 = vpop.f32.mrb[78].mxu0 }
0x18ca   :  { %v6804_v11 = vpop.f32.mrb[79].mxu0 }
0x18cf   :  { %v2652_v12 = vpop.f32.mrb[80].mxu0 }
0x18d0   :  { %v6815_v13 = vpop.f32.mrb[81].mxu0  ;;  %v2708_v14 = vsel %vm238_vm3, %v2652_v12, -inf }
0x18d1   :  { %2709 = vmax.xlane.f32.xlu1 %v2708_v14  ;;  %v2655_v38 = vpop.f32.mrb[82].mxu0 }
0x18d2   :  { %v6816_v40 = vpop.f32.mrb[83].mxu0 }
0x195e   :  { %v2710_v24 = vpop.xlane.xlu1 %2709 }
0x195f   :  { %v2714_v25 = vsub.f32 %v2652_v12, %v2710_v24 }
0x1960   :  { %v2506_v15 = vpop.f32.mrb[60].mxu1 }
0x1961   :  { %v2558_v16 = vpack.c.bf16 %v2552_v1, %v2506_v15  ;;  %v6797_v5 = vpop.f32.mrb[61].mxu1  ;;  %v2716_v26 = vmul.f32 1.442695, %v2714_v25  ;;  %v6200_v15 = vld [vmem:[%s8771_s7 + $0x10] sm:$0x3f] }
0x1962   :  { %v2509_v7 = vpop.f32.mrb[62].mxu1 }
0x1963   :  { %v6798_v19 = vpop.f32.mrb[63].mxu1  ;;  %6808 = vmatmul.mubr.msk.bf16.vlgmr.msra.gmra.mrb[64].mxu1 %vm140_vm2, %v2558_v16  ;;  %7329 = vpow2.f32 %v2716_v26 }
0x1964   :  { %6818 = vmatpush3.bf16.xpose.msra.mxu1 %v2666_v9  ;;  %6819 = vmatprep.mubr.msk.bf16.mxu1 %vm7495_vm1, %v7494_v8  ;;  %v2879_v9 = vrot.slane %v6200_v15, %v7798_v44 }
0x1965   :  { %6829 = vmatprep.subr.bf16.mxu1 %v7494_v8 }
0x196b   :  { %6820 = vmatmul.mubr.msk.bf16.vlgmr.msra.gmra.mrb[68].mxu1 %vm140_vm2, %v2659_v18 }
0x196c   :  { %6831 = vmatprep.mubr.msk.bf16.mxu1 %vm7495_vm1, %v7494_v8 }
0x196d   :  { %v7330_v48 = vpop.eup %7329 }
0x196e   :  { %v2720_v53 = vsel %vm238_vm3, %v7330_v48, 0.0 }
0x1a36   :  { %v2599_v27 = vpop.f32.mrb[64].mxu1 }
0x1a37   :  { %v2606_v28 = vadd.f32 %v2599_v27, %v8052_v21  ;;  %v6809_v29 = vpop.f32.mrb[65].mxu1 }
0x1a38   :  { %v2602_v30 = vpop.f32.mrb[66].mxu1 }
0x1a39   :  { %v2607_v45 = vadd.f32 %v2602_v30, %v8054_v23  ;;  %v6810_v39 = vpop.f32.mrb[67].mxu1 }
0x1a3e   :  { %v2702_v42 = vpop.f32.mrb[68].mxu1 }
0x1a3f   :  { %v6821_v46 = vpop.f32.mrb[69].mxu1  ;;  %v2711_v47 = vsel %vm238_vm3, %v2702_v42, -inf }
0x1a40   :  { %2712 = vmax.xlane.f32.xlu0 %v2711_v47  ;;  %v2705_v49 = vpop.f32.mrb[70].mxu1 }
0x1a41   :  { %v6822_v50 = vpop.f32.mrb[71].mxu1 }
0x1a44   :  { %2721 = vadd.xlane.f32.xlu0 %v2720_v53  ;;  %v7209_v53 = vld [vmem:[%s8768_s4 + $0x20] sm:$0xff]  }
0x1a5a   :  { %2732 = vrot.lane.b32.xlu0 %v7936_v57, %s7504_s14  ;;  %v6190_v57 = vld [vmem:[%s8767_s3 + $0x2c] sm:$0xf] }
0x1a5b   :  { %v2829_v61 = vsel %vm631_vm4, %v6190_v57, 0 }
0x1acd   :  { %v2713_v21 = vpop.xlane.xlu0 %2712 }
0x1ace   :  { %v2715_v55 = vsub.f32 %v2702_v42, %v2713_v21  ;;  %v7210_v21 = vld [vmem:[%s8768_s4 + $0x28] sm:$0xff]  }
0x1ad0   :  { %v2718_v58 = vmul.f32 1.442695, %v2715_v55  ;;  %v7211_v55 = vld [vmem:[%s8766_s2 + $0x10] sm:$0xff]  }
0x1ad1   :  { %v2722_v59 = vpop.xlane.xlu0 %2721 }
0x1ad2   :  { %7331 = vpow2.f32 %v2718_v58 }
0x1ad3   :  { %7333 = vrcp.f32 %v2722_v59 }
0x1ad5   :  { %v2733_v23 = vpop.permute.xlu0 %2732 }
0x1ad6   :  { %6824 = vmatpush3.bf16.msra.mxu0 %v2733_v23 }
0x1ad7   :  { %6835 = vmatprep.subr.bf16.mxu0 %v7494_v8 }
0x1adc   :  { %v7332_v2 = vpop.eup %7331 }
0x1add   :  { %v7334_v51 = vpop.eup %7333  ;;  %v2723_v52 = vsel %vm238_vm3, %v7332_v2, 0.0 }
0x1ade   :  { %2724 = vadd.xlane.f32.xlu1 %v2723_v52  ;;  %v2728_v54 = vmul.f32 %v7334_v51, %v7330_v48 }
0x1ae0   :  { %v2730_v60 = vpack.c.bf16 %v2728_v54, %v2728_v54  ;;  %v2911_v54 = vrot.slane %v6200_v15, %v7834_v35 }
0x1ae2   :  { %6826 = vmatmul.mubr.msk.bf16.vlgmr.msra.gmra.mrb[84].mxu0 %vm238_vm3, %v2730_v60 }
0x1ae3   :  { %6837 = vmatprep.mubr.msk.bf16.mxu0 %vm7495_vm1, %v7494_v8  ;;  %6836 = vmatpush3.bf16.msra.mxu0 %v2829_v61 }
0x1ae4   :  { %6849 = vmatprep.subr.bf16.mxu0 %v7494_v8 }
0x1aef   :  { %2778 = vrot.lane.b32.xlu1 %v7934_v56, %s7504_s14 }
0x1b6b   :  { %v2725_v3 = vpop.xlane.xlu1 %2724 }
0x1b6c   :  { %7335 = vrcp.f32 %v2725_v3 }
0x1b6f   :  { %v2779_v0 = vpop.permute.xlu1 %2778 }
0x1b70   :  { %6830 = vmatpush3.bf16.msra.mxu1 %v2779_v0 }
0x1b71   :  { %6841 = vmatprep.subr.bf16.mxu1 %v7494_v8 }
0x1b76   :  { %v7336_v4 = vpop.eup %7335 }
0x1b77   :  { %v2729_v1 = vmul.f32 %v7336_v4, %v7332_v2  ;;  %v2917_v4 = vrot.slane %v6200_v15, %v7839_v37 }
0x1b79   :  { %v2731_v6 = vpack.c.bf16 %v2729_v1, %v2729_v1 }
0x1b7b   :  { %6832 = vmatmul.mubr.msk.bf16.vlgmr.msra.gmra.mrb[72].mxu1 %vm238_vm3, %v2731_v6 }
0x1b7c   :  { %6845 = vmatprep.mubr.msk.bf16.mxu1 %vm7495_vm1, %v7494_v8  ;;  %6842 = vmatpush3.bf16.msra.mxu1 %v7209_v53 }
0x1b7d   :  { %6843 = vmatprep.subr.bf16.mxu1 %v7494_v8 }
0x1b80   :  { %6844 = vmatpush3.bf16.msra.mxu1 %v7210_v21 }
0x1b81   :  { %6857 = vmatprep.subr.bf16.mxu1 %v7211_v55 }
0x1bb5   :  { %v2772_v56 = vpop.f32.mrb[84].mxu0 }
0x1bb6   :  { %v6827_v10 = vpop.f32.mrb[85].mxu0 }
0x1bb7   :  { %v2775_v11 = vpop.f32.mrb[86].mxu0 }
0x1bb8   :  { %v6828_v12 = vpop.f32.mrb[87].mxu0  ;;  %v7212_v11 = vld [vmem:[%s8766_s2 + $0x18] sm:$0xff]  }
0x1bb9   :  { %v7213_v12 = vld [vmem:[%s8769_s5 + $0x20] sm:$0xff]  }
0x1c4e   :  { %v2818_v13 = vpop.f32.mrb[72].mxu1 }
0x1c4f   :  { %v2824_v14 = vpack.c.bf16 %v2818_v13, %v2772_v56  ;;  %v6833_v38 = vpop.f32.mrb[73].mxu1 }
0x1c50   :  { %v2821_v40 = vpop.f32.mrb[74].mxu1 }
0x1c51   :  { %v6834_v41 = vpop.f32.mrb[75].mxu1  ;;  %6838 = vmatmul.mubr.msk.bf16.vlgmr.msra.gmra.mrb[88].mxu0 %vm140_vm2, %v2824_v14 }
0x1c52   :  { %6853 = vmatprep.mubr.msk.bf16.mxu0 %vm7495_vm1, %v7494_v8  ;;  %6850 = vmatpush3.bf16.msra.mxu0 %v7213_v12 }
0x1c53   :  { %6851 = vmatprep.subr.bf16.mxu0 %v7494_v8 }
0x1d24   :  { %v2865_v16 = vpop.f32.mrb[88].mxu0 }
0x1d25   :  { %v2872_v5 = vadd.f32 %v2865_v16, %v2606_v28  ;;  %v6839_v7 = vpop.f32.mrb[89].mxu0 }
0x1d26   :  { %v2868_v19 = vpop.f32.mrb[90].mxu0 }
0x1d27   :  { %v2874_v18 = vadd.f32 %v2872_v5, %v7882_v62  ;;  %v2873_v24 = vadd.f32 %v2868_v19, %v2607_v45  ;;  %v6840_v25 = vpop.f32.mrb[91].mxu0  ;;  %v6253_v19 = vld [vmem:[%s8770_s6 + $0x1] ss:$0 sm:$0xff] }
0x1d29   :  { %v2875_v26 = vadd.f32 %v2873_v24, %v7887_v63  ;;  %v2880_v27 = vadd.f32 %v2879_v9, %v2874_v18 }
0x1d2b   :  { %v2882_v29 = vsel %vm79_vm0, %v2880_v27, 0.0  ;;  %v2881_v30 = vadd.f32 %v2879_v9, %v2875_v26 }
0x1d2c   :  { %2883 = vadd.xlane.f32.xlu1 %v2882_v29 }
0x1d2d   :  { %v2885_v39 = vsel %vm79_vm0, %v2881_v30, 0.0 }
0x1d2e   :  { %2886 = vadd.xlane.f32.xlu0 %v2885_v39 }
0x1db9   :  { %v2884_v42 = vpop.xlane.xlu1 %2883 }
0x1dba   :  { %v2888_v28 = vmul.f32 0.03125, %v2884_v42 }
0x1dbb   :  { %v2887_v46 = vpop.xlane.xlu0 %2886 }
0x1dbc   :  { %v2890_v47 = vsub.f32 %v2880_v27, %v2888_v28  ;;  %v2889_v48 = vmul.f32 0.03125, %v2887_v46 }
0x1dbe   :  { %v2891_v49 = vsub.f32 %v2881_v30, %v2889_v48  ;;  %v2892_v50 = vmul.f32 %v2890_v47, %v2890_v47 }
0x1dc0   :  { %v2894_v62 = vsel %vm79_vm0, %v2892_v50, 0.0  ;;  %v2893_v45 = vmul.f32 %v2891_v49, %v2891_v49 }
0x1dc1   :  { %2895 = vadd.xlane.f32.xlu0 %v2894_v62 }
0x1dc2   :  { %v2897_v63 = vsel %vm79_vm0, %v2893_v45, 0.0 }
0x1dc3   :  { %2898 = vadd.xlane.f32.xlu1 %v2897_v63 }
0x1e4e   :  { %v2896_v58 = vpop.xlane.xlu0 %2895 }
0x1e4f   :  { %v2900_v59 = vmul.f32 0.03125, %v2896_v58 }
0x1e50   :  { %v2899_v23 = vpop.xlane.xlu1 %2898 }
0x1e51   :  { %v2902_v2 = vadd.f32 1e-05, %v2900_v59  ;;  %v2901_v51 = vmul.f32 0.03125, %v2899_v23 }
0x1e53   :  { %7337 = vrsqrt.f32 %v2902_v2  ;;  %v2903_v52 = vadd.f32 1e-05, %v2901_v51 }
0x1e55   :  { %7339 = vrsqrt.f32 %v2903_v52 }
0x1e5d   :  { %v7338_v60 = vpop.eup %7337 }
0x1e5e   :  { %v2906_v57 = vmul.f32 %v7338_v60, %v2890_v47 }
0x1e5f   :  { %v7340_v61 = vpop.eup %7339 }
0x1e60   :  { %v2912_v3 = vmul.f32 %v2911_v54, %v2906_v57  ;;  %v2907_v0 = vmul.f32 %v7340_v61, %v2891_v49 }
0x1e62   :  { %v2913_v1 = vmul.f32 %v2911_v54, %v2907_v0  ;;  %v8145_v6 = vadd.f32 %v2917_v4, %v2912_v3 }
0x1e64   :  { %v8147_v56 = vadd.f32 %v2917_v4, %v2913_v1 }
0x1e66   :  { %v2920_v10 = vpack.c.bf16 %v8147_v56, %v8145_v6 }
0x1e68   :  { %6846 = vmatmul.mubr.msk.bf16.vlgmr.msra.gmra.mrb[76].mxu1 %vm79_vm0, %v2920_v10 }
0x1e69   :  { %6858 = vmatpush3.bf16.msra.mxu1 %v7211_v55  ;;  %6861 = vmatprep.mubr.msk.bf16.mxu1 %vm79_vm0, %v7922_v34  ;;  %v7214_v34 = vld [vmem:[%s8769_s5 + $0x28] sm:$0xff]  }
0x1e6a   :  { %6859 = vmatprep.subr.bf16.mxu1 %v7212_v11  ;;  %6852 = vmatpush3.bf16.msra.mxu0 %v7214_v34 }
0x1e6b   :  { %6865 = vmatprep.subr.bf16.mxu0 %v7494_v8 }
0x1e6d   :  { %6860 = vmatpush3.bf16.msra.mxu1 %v7212_v11 }
0x1e6e   :  { %6871 = vmatprep.subr.bf16.mxu1 %v7494_v8 }
0x1e70   :  { %6862 = vmatmul.mubr.msk.bf16.vlgmr.msra.gmra.mrb[80].mxu1 %vm79_vm0, %v7926_v36  ;;  %v6227_v36 = vld [vmem:[%s8772_s8 + $0x2] ss:$0 sm:$0xff] }
0x1e71   :  { %6873 = vmatprep.mubr.msk.bf16.mxu1 %vm7495_vm1, %v7494_v8 }
0x1f3b   :  { %v2976_v13 = vpop.f32.mrb[76].mxu1 }
0x1f3c   :  { %v2977_v14 = vadd.f32 %v6227_v36, %v2976_v13  ;;  %v6847_v38 = vpop.f32.mrb[77].mxu1 }
0x1f3d   :  { %v2979_v40 = vpop.f32.mrb[78].mxu1 }
0x1f3e   :  { %v2980_v41 = vadd.f32 %v6227_v36, %v2979_v40  ;;  %v6848_v15 = vpop.f32.mrb[79].mxu1  ;;  %v2983_v16 = vmax.f32 %v2977_v14, 0.0 }
0x1f40   :  { %v2984_v5 = vmax.f32 %v2980_v41, 0.0 }
0x1f42   :  { %v2985_v7 = vpack.c.bf16 %v2984_v5, %v2983_v16 }
0x1f43   :  { %v6863_v9 = vpop.f32.mrb[80].mxu1 }
0x1f44   :  { %6854 = vmatmul.mubr.msk.bf16.vlgmr.msra.gmra.mrb[92].mxu0 %vm79_vm0, %v2985_v7  ;;  %v3164_v18 = vpop.f32.mrb[81].mxu1  ;;  %v3173_v25 = vadd.f32 %v6863_v9, %v6253_v19 }
0x1f45   :  { %v6864_v24 = vpop.f32.mrb[82].mxu1  ;;  %6867 = vmatprep.mubr.msk.bf16.mxu0 %vm7495_vm1, %v7494_v8  ;;  %v3165_v29 = vadd.f32 %v6253_v19, %v3164_v18 }
0x1f46   :  { %v3176_v26 = vadd.f32 %v6864_v24, %v6253_v19  ;;  %v3167_v27 = vpop.f32.mrb[83].mxu1 }
0x1f47   :  { %v3168_v30 = vadd.f32 %v6253_v19, %v3167_v27 }
0x1f48   :  { %v8179_v39 = vpack.c.bf16 %v3176_v26, %v3173_v25 }
0x1f49   :  { %v8181_v42 = vpack.c.bf16 %v3168_v30, %v3165_v29 }
0x1f4a   :  { %3232 = vrot.lane.b32.xlu0 %v8179_v39, %s7496_s23 }
0x1f4b   :  { %3182 = vrot.lane.b32.xlu1 %v8181_v42, %s7496_s23 }
0x1fbc   :  { %v3233_v28 = vpop.permute.xlu0 %3232 }
0x1fbd   :  { %v3238_v46 = vsel %vm140_vm2, %v3233_v28, 0  ;;  %v3183_v47 = vpop.permute.xlu1 %3182 }
0x1fbe   :  { %v3188_v48 = vsel %vm140_vm2, %v3183_v47, 0  ;;  %6872 = vmatpush3.bf16.xpose.msra.mxu1 %v3238_v46 }
0x1fbf   :  { %6866 = vmatpush3.bf16.xpose.msra.mxu0 %v3188_v48  ;;  %6883 = vmatprep.subr.bf16.mxu1 %v7494_v8 }
0x1fc0   :  { %6877 = vmatprep.subr.bf16.mxu0 %v7494_v8 }
0x1fc5   :  { %6874 = vmatmul.mubr.msk.bf16.vlgmr.msra.gmra.mrb[84].mxu1 %vm140_vm2, %v8179_v39 }
0x1fc6   :  { %6868 = vmatmul.mubr.msk.bf16.vlgmr.msra.gmra.mrb[96].mxu0 %vm140_vm2, %v8181_v42  ;;  %6885 = vmatprep.mubr.msk.bf16.mxu1 %vm7495_vm1, %v7494_v8 }
0x1fc7   :  { %6879 = vmatprep.mubr.msk.bf16.mxu0 %vm7495_vm1, %v7494_v8 }
0x2017   :  { %v8199_v49 = vpop.f32.mrb[92].mxu0 }
0x2018   :  { %v6855_v50 = vpop.f32.mrb[93].mxu0 }
0x2019   :  { %v8201_v62 = vpop.f32.mrb[94].mxu0 }
0x201a   :  { %v6856_v45 = vpop.f32.mrb[95].mxu0 }
0x2098   :  { %v3274_v63 = vpop.f32.mrb[84].mxu1 }
0x2099   :  { %v3224_v53 = vpop.f32.mrb[96].mxu0  ;;  %v6875_v21 = vpop.f32.mrb[85].mxu1  ;;  %v3287_v55 = vsel %vm238_vm3, %v3274_v63, -inf }
0x209a   :  { %v3277_v58 = vpop.f32.mrb[86].mxu1  ;;  %3288 = vmax.xlane.f32.xlu1 %v3287_v55  ;;  %v6869_v59 = vpop.f32.mrb[97].mxu0  ;;  %v3281_v12 = vsel %vm238_vm3, %v3224_v53, -inf }
0x209b   :  { %v3227_v23 = vpop.f32.mrb[98].mxu0  ;;  %v6876_v2 = vpop.f32.mrb[87].mxu1  ;;  %v3290_v51 = vsel %vm238_vm3, %v3277_v58, -inf }
0x209c   :  { %3291 = vmax.xlane.f32.xlu0 %v3290_v51  ;;  %v6870_v52 = vpop.f32.mrb[99].mxu0  ;;  %v3284_v34 = vsel %vm238_vm3, %v3227_v23, -inf }
0x2127   :  { %v3289_v54 = vpop.xlane.xlu1 %3288 }
0x2128   :  { %v3295_v60 = vsub.f32 %v3274_v63, %v3289_v54 }
0x2129   :  { %v3292_v57 = vpop.xlane.xlu0 %3291 }
0x212a   :  { %v3301_v61 = vmul.f32 1.442695, %v3295_v60  ;;  %v3296_v3 = vsub.f32 %v3277_v58, %v3292_v57 }
0x212c   :  { %7341 = vpow2.f32 %v3301_v61  ;;  %v3303_v0 = vmul.f32 1.442695, %v3296_v3 }
0x212e   :  { %7343 = vpow2.f32 %v3303_v0 }
0x2136   :  { %v7342_v4 = vpop.eup %7341 }
0x2137   :  { %v3311_v1 = vsel %vm238_vm3, %v7342_v4, 0.0 }
0x2138   :  { %v7344_v10 = vpop.eup %7343  ;;  %3312 = vadd.xlane.f32.xlu0 %v3311_v1 }
0x2139   :  { %v3314_v11 = vsel %vm238_vm3, %v7344_v10, 0.0 }
0x213a   :  { %3315 = vadd.xlane.f32.xlu1 %v3314_v11 }
0x214b   :  { %3476 = vrot.lane.b32.xlu1 %v8179_v39, %s7498_s25 }
0x214e   :  { %3374 = vrot.lane.b32.xlu0 %v8179_v39, %s7497_s24 }
0x214f   :  { %3474 = vrot.lane.b32.xlu1 %v8179_v39, %s7499_s26 }
0x216d   :  { %3282 = vmax.xlane.f32.xlu0 %v3281_v12 }
0x2173   :  { %3285 = vmax.xlane.f32.xlu1 %v3284_v34 }
0x2184   :  { %3327 = vrot.lane.b32.xlu1 %v8181_v42, %s7497_s24 }
0x2188   :  { %3423 = vrot.lane.b32.xlu1 %v8181_v42, %s7499_s26 }
0x21c5   :  { %v3313_v36 = vpop.xlane.xlu0 %3312 }
0x21c6   :  { %7345 = vrcp.f32 %v3313_v36 }
0x21c7   :  { %v3316_v13 = vpop.xlane.xlu1 %3315 }
0x21c8   :  { %7347 = vrcp.f32 %v3316_v13 }
0x21c9   :  { %v3375_v14 = vpop.permute.xlu0 %3374 }
0x21ca   :  { %6884 = vmatpush3.bf16.msra.mxu1 %v3375_v14 }
0x21cb   :  { %6895 = vmatprep.subr.bf16.mxu1 %v7494_v8  ;;  %v3477_v16 = vpop.permute.xlu1 %3476 }
0x21cc   :  { %v3482_v7 = vsel %vm140_vm2, %v3477_v16, 0 }
0x21cf   :  { %v3475_v9 = vpop.permute.xlu1 %3474 }
0x21d0   :  { %v7346_v38 = vpop.eup %7345 }
0x21d1   :  { %v3323_v41 = vmul.f32 %v7346_v38, %v7342_v4 }
0x21d2   :  { %v7348_v40 = vpop.eup %7347 }
0x21d3   :  { %v3324_v15 = vmul.f32 %v7348_v40, %v7344_v10 }
0x21d5   :  { %v3326_v5 = vpack.c.bf16 %v3324_v15, %v3323_v41 }
0x21d7   :  { %6886 = vmatmul.mubr.msk.bf16.vlgmr.msra.gmra.mrb[88].mxu1 %vm238_vm3, %v3326_v5 }
0x21d8   :  { %6896 = vmatpush3.bf16.xpose.msra.mxu1 %v3482_v7  ;;  %6897 = vmatprep.mubr.msk.bf16.mxu1 %vm7495_vm1, %v7494_v8 }
0x21d9   :  { %6907 = vmatprep.subr.bf16.mxu1 %v7494_v8 }
0x21df   :  { %6898 = vmatmul.mubr.msk.bf16.vlgmr.msra.gmra.mrb[92].mxu1 %vm140_vm2, %v3475_v9 }
0x21e0   :  { %6909 = vmatprep.mubr.msk.bf16.mxu1 %vm7495_vm1, %v7494_v8 }
0x21fa   :  { %v3283_v19 = vpop.xlane.xlu0 %3282 }
0x21fb   :  { %v3293_v18 = vsub.f32 %v3224_v53, %v3283_v19 }
0x21fd   :  { %v3297_v24 = vmul.f32 1.442695, %v3293_v18 }
0x21ff   :  { %7349 = vpow2.f32 %v3297_v24 }
0x2200   :  { %v3286_v25 = vpop.xlane.xlu1 %3285 }
0x2201   :  { %v3294_v26 = vsub.f32 %v3227_v23, %v3286_v25 }
0x2203   :  { %v3299_v27 = vmul.f32 1.442695, %v3294_v26 }
0x2204   :  { %v3328_v29 = vpop.permute.xlu1 %3327 }
0x2205   :  { %7351 = vpow2.f32 %v3299_v27  ;;  %6878 = vmatpush3.bf16.msra.mxu0 %v3328_v29 }
0x2206   :  { %6889 = vmatprep.subr.bf16.mxu0 %v7494_v8 }
0x2208   :  { %v3424_v0 = vpop.permute.xlu1 %3423 }
0x2209   :  { %v7350_v30 = vpop.eup %7349 }
0x220a   :  { %v3305_v28 = vsel %vm238_vm3, %v7350_v30, 0.0 }
0x220b   :  { %3306 = vadd.xlane.f32.xlu0 %v3305_v28 }
0x220f   :  { %v7352_v46 = vpop.eup %7351 }
0x2210   :  { %v3308_v47 = vsel %vm238_vm3, %v7352_v46, 0.0 }
0x2211   :  { %3309 = vadd.xlane.f32.xlu0 %v3308_v47 }
0x2227   :  { %3425 = vrot.lane.b32.xlu0 %v8181_v42, %s7498_s25 }
0x2298   :  { %v3307_v48 = vpop.xlane.xlu0 %3306 }
0x2299   :  { %7353 = vrcp.f32 %v3307_v48 }
0x229e   :  { %v3310_v50 = vpop.xlane.xlu0 %3309 }
0x229f   :  { %7355 = vrcp.f32 %v3310_v50 }
0x22a2   :  { %v3426_v58 = vpop.permute.xlu0 %3425 }
0x22a3   :  { %v7354_v45 = vpop.eup %7353  ;;  %v3431_v54 = vsel %vm140_vm2, %v3426_v58, 0 }
0x22a4   :  { %v3321_v53 = vmul.f32 %v7354_v45, %v7350_v30 }
0x22a9   :  { %v7356_v63 = vpop.eup %7355 }
0x22aa   :  { %v3322_v21 = vmul.f32 %v7356_v63, %v7352_v46  ;;  %v8233_v55 = vpop.f32.mrb[88].mxu1 }
0x22ab   :  { %v6887_v59 = vpop.f32.mrb[89].mxu1 }
0x22ac   :  { %v8235_v23 = vpop.f32.mrb[90].mxu1  ;;  %v3325_v2 = vpack.c.bf16 %v3322_v21, %v3321_v53 }
0x22ad   :  { %v3422_v51 = vpack.c.bf16 %v8235_v23, %v8233_v55  ;;  %v6888_v52 = vpop.f32.mrb[91].mxu1 }
0x22ae   :  { %6880 = vmatmul.mubr.msk.bf16.vlgmr.msra.gmra.mrb[100].mxu0 %vm238_vm3, %v3325_v2 }
0x22af   :  { %6890 = vmatpush3.bf16.xpose.msra.mxu0 %v3431_v54  ;;  %6891 = vmatprep.mubr.msk.bf16.mxu0 %vm7495_vm1, %v7494_v8 }
0x22b0   :  { %6901 = vmatprep.subr.bf16.mxu0 %v7494_v8 }
0x22b2   :  { %v3518_v60 = vpop.f32.mrb[92].mxu1 }
0x22b3   :  { %v6899_v57 = vpop.f32.mrb[93].mxu1  ;;  %v3531_v61 = vsel %vm238_vm3, %v3518_v60, -inf }
0x22b4   :  { %3532 = vmax.xlane.f32.xlu1 %v3531_v61  ;;  %v3521_v3 = vpop.f32.mrb[94].mxu1 }
0x22b5   :  { %v6900_v4 = vpop.f32.mrb[95].mxu1  ;;  %v3534_v1 = vsel %vm238_vm3, %v3521_v3, -inf }
0x22b6   :  { %3535 = vmax.xlane.f32.xlu0 %v3534_v1  ;;  %6892 = vmatmul.mubr.msk.bf16.vlgmr.msra.gmra.mrb[104].mxu0 %vm140_vm2, %v3424_v0 }
0x22b7   :  { %6903 = vmatprep.mubr.msk.bf16.mxu0 %vm7495_vm1, %v7494_v8 }
0x2341   :  { %v3533_v10 = vpop.xlane.xlu1 %3532 }
0x2342   :  { %v3539_v11 = vsub.f32 %v3518_v60, %v3533_v10 }
0x2343   :  { %v3536_v12 = vpop.xlane.xlu0 %3535 }
0x2344   :  { %v3545_v34 = vmul.f32 1.442695, %v3539_v11  ;;  %v3540_v36 = vsub.f32 %v3521_v3, %v3536_v12 }
0x2346   :  { %7357 = vpow2.f32 %v3545_v34  ;;  %v3547_v13 = vmul.f32 1.442695, %v3540_v36 }
0x2348   :  { %7359 = vpow2.f32 %v3547_v13 }
0x2350   :  { %v7358_v14 = vpop.eup %7357 }
0x2351   :  { %v3555_v38 = vsel %vm238_vm3, %v7358_v14, 0.0 }
0x2352   :  { %v7360_v40 = vpop.eup %7359  ;;  %3556 = vadd.xlane.f32.xlu0 %v3555_v38 }
0x2353   :  { %v3558_v41 = vsel %vm238_vm3, %v7360_v40, 0.0 }
0x2354   :  { %3559 = vadd.xlane.f32.xlu1 %v3558_v41 }
0x2365   :  { %3785 = vrot.lane.b32.xlu1 %v8181_v42, %s7500_s27 }
0x2368   :  { %3618 = vrot.lane.b32.xlu0 %v8179_v39, %s7502_s29 }
0x2369   :  { %3783 = vrot.lane.b32.xlu1 %v8181_v42, %s7501_s28 }
0x236c   :  { %3836 = vrot.lane.b32.xlu0 %v8179_v39, %s7500_s27 }
0x236d   :  { %3834 = vrot.lane.b32.xlu1 %v8179_v39, %s7501_s28 }
0x2381   :  { %v8261_v15 = vpop.f32.mrb[100].mxu0 }
0x2382   :  { %v6881_v16 = vpop.f32.mrb[101].mxu0 }
0x2383   :  { %v8263_v5 = vpop.f32.mrb[102].mxu0 }
0x2384   :  { %v3421_v7 = vpack.c.bf16 %v8263_v5, %v8261_v15  ;;  %v6882_v9 = vpop.f32.mrb[103].mxu0 }
0x2389   :  { %v3467_v19 = vpop.f32.mrb[104].mxu0 }
0x238a   :  { %v6893_v18 = vpop.f32.mrb[105].mxu0  ;;  %v3525_v24 = vsel %vm238_vm3, %v3467_v19, -inf }
0x238b   :  { %v3470_v25 = vpop.f32.mrb[106].mxu0  ;;  %3526 = vmax.xlane.f32.xlu0 %v3525_v24 }
0x238c   :  { %v6894_v26 = vpop.f32.mrb[107].mxu0  ;;  %v3528_v27 = vsel %vm238_vm3, %v3470_v25, -inf }
0x2391   :  { %3529 = vmax.xlane.f32.xlu1 %v3528_v27 }
0x23a2   :  { %3571 = vrot.lane.b32.xlu1 %v8181_v42, %s7502_s29 }
0x23df   :  { %v3557_v29 = vpop.xlane.xlu0 %3556 }
0x23e0   :  { %7361 = vrcp.f32 %v3557_v29 }
0x23e1   :  { %v3560_v30 = vpop.xlane.xlu1 %3559 }
0x23e2   :  { %7363 = vrcp.f32 %v3560_v30 }
0x23e3   :  { %v3619_v28 = vpop.permute.xlu0 %3618 }
0x23e4   :  { %6908 = vmatpush3.bf16.msra.mxu1 %v3619_v28 }
0x23e5   :  { %6925 = vmatprep.subr.bf16.mxu1 %v7494_v8  ;;  %v3786_v45 = vpop.permute.xlu1 %3785 }
0x23e6   :  { %v3791_v53 = vsel %vm140_vm2, %v3786_v45, 0 }
0x23e7   :  { %v3837_v21 = vpop.permute.xlu0 %3836 }
0x23e8   :  { %v3842_v59 = vsel %vm140_vm2, %v3837_v21, 0  ;;  %v6239_v21 = vld [vmem:[%s8767_s3 + $0x10] sm:$0xf] }
0x23e9   :  { %v3784_v58 = vpop.permute.xlu1 %3783 }
0x23ea   :  { %v7362_v46 = vpop.eup %7361 }
0x23eb   :  { %v3567_v48 = vmul.f32 %v7362_v46, %v7358_v14 }
0x23ec   :  { %v7364_v47 = vpop.eup %7363 }
0x23ed   :  { %v3568_v50 = vmul.f32 %v7364_v47, %v7360_v40  ;;  %v3835_v2 = vpop.permute.xlu1 %3834 }
0x23ef   :  { %v3570_v63 = vpack.c.bf16 %v3568_v50, %v3567_v48 }
0x23f1   :  { %6910 = vmatmul.mubr.msk.bf16.vlgmr.msra.gmra.mrb[96].mxu1 %vm238_vm3, %v3570_v63  ;;  %v6240_v63 = vld [vmem:[%s8767_s3 + $0x14] sm:$0xf] }
0x23f2   :  { %6926 = vmatpush3.bf16.xpose.msra.mxu1 %v3791_v53  ;;  %6927 = vmatprep.mubr.msk.bf16.mxu1 %vm7495_vm1, %v7494_v8  ;;  %v3674_v53 = vsel %vm631_vm4, %v6240_v63, 0 }
0x23f3   :  { %6931 = vmatprep.subr.bf16.mxu1 %v7494_v8 }
0x23f9   :  { %6928 = vmatmul.mubr.msk.bf16.vlgmr.msra.gmra.mrb[100].mxu1 %vm140_vm2, %v3784_v58 }
0x23fa   :  { %6932 = vmatpush3.bf16.xpose.msra.mxu1 %v3842_v59  ;;  %6933 = vmatprep.mubr.msk.bf16.mxu1 %vm7495_vm1, %v7494_v8 }
0x23fb   :  { %6943 = vmatprep.subr.bf16.mxu1 %v7494_v8 }
0x2401   :  { %6934 = vmatmul.mubr.msk.bf16.vlgmr.msra.gmra.mrb[104].mxu1 %vm140_vm2, %v3835_v2 }
0x2402   :  { %6945 = vmatprep.mubr.msk.bf16.mxu1 %vm7495_vm1, %v7494_v8 }
0x2418   :  { %v3527_v52 = vpop.xlane.xlu0 %3526 }
0x2419   :  { %v3537_v54 = vsub.f32 %v3467_v19, %v3527_v52 }
0x241b   :  { %v3541_v60 = vmul.f32 1.442695, %v3537_v54 }
0x241d   :  { %7365 = vpow2.f32 %v3541_v60 }
0x241e   :  { %v3530_v57 = vpop.xlane.xlu1 %3529 }
0x241f   :  { %v3538_v61 = vsub.f32 %v3470_v25, %v3530_v57 }
0x2421   :  { %v3543_v3 = vmul.f32 1.442695, %v3538_v61 }
0x2422   :  { %v3572_v0 = vpop.permute.xlu1 %3571 }
0x2423   :  { %7367 = vpow2.f32 %v3543_v3  ;;  %6902 = vmatpush3.bf16.msra.mxu0 %v3572_v0 }
0x2424   :  { %7181 = vmatprep.subr.msk.bf16.mxu0 %vm631_vm4, %v6240_v63 }
0x2427   :  { %v7366_v4 = vpop.eup %7365 }
0x2428   :  { %v3549_v1 = vsel %vm238_vm3, %v7366_v4, 0.0 }
0x2429   :  { %3550 = vadd.xlane.f32.xlu0 %v3549_v1 }
0x242d   :  { %v7368_v10 = vpop.eup %7367 }
0x242e   :  { %v3552_v11 = vsel %vm238_vm3, %v7368_v10, 0.0 }
0x242f   :  { %3553 = vadd.xlane.f32.xlu0 %v3552_v11 }
0x24b6   :  { %v3551_v12 = vpop.xlane.xlu0 %3550 }
0x24b7   :  { %7369 = vrcp.f32 %v3551_v12 }
0x24bc   :  { %v3554_v34 = vpop.xlane.xlu0 %3553 }
0x24bd   :  { %7371 = vrcp.f32 %v3554_v34 }
0x24c1   :  { %v7370_v13 = vpop.eup %7369 }
0x24c2   :  { %v3565_v9 = vmul.f32 %v7370_v13, %v7366_v4 }
0x24c4   :  { %v8287_v36 = vpop.f32.mrb[96].mxu1 }
0x24c5   :  { %v6911_v14 = vpop.f32.mrb[97].mxu1 }
0x24c6   :  { %v8289_v38 = vpop.f32.mrb[98].mxu1 }
0x24c7   :  { %v7372_v40 = vpop.eup %7371  ;;  %v3666_v41 = vpack.c.bf16 %v8289_v38, %v8287_v36  ;;  %v6912_v16 = vpop.f32.mrb[99].mxu1 }
0x24c8   :  { %v3566_v19 = vmul.f32 %v7372_v40, %v7368_v10 }
0x24ca   :  { %v3569_v18 = vpack.c.bf16 %v3566_v19, %v3565_v9 }
0x24cc   :  { %6904 = vmatmul.mubr.msk.bf16.vlgmr.msra.gmra.mrb[108].mxu0 %vm238_vm3, %v3569_v18  ;;  %v3827_v24 = vpop.f32.mrb[100].mxu1 }
0x24cd   :  { %v6929_v25 = vpop.f32.mrb[101].mxu1  ;;  %v3885_v26 = vsel %vm238_vm3, %v3827_v24, -inf  ;;  %6914 = vmatpush3.bf16.msra.mxu0 %v3674_v53 }
0x24ce   :  { %v3830_v27 = vpop.f32.mrb[102].mxu1  ;;  %3886 = vmax.xlane.f32.xlu0 %v3885_v26  ;;  %7182 = vmatprep.subr.msk.bf16.mxu0 %vm631_vm4, %v6239_v21  ;;  %v3732_v25 = vsel %vm631_vm4, %v6239_v21, 0  ;;  %v6241_v21 = vld [vmem:[%s8767_s3 + $0x18] sm:$0xf] }
0x24cf   :  { %v6930_v29 = vpop.f32.mrb[103].mxu1  ;;  %v3888_v30 = vsel %vm238_vm3, %v3830_v27, -inf }
0x24d2   :  { %3889 = vmax.xlane.f32.xlu0 %v3888_v30 }
0x24d4   :  { %v3878_v28 = vpop.f32.mrb[104].mxu1 }
0x24d5   :  { %v6935_v46 = vpop.f32.mrb[105].mxu1  ;;  %v3891_v47 = vsel %vm238_vm3, %v3878_v28, -inf }
0x24d6   :  { %v3881_v48 = vpop.f32.mrb[106].mxu1  ;;  %3892 = vmax.xlane.f32.xlu0 %v3891_v47 }
0x24d7   :  { %v6936_v50 = vpop.f32.mrb[107].mxu1  ;;  %v3894_v45 = vsel %vm238_vm3, %v3881_v48, -inf }
0x24da   :  { %3895 = vmax.xlane.f32.xlu0 %v3894_v45 }
0x255b   :  { %v3887_v58 = vpop.xlane.xlu0 %3886 }
0x255c   :  { %v3897_v59 = vsub.f32 %v3827_v24, %v3887_v58  ;;  %v4034_v58 = vsel %vm631_vm4, %v6241_v21, 0 }
0x255e   :  { %v3901_v2 = vmul.f32 1.442695, %v3897_v59 }
0x255f   :  { %v3890_v52 = vpop.xlane.xlu0 %3889 }
0x2560   :  { %7373 = vpow2.f32 %v3901_v2  ;;  %v3898_v54 = vsub.f32 %v3830_v27, %v3890_v52 }
0x2562   :  { %v3903_v60 = vmul.f32 1.442695, %v3898_v54 }
0x2563   :  { %v3893_v4 = vpop.xlane.xlu0 %3892 }
0x2564   :  { %7375 = vpow2.f32 %v3903_v60  ;;  %v3899_v1 = vsub.f32 %v3878_v28, %v3893_v4 }
0x2566   :  { %v3905_v11 = vmul.f32 1.442695, %v3899_v1 }
0x2567   :  { %v3896_v10 = vpop.xlane.xlu0 %3895 }
0x2568   :  { %v3900_v12 = vsub.f32 %v3881_v48, %v3896_v10  ;;  %7377 = vpow2.f32 %v3905_v11 }
0x256a   :  { %v7374_v57 = vpop.eup %7373  ;;  %v3907_v34 = vmul.f32 1.442695, %v3900_v12 }
0x256b   :  { %v3909_v61 = vsel %vm238_vm3, %v7374_v57, 0.0 }
0x256c   :  { %3910 = vadd.xlane.f32.xlu0 %v3909_v61  ;;  %7379 = vpow2.f32 %v3907_v34 }
0x256e   :  { %v7376_v3 = vpop.eup %7375 }
0x256f   :  { %v3912_v0 = vsel %vm238_vm3, %v7376_v3, 0.0 }
0x2570   :  { %3913 = vadd.xlane.f32.xlu1 %v3912_v0 }
0x2572   :  { %v7378_v13 = vpop.eup %7377 }
0x2573   :  { %v3915_v16 = vsel %vm238_vm3, %v7378_v13, 0.0 }
0x2576   :  { %v7380_v9 = vpop.eup %7379 }
0x2577   :  { %v3918_v26 = vsel %vm238_vm3, %v7380_v9, 0.0 }
0x2581   :  { %4091 = vrot.lane.b32.xlu1 %v8181_v42, %s7504_s14 }
0x2582   :  { %3931 = vrot.lane.b32.xlu0 %v8181_v42, %s7503_s30 }
0x259f   :  { %v3611_v14 = vpop.f32.mrb[108].mxu0 }
0x25a0   :  { %v6905_v40 = vpop.f32.mrb[109].mxu0 }
0x25a1   :  { %3916 = vadd.xlane.f32.xlu0 %v3915_v16  ;;  %v3614_v19 = vpop.f32.mrb[110].mxu0 }
0x25a2   :  { %v3665_v18 = vpack.c.bf16 %v3614_v19, %v3611_v14  ;;  %v6906_v24 = vpop.f32.mrb[111].mxu0 }
0x25a4   :  { %6915 = vmatprep.mubr.msk.bf16.mxu0 %vm140_vm2, %v3665_v18 }
0x25a5   :  { %3919 = vadd.xlane.f32.xlu0 %v3918_v26  ;;  %6916 = vmatmul.mubr.msk.bf16.vlgmr.msra.gmra.mrb[112].mxu0 %vm140_vm2, %v3666_v41 }
0x25a6   :  { %6921 = vmatprep.mubr.msk.bf16.mxu0 %vm140_vm2, %v3421_v7  ;;  %6920 = vmatpush3.bf16.msra.mxu0 %v3732_v25 }
0x25a7   :  { %6937 = vmatprep.subr.bf16.mxu0 %v7494_v8 }
0x25b1   :  { %6922 = vmatmul.mubr.msk.bf16.vlgmr.msra.gmra.mrb[112].mxu0 %vm140_vm2, %v3422_v51 }
0x25b2   :  { %6939 = vmatprep.mubr.msk.bf16.mxu0 %vm7495_vm1, %v7494_v8 }
0x25bb   :  { %3978 = vrot.lane.b32.xlu0 %v8179_v39, %s7503_s30 }
0x25bf   :  { %4142 = vrot.lane.b32.xlu0 %v8179_v39, %s7504_s14 }
0x25c3   :  { %4089 = vrot.lane.b32.xlu0 %v8181_v42, %s7505_s15 }
0x25c7   :  { %4140 = vrot.lane.b32.xlu0 %v8179_v39, %s7505_s15 }
0x25f9   :  { %v3911_v15 = vpop.xlane.xlu0 %3910 }
0x25fa   :  { %7381 = vrcp.f32 %v3911_v15 }
0x25fd   :  { %v3932_v55 = vpop.permute.xlu0 %3931  ;;  %v3914_v23 = vpop.xlane.xlu1 %3913 }
0x25fe   :  { %7383 = vrcp.f32 %v3914_v23  ;;  %6938 = vmatpush3.bf16.msra.mxu0 %v3932_v55 }
0x25ff   :  { %7183 = vmatprep.subr.msk.bf16.mxu0 %vm631_vm4, %v6241_v21 }
0x2601   :  { %v4092_v48 = vpop.permute.xlu1 %4091 }
0x2602   :  { %v4097_v45 = vsel %vm140_vm2, %v4092_v48, 0 }
0x2604   :  { %v7382_v51 = vpop.eup %7381 }
0x2605   :  { %v3925_v7 = vmul.f32 %v7382_v51, %v7374_v57 }
0x2608   :  { %v7384_v5 = vpop.eup %7383 }
0x2609   :  { %v3926_v36 = vmul.f32 %v7384_v5, %v7376_v3 }
0x260b   :  { %v3929_v38 = vpack.c.bf16 %v3926_v36, %v3925_v7 }
0x260d   :  { %6940 = vmatmul.mubr.msk.bf16.vlgmr.msra.gmra.mrb[116].mxu0 %vm238_vm3, %v3929_v38 }
0x260e   :  { %6950 = vmatpush3.bf16.msra.mxu0 %v4034_v58 }
0x260f   :  { %6961 = vmatprep.subr.bf16.mxu0 %v7494_v8 }
0x262e   :  { %v3917_v41 = vpop.xlane.xlu0 %3916 }
0x262f   :  { %7385 = vrcp.f32 %v3917_v41 }
0x2632   :  { %v3920_v27 = vpop.xlane.xlu0 %3919 }
0x2633   :  { %7387 = vrcp.f32 %v3920_v27 }
0x2636   :  { %v3979_v29 = vpop.permute.xlu0 %3978 }
0x2637   :  { %6944 = vmatpush3.bf16.msra.mxu1 %v3979_v29 }
0x2638   :  { %6955 = vmatprep.subr.bf16.mxu1 %v7494_v8 }
0x2639   :  { %v7386_v30 = vpop.eup %7385 }
0x263a   :  { %v3927_v46 = vmul.f32 %v7386_v30, %v7378_v13  ;;  %v4143_v63 = vpop.permute.xlu0 %4142 }
0x263b   :  { %v4148_v1 = vsel %vm140_vm2, %v4143_v63, 0 }
0x263d   :  { %v7388_v28 = vpop.eup %7387 }
0x263e   :  { %v3928_v47 = vmul.f32 %v7388_v28, %v7380_v9  ;;  %v4090_v53 = vpop.permute.xlu0 %4089 }
0x2640   :  { %v3930_v50 = vpack.c.bf16 %v3928_v47, %v3927_v46 }
0x2642   :  { %6946 = vmatmul.mubr.msk.bf16.vlgmr.msra.gmra.mrb[108].mxu1 %vm238_vm3, %v3930_v50  ;;  %v4141_v40 = vpop.permute.xlu0 %4140 }
0x2643   :  { %6956 = vmatpush3.bf16.xpose.msra.mxu1 %v4097_v45  ;;  %6957 = vmatprep.mubr.msk.bf16.mxu1 %vm7495_vm1, %v7494_v8 }
0x2644   :  { %6967 = vmatprep.subr.bf16.mxu1 %v7494_v8 }
0x264a   :  { %6958 = vmatmul.mubr.msk.bf16.vlgmr.msra.gmra.mrb[112].mxu1 %vm140_vm2, %v4090_v53 }
0x264b   :  { %6969 = vmatprep.mubr.msk.bf16.mxu1 %vm7495_vm1, %v7494_v8 }
0x26e0   :  { %v3971_v59 = vpop.f32.mrb[116].mxu0 }
0x26e1   :  { %v6941_v2 = vpop.f32.mrb[117].mxu0 }
0x26e2   :  { %v3974_v52 = vpop.f32.mrb[118].mxu0 }
0x26e3   :  { %v4025_v54 = vpack.c.bf16 %v3974_v52, %v3971_v59  ;;  %v6942_v60 = vpop.f32.mrb[119].mxu0 }
0x26e5   :  { %6951 = vmatprep.mubr.msk.bf16.mxu0 %vm140_vm2, %v4025_v54 }
0x2715   :  { %v4018_v57 = vpop.f32.mrb[108].mxu1 }
0x2716   :  { %v6947_v61 = vpop.f32.mrb[109].mxu1 }
0x2717   :  { %v4021_v3 = vpop.f32.mrb[110].mxu1 }
0x2718   :  { %v4026_v0 = vpack.c.bf16 %v4021_v3, %v4018_v57  ;;  %v6948_v4 = vpop.f32.mrb[111].mxu1 }
0x271a   :  { %6952 = vmatmul.mubr.msk.bf16.vlgmr.msra.gmra.mrb[112].mxu0 %vm140_vm2, %v4026_v0 }
0x271b   :  { %6962 = vmatpush3.bf16.xpose.msra.mxu0 %v4148_v1  ;;  %6963 = vmatprep.mubr.msk.bf16.mxu0 %vm7495_vm1, %v7494_v8 }
0x271c   :  { %6973 = vmatprep.subr.bf16.mxu0 %v7494_v8 }
0x271d   :  { %v4133_v10 = vpop.f32.mrb[112].mxu1 }
0x271e   :  { %v6959_v11 = vpop.f32.mrb[113].mxu1  ;;  %v4191_v12 = vsel %vm238_vm3, %v4133_v10, -inf }
0x271f   :  { %4192 = vmax.xlane.f32.xlu0 %v4191_v12  ;;  %v4136_v34 = vpop.f32.mrb[114].mxu1 }
0x2720   :  { %v6960_v13 = vpop.f32.mrb[115].mxu1  ;;  %v4194_v14 = vsel %vm238_vm3, %v4136_v34, -inf }
0x2721   :  { %4195 = vmax.xlane.f32.xlu1 %v4194_v14 }
0x2722   :  { %6964 = vmatmul.mubr.msk.bf16.vlgmr.msra.gmra.mrb[120].mxu0 %vm140_vm2, %v4141_v40 }
0x2723   :  { %6975 = vmatprep.mubr.msk.bf16.mxu0 %vm7495_vm1, %v7494_v8 }
0x27ac   :  { %v4193_v25 = vpop.xlane.xlu0 %4192 }
0x27ad   :  { %v4203_v26 = vsub.f32 %v4133_v10, %v4193_v25  ;;  %v6242_v10 = vld [vmem:[%s8767_s3 + $0x1c] sm:$0xf]  ;;  %v8392_v25 = vld [vmem:[%s8771_s7 + $0x8] sm:$0x3f] }
0x27ae   :  { %v4196_v16 = vpop.xlane.xlu1 %4195  ;;  %v4340_v11 = vsel %vm631_vm4, %v6242_v10, 0 }
0x27af   :  { %v4204_v9 = vsub.f32 %v4136_v34, %v4196_v16  ;;  %v4207_v15 = vmul.f32 1.442695, %v4203_v26 }
0x27b1   :  { %v4209_v19 = vmul.f32 1.442695, %v4204_v9 }
0x27b3   :  { %7389 = vpow2.f32 %v4209_v19 }
0x27b4   :  { %7391 = vpow2.f32 %v4207_v15  ;;  %v4402_v15 = vrot.slane %v8392_v25, %v7798_v44 }
0x27bd   :  { %v7390_v18 = vpop.eup %7389 }
0x27be   :  { %v4218_v24 = vsel %vm238_vm3, %v7390_v18, 0.0  ;;  %v7392_v38 = vpop.eup %7391 }
0x27bf   :  { %4219 = vadd.xlane.f32.xlu1 %v4218_v24  ;;  %v4215_v41 = vsel %vm238_vm3, %v7392_v38, 0.0 }
0x27f5   :  { %v4184_v55 = vpop.f32.mrb[120].mxu0 }
0x27f6   :  { %v6965_v23 = vpop.f32.mrb[121].mxu0  ;;  %v4197_v51 = vsel %vm238_vm3, %v4184_v55, -inf }
0x27f7   :  { %v4187_v5 = vpop.f32.mrb[122].mxu0  ;;  %4198 = vmax.xlane.f32.xlu0 %v4197_v51 }
0x27f8   :  { %v6966_v7 = vpop.f32.mrb[123].mxu0  ;;  %v4200_v36 = vsel %vm238_vm3, %v4187_v5, -inf }
0x27fb   :  { %4201 = vmax.xlane.f32.xlu0 %v4200_v36 }
0x27ff   :  { %4216 = vadd.xlane.f32.xlu0 %v4215_v41 }
0x284c   :  { %v4220_v21 = vpop.xlane.xlu1 %4219 }
0x2884   :  { %v4199_v27 = vpop.xlane.xlu0 %4198 }
0x2885   :  { %v4205_v29 = vsub.f32 %v4184_v55, %v4199_v27 }
0x2887   :  { %v4211_v30 = vmul.f32 1.442695, %v4205_v29 }
0x2888   :  { %v4202_v28 = vpop.xlane.xlu0 %4201 }
0x2889   :  { %7393 = vpow2.f32 %v4211_v30  ;;  %v4206_v46 = vsub.f32 %v4187_v5, %v4202_v28 }
0x288b   :  { %v4213_v47 = vmul.f32 1.442695, %v4206_v46 }
0x288c   :  { %v4217_v53 = vpop.xlane.xlu0 %4216 }
0x288d   :  { %7395 = vpow2.f32 %v4213_v47 }
0x288e   :  { %7397 = vrcp.f32 %v4217_v53 }
0x288f   :  { %7399 = vrcp.f32 %v4220_v21 }
0x2893   :  { %v7394_v48 = vpop.eup %7393 }
0x2894   :  { %v4221_v50 = vsel %vm238_vm3, %v7394_v48, 0.0 }
0x2895   :  { %4222 = vadd.xlane.f32.xlu0 %v4221_v50 }
0x2897   :  { %v7396_v45 = vpop.eup %7395 }
0x2898   :  { %v4224_v63 = vsel %vm238_vm3, %v7396_v45, 0.0  ;;  %v7398_v58 = vpop.eup %7397 }
0x2899   :  { %4225 = vadd.xlane.f32.xlu1 %v4224_v63  ;;  %v7400_v2 = vpop.eup %7399  ;;  %v4231_v52 = vmul.f32 %v7398_v58, %v7392_v38 }
0x289a   :  { %v4232_v54 = vmul.f32 %v7400_v2, %v7390_v18 }
0x289c   :  { %v4235_v61 = vpack.c.bf16 %v4232_v54, %v4231_v52 }
0x28aa   :  { %4284 = vrot.lane.b32.xlu1 %v8179_v39, %s7506_s18 }
0x28ab   :  { %4237 = vrot.lane.b32.xlu0 %v8181_v42, %s7506_s18 }
0x2922   :  { %v4223_v59 = vpop.xlane.xlu0 %4222 }
0x2923   :  { %7401 = vrcp.f32 %v4223_v59 }
0x2926   :  { %v4238_v60 = vpop.permute.xlu0 %4237  ;;  %v4226_v57 = vpop.xlane.xlu1 %4225 }
0x2927   :  { %7403 = vrcp.f32 %v4226_v57  ;;  %6968 = vmatpush3.bf16.msra.mxu1 %v4238_v60 }
0x292a   :  { %6970 = vmatmul.mubr.msk.bf16.vlgmr.msra.gmra.mrb[116].mxu1 %vm238_vm3, %v4235_v61  ;;  %v4285_v39 = vpop.permute.xlu1 %4284 }
0x292b   :  { %6974 = vmatpush3.bf16.msra.mxu0 %v4285_v39 }
0x292c   :  { %7184 = vmatprep.subr.msk.bf16.mxu0 %vm631_vm4, %v6242_v10 }
0x292d   :  { %v7402_v42 = vpop.eup %7401 }
0x292e   :  { %v4233_v0 = vmul.f32 %v7402_v42, %v7394_v48 }
0x2931   :  { %v7404_v3 = vpop.eup %7403 }
0x2932   :  { %v4234_v4 = vmul.f32 %v7404_v3, %v7396_v45 }
0x2934   :  { %v4236_v1 = vpack.c.bf16 %v4234_v4, %v4233_v0  ;;  %v7215_v0 = vld [vmem:[%s8768_s4 + $0x10] sm:$0xff]   ;;  %v7216_v4 = vld [vmem:[%s8768_s4 + $0x18] sm:$0xff]  }
0x2935   :  { %6985 = vmatprep.subr.bf16.mxu1 %v7215_v0 }
0x2936   :  { %6976 = vmatmul.mubr.msk.bf16.vlgmr.msra.gmra.mrb[124].mxu0 %vm238_vm3, %v4236_v1  ;;  %6986 = vmatpush3.bf16.msra.mxu1 %v7215_v0 }
0x2937   :  { %6980 = vmatpush3.bf16.msra.mxu0 %v4340_v11  ;;  %6987 = vmatprep.subr.bf16.mxu1 %v7216_v4 }
0x2938   :  { %7001 = vmatprep.subr.bf16.mxu0 %v7494_v8 }
0x293a   :  { %6988 = vmatpush3.bf16.msra.mxu1 %v7216_v4 }
0x29fd   :  { %v4277_v12 = vpop.f32.mrb[116].mxu1 }
0x29fe   :  { %v6971_v34 = vpop.f32.mrb[117].mxu1 }
0x29ff   :  { %v4280_v13 = vpop.f32.mrb[118].mxu1 }
0x2a00   :  { %v4331_v14 = vpack.c.bf16 %v4280_v13, %v4277_v12  ;;  %v6972_v40 = vpop.f32.mrb[119].mxu1 }
0x2a02   :  { %6981 = vmatprep.mubr.msk.bf16.mxu0 %vm140_vm2, %v4331_v14 }
0x2a09   :  { %v4324_v16 = vpop.f32.mrb[124].mxu0 }
0x2a0a   :  { %v6977_v9 = vpop.f32.mrb[125].mxu0 }
0x2a0b   :  { %v4327_v19 = vpop.f32.mrb[126].mxu0 }
0x2a0c   :  { %v4332_v18 = vpack.c.bf16 %v4327_v19, %v4324_v16  ;;  %v6978_v24 = vpop.f32.mrb[127].mxu0 }
0x2a0d   :  { %v4462_v24 = vrot.slane %v8392_v25, %v7834_v35 }
0x2a0e   :  { %6982 = vmatmul.mubr.msk.bf16.vlgmr.msra.gmra.mrb[112].mxu0 %vm140_vm2, %v4332_v18 }
0x2a0f   :  { %7005 = vmatprep.mubr.msk.bf16.mxu0 %vm7495_vm1, %v7494_v8 }
0x2ae1   :  { %v6983_v26 = vpop.f32.mrb[112].mxu0 }
0x2ae2   :  { %v4376_v55 = vpop.f32.mrb[113].mxu0  ;;  %v4397_v36 = vadd.f32 %v6983_v26, %v7918_v43 }
0x2ae3   :  { %v4395_v23 = vadd.f32 %v4376_v55, %v7914_v32  ;;  %v6984_v51 = vpop.f32.mrb[114].mxu0 }
0x2ae4   :  { %v4398_v5 = vadd.f32 %v6984_v51, %v7912_v31  ;;  %v4379_v7 = vpop.f32.mrb[115].mxu0  ;;  %v4405_v28 = vadd.f32 %v4402_v15, %v4397_v36 }
0x2ae5   :  { %v4403_v38 = vadd.f32 %v4402_v15, %v4395_v23  ;;  %v4396_v41 = vadd.f32 %v4379_v7, %v7916_v33 }
0x2ae6   :  { %v4406_v27 = vadd.f32 %v4402_v15, %v4398_v5  ;;  %v4413_v31 = vsel %vm79_vm0, %v4405_v28, 0.0  ;;  %v4470_v5 = vrot.slane %v8392_v25, %v7839_v37 }
0x2ae7   :  { %v4404_v29 = vadd.f32 %v4402_v15, %v4396_v41  ;;  %v4407_v30 = vsel %vm79_vm0, %v4403_v38, 0.0 }
0x2ae8   :  { %4408 = vadd.xlane.f32.xlu1 %v4407_v30  ;;  %v4416_v32 = vsel %vm79_vm0, %v4406_v27, 0.0 }
0x2ae9   :  { %v4410_v46 = vsel %vm79_vm0, %v4404_v29, 0.0 }
0x2aea   :  { %4411 = vadd.xlane.f32.xlu0 %v4410_v46 }
0x2aec   :  { %4417 = vadd.xlane.f32.xlu1 %v4416_v32 }
0x2aee   :  { %4414 = vadd.xlane.f32.xlu0 %v4413_v31 }
0x2b75   :  { %v4409_v47 = vpop.xlane.xlu1 %4408 }
0x2b76   :  { %v4419_v43 = vmul.f32 0.03125, %v4409_v47 }
0x2b77   :  { %v4412_v48 = vpop.xlane.xlu0 %4411 }
0x2b78   :  { %v4423_v50 = vsub.f32 %v4403_v38, %v4419_v43  ;;  %v4420_v33 = vmul.f32 0.03125, %v4412_v48  ;;  %v7217_v48 = vld [vmem:[%s8769_s5 + $0x10] sm:$0xff]  }
0x2b79   :  { %v4418_v45 = vpop.xlane.xlu1 %4417  ;;  %6993 = vmatprep.subr.bf16.mxu1 %v7217_v48 }
0x2b7a   :  { %v4424_v63 = vsub.f32 %v4404_v29, %v4420_v33  ;;  %v4422_v53 = vmul.f32 0.03125, %v4418_v45  ;;  %v4427_v21 = vmul.f32 %v4423_v50, %v4423_v50  ;;  %v6282_v33 = vld [vmem:[%s8772_s8 + $0x1] ss:$0 sm:$0xff] }
0x2b7b   :  { %v4415_v58 = vpop.xlane.xlu0 %4414 }
0x2b7c   :  { %v4426_v59 = vsub.f32 %v4406_v27, %v4422_v53  ;;  %v4421_v2 = vmul.f32 0.03125, %v4415_v58  ;;  %v4431_v52 = vsel %vm79_vm0, %v4427_v21, 0.0  ;;  %v4428_v54 = vmul.f32 %v4424_v63, %v4424_v63 }
0x2b7d   :  { %4432 = vadd.xlane.f32.xlu0 %v4431_v52 }
0x2b7e   :  { %v4425_v60 = vsub.f32 %v4405_v28, %v4421_v2  ;;  %v4434_v57 = vsel %vm79_vm0, %v4428_v54, 0.0  ;;  %v4430_v61 = vmul.f32 %v4426_v59, %v4426_v59 }
0x2b7f   :  { %4435 = vadd.xlane.f32.xlu1 %v4434_v57 }
0x2b80   :  { %v4429_v39 = vmul.f32 %v4425_v60, %v4425_v60  ;;  %v4440_v42 = vsel %vm79_vm0, %v4430_v61, 0.0 }
0x2b82   :  { %v4437_v3 = vsel %vm79_vm0, %v4429_v39, 0.0 }
0x2b83   :  { %4441 = vadd.xlane.f32.xlu1 %v4440_v42  ;;  %4438 = vadd.xlane.f32.xlu0 %v4437_v3  ;;  %v4559_v3 = vrot.slane %v8392_v25, %v7857_v17 }
0x2c0a   :  { %v4433_v1 = vpop.xlane.xlu0 %4432 }
0x2c0b   :  { %v4443_v10 = vmul.f32 0.03125, %v4433_v1  ;;  %v8436_v1 = vld [vmem:[%s8771_s7 + $0x10] sm:$0x3f] }
0x2c0c   :  { %v4436_v11 = vpop.xlane.xlu1 %4435 }
0x2c0d   :  { %v4447_v12 = vadd.f32 1e-05, %v4443_v10  ;;  %v4444_v34 = vmul.f32 0.03125, %v4436_v11  ;;  %v2989_v10 = vrot.slane %v8436_v1, %v7857_v17 }
0x2c0f   :  { %7405 = vrsqrt.f32 %v4447_v12  ;;  %v4448_v13 = vadd.f32 1e-05, %v4444_v34 }
0x2c10   :  { %v4442_v14 = vpop.xlane.xlu1 %4441  ;;  %v4439_v40 = vpop.xlane.xlu0 %4438 }
0x2c11   :  { %7407 = vrsqrt.f32 %v4448_v13  ;;  %v4446_v16 = vmul.f32 0.03125, %v4442_v14  ;;  %v4445_v9 = vmul.f32 0.03125, %v4439_v40 }
0x2c13   :  { %v4450_v19 = vadd.f32 1e-05, %v4446_v16  ;;  %v4449_v18 = vadd.f32 1e-05, %v4445_v9  ;;  %v3040_v9 = vadd.f32 %v8199_v49, %v2989_v10 }
0x2c15   :  { %7409 = vrsqrt.f32 %v4450_v19 }
0x2c16   :  { %7411 = vrsqrt.f32 %v4449_v18 }
0x2c19   :  { %v7406_v26 = vpop.eup %7405 }
0x2c1a   :  { %v4455_v15 = vmul.f32 %v7406_v26, %v4423_v50  ;;  %v7218_v50 = vld [vmem:[%s8769_s5 + $0x18] sm:$0xff]   ;;  %v3043_v26 = vadd.f32 %v8201_v62, %v2989_v10  ;;  %v7219_v62 = vld [vmem:[%s8766_s2 + $0x30] sm:$0xff]  }
0x2c1b   :  { %v7408_v55 = vpop.eup %7407  ;;  %7002 = vmatpush3.bf16.msra.mxu0 %v7219_v62 }
0x2c1c   :  { %v4456_v23 = vmul.f32 %v7408_v55, %v4424_v63  ;;  %v4463_v51 = vmul.f32 %v4462_v24, %v4455_v15  ;;  %7003 = vmatprep.subr.bf16.mxu0 %v7494_v8 }
0x2c1e   :  { %v4464_v7 = vmul.f32 %v4462_v24, %v4456_v23  ;;  %v4471_v27 = vadd.f32 %v4470_v5, %v4463_v51  ;;  %v3046_v23 = vadd.f32 %v3040_v9, %v8145_v6  ;;  %v7220_v6 = vld [vmem:[%s8766_s2 + $0x38] sm:$0xff]  }
0x2c1f   :  { %v7410_v36 = vpop.eup %7409  ;;  %7004 = vmatpush3.bf16.msra.mxu0 %v7220_v6 }
0x2c20   :  { %v7412_v38 = vpop.eup %7411  ;;  %v4458_v41 = vmul.f32 %v7410_v36, %v4426_v59  ;;  %v4472_v29 = vadd.f32 %v4470_v5, %v4464_v7  ;;  %v3048_v7 = vsel %vm79_vm0, %v3046_v23, 0.0  ;;  %7017 = vmatprep.subr.bf16.mxu0 %v7494_v8 }
0x2c21   :  { %v4457_v30 = vmul.f32 %v7412_v38, %v4425_v60 }
0x2c22   :  { %v4466_v28 = vmul.f32 %v4462_v24, %v4458_v41  ;;  %v4475_v46 = vpack.c.bf16 %v4472_v29, %v4471_v27 }
0x2c23   :  { %v4465_v32 = vmul.f32 %v4462_v24, %v4457_v30 }
0x2c24   :  { %6989 = vmatprep.mubr.msk.bf16.mxu1 %vm79_vm0, %v4475_v46  ;;  %v4474_v31 = vadd.f32 %v4470_v5, %v4466_v28 }
0x2c25   :  { %v4473_v47 = vadd.f32 %v4470_v5, %v4465_v32  ;;  %v3047_v5 = vadd.f32 %v3043_v26, %v8147_v56 }
0x2c27   :  { %v4476_v43 = vpack.c.bf16 %v4474_v31, %v4473_v47  ;;  %v3051_v36 = vsel %vm79_vm0, %v3047_v5, 0.0 }
0x2c29   :  { %6990 = vmatmul.mubr.msk.bf16.vlgmr.msra.gmra.mrb[120].mxu1 %vm79_vm0, %v4476_v43 }
0x2c2a   :  { %6994 = vmatpush3.bf16.msra.mxu1 %v7217_v48 }
0x2c2b   :  { %6995 = vmatprep.subr.bf16.mxu1 %v7218_v50 }
0x2c2e   :  { %6996 = vmatpush3.bf16.msra.mxu1 %v7218_v50 }
0x2cfc   :  { %v6991_v45 = vpop.f32.mrb[120].mxu1 }
0x2cfd   :  { %v4544_v63 = vadd.f32 %v6991_v45, %v6282_v33  ;;  %v4535_v53 = vpop.f32.mrb[121].mxu1 }
0x2cfe   :  { %v4536_v21 = vadd.f32 %v6282_v33, %v4535_v53  ;;  %v6992_v58 = vpop.f32.mrb[122].mxu1 }
0x2cff   :  { %v4547_v59 = vadd.f32 %v6992_v58, %v6282_v33  ;;  %v4538_v2 = vpop.f32.mrb[123].mxu1  ;;  %v4552_v54 = vmax.f32 %v4544_v63, 0.0 }
0x2d00   :  { %v4539_v52 = vadd.f32 %v6282_v33, %v4538_v2  ;;  %v4550_v57 = vmax.f32 %v4536_v21, 0.0 }
0x2d01   :  { %v4553_v60 = vmax.f32 %v4547_v59, 0.0 }
0x2d02   :  { %v4551_v61 = vmax.f32 %v4539_v52, 0.0 }
0x2d03   :  { %v4555_v39 = vpack.c.bf16 %v4553_v60, %v4552_v54 }
0x2d04   :  { %v4554_v42 = vpack.c.bf16 %v4551_v61, %v4550_v57 }
0x2d06   :  { %6997 = vmatprep.mubr.msk.bf16.mxu1 %vm79_vm0, %v4554_v42 }
0x2d07   :  { %6998 = vmatmul.mubr.msk.bf16.vlgmr.msra.gmra.mrb[124].mxu1 %vm79_vm0, %v4555_v39 }
0x2dda   :  { %v6999_v0 = vpop.f32.mrb[124].mxu1 }
0x2ddb   :  { %v4612_v4 = vpop.f32.mrb[125].mxu1  ;;  %v4621_v11 = vadd.f32 %v6999_v0, %v4559_v3  ;;  %v8485_v0 = vld [vmem:[%s8770_s6 + $0x3] ss:$0 sm:$0xff] }
0x2ddc   :  { %v4613_v12 = vadd.f32 %v4612_v4, %v4559_v3  ;;  %v7000_v34 = vpop.f32.mrb[126].mxu1 }
0x2ddd   :  { %v4615_v13 = vpop.f32.mrb[127].mxu1  ;;  %v4624_v40 = vadd.f32 %v7000_v34, %v4559_v3  ;;  %v4629_v19 = vadd.f32 %v4621_v11, %v4473_v47 }
0x2dde   :  { %v4627_v14 = vadd.f32 %v4613_v12, %v4471_v27  ;;  %v4616_v16 = vadd.f32 %v4615_v13, %v4559_v3 }
0x2ddf   :  { %v4630_v15 = vadd.f32 %v4624_v40, %v4474_v31  ;;  %v4637_v51 = vsel %vm79_vm0, %v4629_v19, 0.0 }
0x2de0   :  { %v4628_v18 = vadd.f32 %v4616_v16, %v4472_v29  ;;  %v4631_v24 = vsel %vm79_vm0, %v4627_v14, 0.0 }
0x2de1   :  { %4632 = vadd.xlane.f32.xlu0 %v4631_v24  ;;  %v4640_v49 = vsel %vm79_vm0, %v4630_v15, 0.0 }
0x2de2   :  { %v4634_v55 = vsel %vm79_vm0, %v4628_v18, 0.0 }
0x2de3   :  { %4635 = vadd.xlane.f32.xlu1 %v4634_v55 }
0x2de5   :  { %4638 = vadd.xlane.f32.xlu0 %v4637_v51 }
0x2de7   :  { %4641 = vadd.xlane.f32.xlu1 %v4640_v49  ;;  %v3077_v49 = vrot.slane %v8436_v1, %v7902_v20 }
0x2de9   :  { %3049 = vadd.xlane.f32.xlu0 %v3048_v7 }
0x2deb   :  { %3052 = vadd.xlane.f32.xlu1 %v3051_v36 }
0x2e6e   :  { %v4633_v56 = vpop.xlane.xlu0 %4632 }
0x2e6f   :  { %v4643_v31 = vmul.f32 0.03125, %v4633_v56 }
0x2e70   :  { %v4636_v38 = vpop.xlane.xlu1 %4635 }
0x2e71   :  { %v4644_v50 = vmul.f32 0.03125, %v4636_v38  ;;  %v8462_v53 = vsub.f32 %v4627_v14, %v4643_v31 }
0x2e72   :  { %v4639_v41 = vpop.xlane.xlu0 %4638 }
0x2e73   :  { %v4645_v29 = vmul.f32 0.03125, %v4639_v41  ;;  %v8467_v2 = vsub.f32 %v4628_v18, %v4644_v50  ;;  %v4651_v57 = vmul.f32 %v8462_v53, %v8462_v53  ;;  %v3083_v41 = vrot.slane %v8436_v1, %v7908_v22 }
0x2e74   :  { %v4642_v27 = vpop.xlane.xlu1 %4641 }
0x2e75   :  { %v4646_v28 = vmul.f32 0.03125, %v4642_v27  ;;  %v8458_v47 = vsub.f32 %v4629_v19, %v4645_v29  ;;  %v4652_v39 = vmul.f32 %v8467_v2, %v8467_v2  ;;  %v4655_v42 = vsel %vm79_vm0, %v4651_v57, 0.0 }
0x2e76   :  { %v3050_v30 = vpop.xlane.xlu0 %3049 }
0x2e77   :  { %v3054_v46 = vmul.f32 0.03125, %v3050_v30  ;;  %v8460_v33 = vsub.f32 %v4630_v15, %v4646_v28  ;;  %v4653_v59 = vmul.f32 %v8458_v47, %v8458_v47  ;;  %v4658_v3 = vsel %vm79_vm0, %v4652_v39, 0.0 }
0x2e78   :  { %v3053_v32 = vpop.xlane.xlu1 %3052 }
0x2e79   :  { %v3056_v43 = vsub.f32 %v3046_v23, %v3054_v46  ;;  %v3055_v48 = vmul.f32 0.03125, %v3053_v32  ;;  %v4654_v54 = vmul.f32 %v8460_v33, %v8460_v33  ;;  %v4661_v60 = vsel %vm79_vm0, %v4653_v59, 0.0 }
0x2e7a   :  { %v4694_v59 = vrot.slane %v8392_v25, %v7908_v22 }
0x2e7b   :  { %v3057_v45 = vsub.f32 %v3047_v5, %v3055_v48  ;;  %v3058_v63 = vmul.f32 %v3056_v43, %v3056_v43  ;;  %v4664_v61 = vsel %vm79_vm0, %v4654_v54, 0.0 }
0x2e7d   :  { %v3060_v21 = vsel %vm79_vm0, %v3058_v63, 0.0  ;;  %v3059_v58 = vmul.f32 %v3057_v45, %v3057_v45 }
0x2e7e   :  { %3061 = vadd.xlane.f32.xlu0 %v3060_v21 }
0x2e7f   :  { %v3063_v52 = vsel %vm79_vm0, %v3059_v58, 0.0 }
0x2e80   :  { %3064 = vadd.xlane.f32.xlu1 %v3063_v52 }
0x2e82   :  { %4662 = vadd.xlane.f32.xlu0 %v4661_v60 }
0x2e84   :  { %4665 = vadd.xlane.f32.xlu1 %v4664_v61 }
0x2e86   :  { %4656 = vadd.xlane.f32.xlu0 %v4655_v42 }
0x2e88   :  { %4659 = vadd.xlane.f32.xlu1 %v4658_v3 }
0x2e99   :  { %4792 = vrot.lane.b32.xlu1 %v7220_v6, %s7496_s23 }
0x2e9c   :  { %4790 = vrot.lane.b32.xlu0 %v7219_v62, %s7496_s23 }
0x2e9d   :  { %4796 = vrot.lane.b32.xlu1 %v8485_v0, %s7496_s23 }
0x2f0b   :  { %v3062_v4 = vpop.xlane.xlu0 %3061 }
0x2f0c   :  { %v3066_v10 = vmul.f32 0.03125, %v3062_v4 }
0x2f0d   :  { %v3065_v11 = vpop.xlane.xlu1 %3064 }
0x2f0e   :  { %v3068_v12 = vadd.f32 1e-05, %v3066_v10  ;;  %v3067_v34 = vmul.f32 0.03125, %v3065_v11 }
0x2f0f   :  { %v4663_v13 = vpop.xlane.xlu0 %4662 }
0x2f10   :  { %7413 = vrsqrt.f32 %v3068_v12  ;;  %v3069_v14 = vadd.f32 1e-05, %v3067_v34  ;;  %v4669_v40 = vmul.f32 0.03125, %v4663_v13 }
0x2f11   :  { %v4666_v16 = vpop.xlane.xlu1 %4665 }
0x2f12   :  { %7415 = vrsqrt.f32 %v3069_v14  ;;  %v4673_v9 = vadd.f32 1e-05, %v4669_v40  ;;  %v4670_v19 = vmul.f32 0.03125, %v4666_v16 }
0x2f13   :  { %v4657_v18 = vpop.xlane.xlu0 %4656 }
0x2f14   :  { %v4674_v24 = vadd.f32 1e-05, %v4670_v19  ;;  %v4667_v26 = vmul.f32 0.03125, %v4657_v18  ;;  %7417 = vrsqrt.f32 %v4673_v9 }
0x2f15   :  { %v4660_v15 = vpop.xlane.xlu1 %4659 }
0x2f16   :  { %7419 = vrsqrt.f32 %v4674_v24  ;;  %v4671_v55 = vadd.f32 1e-05, %v4667_v26  ;;  %v4668_v23 = vmul.f32 0.03125, %v4660_v15 }
0x2f17   :  { %v4791_v51 = vpop.permute.xlu0 %4790 }
0x2f18   :  { %7421 = vrsqrt.f32 %v4671_v55  ;;  %v4672_v5 = vadd.f32 1e-05, %v4668_v23  ;;  %7009 = vmatprep.subr.bf16.mxu1 %v4791_v51 }
0x2f19   :  { %7010 = vmatpush3.bf16.msra.mxu1 %v4791_v51  ;;  %v4793_v7 = vpop.permute.xlu1 %4792 }
0x2f1a   :  { %v7414_v36 = vpop.eup %7413  ;;  %7423 = vrsqrt.f32 %v4672_v5  ;;  %7011 = vmatprep.subr.bf16.mxu1 %v4793_v7 }
0x2f1b   :  { %v3072_v62 = vmul.f32 %v7414_v36, %v3056_v43  ;;  %v4686_v43 = vrot.slane %v8392_v25, %v7902_v20 }
0x2f1c   :  { %v7416_v6 = vpop.eup %7415 }
0x2f1d   :  { %v3078_v56 = vmul.f32 %v3077_v49, %v3072_v62  ;;  %v3073_v38 = vmul.f32 %v7416_v6, %v3057_v45  ;;  %7012 = vmatpush3.bf16.msra.mxu1 %v4793_v7  ;;  %v4797_v3 = vpop.permute.xlu1 %4796 }
0x2f1e   :  { %7023 = vmatprep.subr.bf16.mxu1 %v7494_v8  ;;  %v7418_v27 = vpop.eup %7417 }
0x2f1f   :  { %v3079_v29 = vmul.f32 %v3077_v49, %v3073_v38  ;;  %v8495_v46 = vadd.f32 %v3083_v41, %v3078_v56  ;;  %v4681_v48 = vmul.f32 %v7418_v27, %v8458_v47 }
0x2f20   :  { %v7420_v30 = vpop.eup %7419 }
0x2f21   :  { %v4682_v28 = vmul.f32 %v7420_v30, %v8460_v33  ;;  %v8497_v32 = vadd.f32 %v3083_v41, %v3079_v29  ;;  %v4689_v58 = vmul.f32 %v4686_v43, %v4681_v48 }
0x2f22   :  { %v7422_v31 = vpop.eup %7421 }
0x2f23   :  { %v4679_v1 = vmul.f32 %v7422_v31, %v8462_v53  ;;  %v4725_v50 = vpack.c.bf16 %v8497_v32, %v8495_v46  ;;  %v4690_v63 = vmul.f32 %v4686_v43, %v4682_v28  ;;  %v4697_v60 = vadd.f32 %v4694_v59, %v4689_v58 }
0x2f24   :  { %v7424_v45 = vpop.eup %7423 }
0x2f25   :  { %v4680_v21 = vmul.f32 %v7424_v45, %v8467_v2  ;;  %7006 = vmatmul.mubr.msk.bf16.vlgmr.msra.gmra.mrb[128].mxu0 %vm79_vm0, %v4725_v50  ;;  %v4687_v33 = vmul.f32 %v4686_v43, %v4679_v1  ;;  %v4698_v52 = vadd.f32 %v4694_v59, %v4690_v63 }
0x2f26   :  { %7019 = vmatprep.mubr.msk.bf16.mxu0 %vm7495_vm1, %v7494_v8 }
0x2f27   :  { %v4688_v47 = vmul.f32 %v4686_v43, %v4680_v21  ;;  %v4695_v53 = vadd.f32 %v4694_v59, %v4687_v33  ;;  %v4789_v61 = vpack.c.bf16 %v4698_v52, %v4697_v60 }
0x2f29   :  { %v4696_v54 = vadd.f32 %v4694_v59, %v4688_v47 }
0x2f2b   :  { %v4788_v57 = vpack.c.bf16 %v4696_v54, %v4695_v53 }
0x2f2d   :  { %7013 = vmatprep.mubr.msk.bf16.mxu1 %vm79_vm0, %v4788_v57 }
0x2f2e   :  { %7014 = vmatmul.mubr.msk.bf16.vlgmr.msra.gmra.mrb[128].mxu1 %vm79_vm0, %v4789_v61 }
0x2f2f   :  { %7025 = vmatprep.mubr.msk.bf16.mxu1 %vm7495_vm1, %v7494_v8 }
0x2ff8   :  { %v4781_v2 = vpop.f32.mrb[128].mxu0 }
0x2ff9   :  { %v7007_v39 = vpop.f32.mrb[129].mxu0  ;;  %v4782_v26 = vadd.f32 %v8485_v0, %v4781_v2 }
0x2ffa   :  { %v4784_v25 = vpop.f32.mrb[130].mxu0 }
0x2ffb   :  { %v7008_v42 = vpop.f32.mrb[131].mxu0  ;;  %v4785_v24 = vadd.f32 %v8485_v0, %v4784_v25  ;;  %v8529_v55 = vpack.c.bf16 %v4782_v26, %v4782_v26 }
0x2ffd   :  { %v8527_v15 = vpack.c.bf16 %v4785_v24, %v4785_v24 }
0x3001   :  { %v7015_v4 = vpop.f32.mrb[128].mxu1 }
0x3002   :  { %v4839_v10 = vpop.f32.mrb[129].mxu1  ;;  %v4848_v12 = vadd.f32 %v7015_v4, %v4797_v3 }
0x3003   :  { %v7016_v11 = vpop.f32.mrb[130].mxu1  ;;  %v4840_v14 = vadd.f32 %v4839_v10, %v4797_v3 }
0x3004   :  { %v4851_v34 = vadd.f32 %v7016_v11, %v4797_v3  ;;  %v4842_v13 = vpop.f32.mrb[131].mxu1 }
0x3005   :  { %v4843_v40 = vadd.f32 %v4842_v13, %v4797_v3 }
0x3006   :  { %v8515_v16 = vpack.c.bf16 %v4851_v34, %v4848_v12 }
0x3007   :  { %v8517_v9 = vpack.c.bf16 %v4843_v40, %v4840_v14 }
0x3008   :  { %v4908_v19 = vsel %vm140_vm2, %v8515_v16, 0 }
0x3009   :  { %7024 = vmatpush3.bf16.xpose.msra.mxu1 %v4908_v19  ;;  %v4862_v18 = vsel %vm140_vm2, %v8517_v9, 0 }
0x300a   :  { %7018 = vmatpush3.bf16.xpose.msra.mxu0 %v4862_v18  ;;  %7035 = vmatprep.subr.bf16.mxu1 %v7494_v8 }
0x300b   :  { %7029 = vmatprep.subr.bf16.mxu0 %v7494_v8 }
0x3010   :  { %7026 = vmatmul.mubr.msk.bf16.vlgmr.msra.gmra.mrb[132].mxu1 %vm140_vm2, %v8527_v15 }
0x3011   :  { %7020 = vmatmul.mubr.msk.bf16.vlgmr.msra.gmra.mrb[132].mxu0 %vm140_vm2, %v8529_v55  ;;  %7037 = vmatprep.mubr.msk.bf16.mxu1 %vm7495_vm1, %v7494_v8 }
0x3012   :  { %7031 = vmatprep.mubr.msk.bf16.mxu0 %vm7495_vm1, %v7494_v8 }
0x30e3   :  { %v4944_v23 = vpop.f32.mrb[132].mxu1 }
0x30e4   :  { %v4898_v0 = vpop.f32.mrb[132].mxu0  ;;  %v7027_v51 = vpop.f32.mrb[133].mxu1  ;;  %v4953_v5 = vsel %vm238_vm3, %v4944_v23, -inf }
0x30e5   :  { %4954 = vmax.xlane.f32.xlu0 %v4953_v5  ;;  %v7021_v49 = vpop.f32.mrb[133].mxu0  ;;  %v4947_v7 = vpop.f32.mrb[134].mxu1  ;;  %v4950_v36 = vsel %vm238_vm3, %v4898_v0, -inf }
0x30e6   :  { %v7028_v62 = vpop.f32.mrb[135].mxu1  ;;  %4951 = vmax.xlane.f32.xlu1 %v4950_v36  ;;  %v4901_v6 = vpop.f32.mrb[134].mxu0 }
0x30e7   :  { %v7022_v56 = vpop.f32.mrb[135].mxu0 }
0x30f7   :  { %4975 = vrot.lane.b32.xlu1 %v8517_v9, %s7496_s23 }
0x30fb   :  { %5072 = vrot.lane.b32.xlu1 %v8517_v9, %s7499_s26 }
0x30ff   :  { %5123 = vrot.lane.b32.xlu1 %v8515_v16, %s7499_s26 }
0x3103   :  { %5070 = vrot.lane.b32.xlu1 %v8529_v55, %s7499_s26 }
0x3172   :  { %v4955_v38 = vpop.xlane.xlu0 %4954 }
0x3173   :  { %v4957_v41 = vsub.f32 %v4944_v23, %v4955_v38  ;;  %v4952_v27 = vpop.xlane.xlu1 %4951 }
0x3174   :  { %v4956_v29 = vsub.f32 %v4898_v0, %v4952_v27 }
0x3175   :  { %v4960_v30 = vmul.f32 1.442695, %v4957_v41 }
0x3176   :  { %v4958_v28 = vmul.f32 1.442695, %v4956_v29 }
0x3177   :  { %7425 = vpow2.f32 %v4960_v30  ;;  %v4976_v31 = vpop.permute.xlu1 %4975 }
0x3178   :  { %7030 = vmatpush3.bf16.msra.mxu0 %v4976_v31  ;;  %7427 = vpow2.f32 %v4958_v28 }
0x3179   :  { %7041 = vmatprep.subr.bf16.mxu0 %v7494_v8 }
0x317b   :  { %v5073_v21 = vpop.permute.xlu1 %5072 }
0x317c   :  { %v5078_v61 = vsel %vm140_vm2, %v5073_v21, 0 }
0x317f   :  { %v5124_v47 = vpop.permute.xlu1 %5123 }
0x3180   :  { %v5129_v60 = vsel %vm140_vm2, %v5124_v47, 0 }
0x3181   :  { %v7426_v43 = vpop.eup %7425 }
0x3182   :  { %v4965_v48 = vsel %vm238_vm3, %v7426_v43, 0.0  ;;  %v7428_v1 = vpop.eup %7427 }
0x3183   :  { %4966 = vadd.xlane.f32.xlu0 %v4965_v48  ;;  %v4962_v50 = vsel %vm238_vm3, %v7428_v1, 0.0  ;;  %v5071_v39 = vpop.permute.xlu1 %5070 }
0x3187   :  { %4963 = vadd.xlane.f32.xlu0 %v4962_v50 }
0x319d   :  { %5022 = vrot.lane.b32.xlu0 %v8515_v16, %s7496_s23 }
0x31a1   :  { %5121 = vrot.lane.b32.xlu0 %v8527_v15, %s7499_s26 }
0x3210   :  { %v4967_v45 = vpop.xlane.xlu0 %4966 }
0x3211   :  { %7429 = vrcp.f32 %v4967_v45 }
0x3214   :  { %v4964_v63 = vpop.xlane.xlu0 %4963 }
0x3215   :  { %7431 = vrcp.f32 %v4964_v63 }
0x3218   :  { %v5023_v33 = vpop.permute.xlu0 %5022 }
0x3219   :  { %7036 = vmatpush3.bf16.msra.mxu1 %v5023_v33  ;;  %v6297_v33 = vld [vmem:[%s8767_s3 + $0x34] sm:$0xf] }
0x321a   :  { %7047 = vmatprep.subr.bf16.mxu1 %v7494_v8 }
0x321b   :  { %v7430_v58 = vpop.eup %7429 }
0x321c   :  { %v4971_v59 = vmul.f32 %v7430_v58, %v7426_v43  ;;  %v5122_v2 = vpop.permute.xlu0 %5121 }
0x321e   :  { %v4973_v52 = vpack.c.bf16 %v4971_v59, %v4971_v59 }
0x321f   :  { %v7432_v53 = vpop.eup %7431 }
0x3220   :  { %v4970_v54 = vmul.f32 %v7432_v53, %v7428_v1  ;;  %7038 = vmatmul.mubr.msk.bf16.vlgmr.msra.gmra.mrb[136].mxu1 %vm238_vm3, %v4973_v52  ;;  %v6296_v1 = vld [vmem:[%s8767_s3 + $0x30] sm:$0xf]  ;;  %v5292_v52 = vsel %vm631_vm4, %v6297_v33, 0 }
0x3221   :  { %7049 = vmatprep.mubr.msk.bf16.mxu1 %vm7495_vm1, %v7494_v8  ;;  %v5339_v63 = vsel %vm631_vm4, %v6296_v1, 0 }
0x3222   :  { %7048 = vmatpush3.bf16.xpose.msra.mxu1 %v5129_v60  ;;  %v4972_v57 = vpack.c.bf16 %v4970_v54, %v4970_v54 }
0x3223   :  { %7059 = vmatprep.subr.bf16.mxu1 %v7494_v8 }
0x3224   :  { %7032 = vmatmul.mubr.msk.bf16.vlgmr.msra.gmra.mrb[136].mxu0 %vm238_vm3, %v4972_v57 }
0x3225   :  { %7042 = vmatpush3.bf16.xpose.msra.mxu0 %v5078_v61  ;;  %7043 = vmatprep.mubr.msk.bf16.mxu0 %vm7495_vm1, %v7494_v8 }
0x3226   :  { %7053 = vmatprep.subr.bf16.mxu0 %v7494_v8 }
0x3229   :  { %7050 = vmatmul.mubr.msk.bf16.vlgmr.msra.gmra.mrb[140].mxu1 %vm140_vm2, %v5122_v2 }
0x322a   :  { %7061 = vmatprep.mubr.msk.bf16.mxu1 %vm7495_vm1, %v7494_v8 }
0x322c   :  { %7044 = vmatmul.mubr.msk.bf16.vlgmr.msra.gmra.mrb[140].mxu0 %vm140_vm2, %v5071_v39 }
0x322d   :  { %7055 = vmatprep.mubr.msk.bf16.mxu0 %vm7495_vm1, %v7494_v8 }
0x32f3   :  { %v8573_v25 = vpop.f32.mrb[136].mxu1 }
0x32f4   :  { %v7039_v42 = vpop.f32.mrb[137].mxu1 }
0x32f5   :  { %v5065_v3 = vpop.f32.mrb[138].mxu1 }
0x32f6   :  { %v7040_v4 = vpop.f32.mrb[139].mxu1 }
0x32f7   :  { %v8575_v10 = vpop.f32.mrb[136].mxu0 }
0x32f8   :  { %v5068_v11 = vpack.c.bf16 %v8573_v25, %v8575_v10  ;;  %v7033_v12 = vpop.f32.mrb[137].mxu0 }
0x32f9   :  { %v5018_v34 = vpop.f32.mrb[138].mxu0 }
0x32fa   :  { %v7034_v13 = vpop.f32.mrb[139].mxu0 }
0x32fc   :  { %v5165_v14 = vpop.f32.mrb[140].mxu1 }
0x32fd   :  { %v7051_v40 = vpop.f32.mrb[141].mxu1  ;;  %v5174_v19 = vsel %vm238_vm3, %v5165_v14, -inf }
0x32fe   :  { %5175 = vmax.xlane.f32.xlu0 %v5174_v19  ;;  %v5168_v18 = vpop.f32.mrb[142].mxu1 }
0x32ff   :  { %v5114_v24 = vpop.f32.mrb[140].mxu0  ;;  %v7052_v26 = vpop.f32.mrb[143].mxu1 }
0x3300   :  { %v7045_v23 = vpop.f32.mrb[141].mxu0  ;;  %v5171_v0 = vsel %vm238_vm3, %v5114_v24, -inf }
0x3301   :  { %5172 = vmax.xlane.f32.xlu1 %v5171_v0  ;;  %v5117_v51 = vpop.f32.mrb[142].mxu0 }
0x3302   :  { %v7046_v5 = vpop.f32.mrb[143].mxu0 }
0x3312   :  { %5195 = vrot.lane.b32.xlu1 %v8517_v9, %s7498_s25 }
0x3316   :  { %5384 = vrot.lane.b32.xlu1 %v8517_v9, %s7501_s28 }
0x331a   :  { %5434 = vrot.lane.b32.xlu1 %v8515_v16, %s7501_s28 }
0x331e   :  { %5382 = vrot.lane.b32.xlu1 %v8529_v55, %s7501_s28 }
0x338b   :  { %v5176_v49 = vpop.xlane.xlu0 %5175 }
0x338c   :  { %v5178_v7 = vsub.f32 %v5165_v14, %v5176_v49 }
0x338e   :  { %v5181_v36 = vmul.f32 1.442695, %v5178_v7  ;;  %v5173_v62 = vpop.xlane.xlu1 %5172 }
0x338f   :  { %v5177_v6 = vsub.f32 %v5114_v24, %v5173_v62 }
0x3390   :  { %7433 = vpow2.f32 %v5181_v36 }
0x3391   :  { %v5179_v56 = vmul.f32 1.442695, %v5177_v6 }
0x3392   :  { %v5196_v38 = vpop.permute.xlu1 %5195 }
0x3393   :  { %7435 = vpow2.f32 %v5179_v56  ;;  %7054 = vmatpush3.bf16.msra.mxu0 %v5196_v38 }
0x3394   :  { %7065 = vmatprep.subr.bf16.mxu0 %v7494_v8 }
0x3396   :  { %v5385_v58 = vpop.permute.xlu1 %5384 }
0x3397   :  { %v5390_v10 = vsel %vm140_vm2, %v5385_v58, 0 }
0x339a   :  { %v7434_v41 = vpop.eup %7433  ;;  %v5435_v53 = vpop.permute.xlu1 %5434 }
0x339b   :  { %v5186_v27 = vsel %vm238_vm3, %v7434_v41, 0.0  ;;  %v5440_v54 = vsel %vm140_vm2, %v5435_v53, 0 }
0x339c   :  { %5187 = vadd.xlane.f32.xlu0 %v5186_v27 }
0x339d   :  { %v7436_v29 = vpop.eup %7435 }
0x339e   :  { %v5183_v30 = vsel %vm238_vm3, %v7436_v29, 0.0  ;;  %v5383_v40 = vpop.permute.xlu1 %5382 }
0x33a0   :  { %5184 = vadd.xlane.f32.xlu0 %v5183_v30 }
0x33b6   :  { %5241 = vrot.lane.b32.xlu0 %v8515_v16, %s7498_s25 }
0x33ba   :  { %5432 = vrot.lane.b32.xlu0 %v8527_v15, %s7501_s28 }
0x3429   :  { %v5188_v28 = vpop.xlane.xlu0 %5187 }
0x342a   :  { %7437 = vrcp.f32 %v5188_v28 }
0x342d   :  { %v5185_v31 = vpop.xlane.xlu0 %5184 }
0x342e   :  { %7439 = vrcp.f32 %v5185_v31 }
0x3431   :  { %v5242_v43 = vpop.permute.xlu0 %5241 }
0x3432   :  { %7060 = vmatpush3.bf16.msra.mxu1 %v5242_v43 }
0x3433   :  { %7071 = vmatprep.subr.bf16.mxu1 %v7494_v8 }
0x3434   :  { %v7438_v48 = vpop.eup %7437 }
0x3435   :  { %v5192_v50 = vmul.f32 %v7438_v48, %v7434_v41  ;;  %v5433_v60 = vpop.permute.xlu0 %5432 }
0x3437   :  { %v5194_v45 = vpack.c.bf16 %v5192_v50, %v5192_v50 }
0x3438   :  { %v7440_v21 = vpop.eup %7439 }
0x3439   :  { %v5191_v59 = vmul.f32 %v7440_v21, %v7436_v29  ;;  %7062 = vmatmul.mubr.msk.bf16.vlgmr.msra.gmra.mrb[144].mxu1 %vm238_vm3, %v5194_v45 }
0x343a   :  { %7072 = vmatpush3.bf16.msra.mxu1 %v5339_v63  ;;  %7073 = vmatprep.mubr.msk.bf16.mxu1 %vm7495_vm1, %v7494_v8 }
0x343b   :  { %v5193_v47 = vpack.c.bf16 %v5191_v59, %v5191_v59  ;;  %7083 = vmatprep.subr.bf16.mxu1 %v7494_v8 }
0x343d   :  { %7056 = vmatmul.mubr.msk.bf16.vlgmr.msra.gmra.mrb[144].mxu0 %vm238_vm3, %v5193_v47 }
0x343e   :  { %7066 = vmatpush3.bf16.msra.mxu0 %v5292_v52  ;;  %7067 = vmatprep.mubr.msk.bf16.mxu0 %vm7495_vm1, %v7494_v8 }
0x343f   :  { %7077 = vmatprep.subr.bf16.mxu0 %v7494_v8 }
0x3441   :  { %7074 = vmatmul.mubr.msk.bf16.vlgmr.msra.gmra.mrb[148].mxu1 %vm140_vm2, %v5068_v11 }
0x3442   :  { %7085 = vmatprep.mubr.msk.bf16.mxu1 %vm7495_vm1, %v7494_v8 }
0x3443   :  { %7084 = vmatpush3.bf16.xpose.msra.mxu1 %v5440_v54 }
0x3444   :  { %7095 = vmatprep.subr.bf16.mxu1 %v7494_v8 }
0x344a   :  { %7086 = vmatmul.mubr.msk.bf16.vlgmr.msra.gmra.mrb[152].mxu1 %vm140_vm2, %v5433_v60 }
0x344b   :  { %7097 = vmatprep.mubr.msk.bf16.mxu1 %vm7495_vm1, %v7494_v8 }
0x350c   :  { %v5281_v57 = vpop.f32.mrb[144].mxu1 }
0x350d   :  { %v7063_v61 = vpop.f32.mrb[145].mxu1 }
0x350e   :  { %v5284_v2 = vpop.f32.mrb[146].mxu1 }
0x350f   :  { %v7064_v39 = vpop.f32.mrb[147].mxu1  ;;  %v6298_v2 = vld [vmem:[%s8767_s3 + $0x38] sm:$0xf] }
0x3510   :  { %v5235_v25 = vpop.f32.mrb[144].mxu0  ;;  %v5603_v39 = vsel %vm631_vm4, %v6298_v2, 0 }
0x3511   :  { %v5287_v42 = vpack.c.bf16 %v5281_v57, %v5235_v25  ;;  %v7057_v3 = vpop.f32.mrb[145].mxu0 }
0x3512   :  { %v5238_v4 = vpop.f32.mrb[146].mxu0 }
0x3513   :  { %v7058_v11 = vpop.f32.mrb[147].mxu0  ;;  %7068 = vmatmul.mubr.msk.bf16.vlgmr.msra.gmra.mrb[148].mxu0 %vm140_vm2, %v5287_v42 }
0x3514   :  { %7078 = vmatpush3.bf16.xpose.msra.mxu0 %v5390_v10  ;;  %v5375_v12 = vpop.f32.mrb[148].mxu1  ;;  %7079 = vmatprep.mubr.msk.bf16.mxu0 %vm7495_vm1, %v7494_v8 }
0x3515   :  { %v7075_v34 = vpop.f32.mrb[149].mxu1  ;;  %7089 = vmatprep.subr.bf16.mxu0 %v7494_v8 }
0x3516   :  { %v5378_v13 = vpop.f32.mrb[150].mxu1 }
0x3517   :  { %v7076_v14 = vpop.f32.mrb[151].mxu1 }
0x351b   :  { %7080 = vmatmul.mubr.msk.bf16.vlgmr.msra.gmra.mrb[152].mxu0 %vm140_vm2, %v5383_v40 }
0x351c   :  { %7091 = vmatprep.mubr.msk.bf16.mxu0 %vm7495_vm1, %v7494_v8 }
0x351d   :  { %v5476_v19 = vpop.f32.mrb[152].mxu1 }
0x351e   :  { %v7087_v18 = vpop.f32.mrb[153].mxu1  ;;  %v5485_v24 = vsel %vm238_vm3, %v5476_v19, -inf }
0x351f   :  { %5486 = vmax.xlane.f32.xlu0 %v5485_v24  ;;  %v5479_v26 = vpop.f32.mrb[154].mxu1 }
0x3520   :  { %v7088_v23 = vpop.f32.mrb[155].mxu1 }
0x35ac   :  { %v5487_v0 = vpop.xlane.xlu0 %5486 }
0x35ad   :  { %v5489_v51 = vsub.f32 %v5476_v19, %v5487_v0 }
0x35af   :  { %v5492_v5 = vmul.f32 1.442695, %v5489_v51 }
0x35b1   :  { %7441 = vpow2.f32 %v5492_v5 }
0x35bb   :  { %v7442_v49 = vpop.eup %7441 }
0x35bc   :  { %v5497_v7 = vsel %vm238_vm3, %v7442_v49, 0.0 }
0x35bd   :  { %5498 = vadd.xlane.f32.xlu0 %v5497_v7 }
0x35e6   :  { %v5328_v36 = vpop.f32.mrb[148].mxu0 }
0x35e7   :  { %v8634_v62 = vadd.f32 %v5375_v12, %v5328_v36  ;;  %v7069_v6 = vpop.f32.mrb[149].mxu0 }
0x35e8   :  { %v5331_v56 = vpop.f32.mrb[150].mxu0 }
0x35e9   :  { %v8636_v38 = vadd.f32 %v5378_v13, %v5331_v56  ;;  %v7070_v41 = vpop.f32.mrb[151].mxu0 }
0x35ee   :  { %v5426_v27 = vpop.f32.mrb[152].mxu0 }
0x35ef   :  { %v7081_v29 = vpop.f32.mrb[153].mxu0  ;;  %v5482_v30 = vsel %vm238_vm3, %v5426_v27, -inf }
0x35f0   :  { %5483 = vmax.xlane.f32.xlu1 %v5482_v30  ;;  %v5429_v28 = vpop.f32.mrb[154].mxu0 }
0x35f1   :  { %v7082_v31 = vpop.f32.mrb[155].mxu0 }
0x3601   :  { %5506 = vrot.lane.b32.xlu1 %v8517_v9, %s7500_s27 }
0x3605   :  { %5650 = vrot.lane.b32.xlu1 %v8517_v9, %s7505_s15 }
0x3609   :  { %5700 = vrot.lane.b32.xlu1 %v8515_v16, %s7505_s15 }
0x360d   :  { %5648 = vrot.lane.b32.xlu1 %v8529_v55, %s7505_s15 }
0x364a   :  { %v5499_v21 = vpop.xlane.xlu0 %5498 }
0x367d   :  { %v5484_v43 = vpop.xlane.xlu1 %5483 }
0x367e   :  { %v5488_v48 = vsub.f32 %v5426_v27, %v5484_v43 }
0x3680   :  { %v5490_v1 = vmul.f32 1.442695, %v5488_v48 }
0x3681   :  { %v5507_v50 = vpop.permute.xlu1 %5506 }
0x3682   :  { %7443 = vpow2.f32 %v5490_v1  ;;  %7090 = vmatpush3.bf16.msra.mxu0 %v5507_v50 }
0x3683   :  { %7101 = vmatprep.subr.bf16.mxu0 %v7494_v8  ;;  %7445 = vrcp.f32 %v5499_v21 }
0x3685   :  { %v5651_v52 = vpop.permute.xlu1 %5650 }
0x3689   :  { %v5701_v60 = vpop.permute.xlu1 %5700 }
0x368a   :  { %v5706_v13 = vsel %vm140_vm2, %v5701_v60, 0 }
0x368c   :  { %v7444_v45 = vpop.eup %7443 }
0x368d   :  { %v5494_v63 = vsel %vm238_vm3, %v7444_v45, 0.0  ;;  %v7446_v55 = vpop.eup %7445  ;;  %v5649_v61 = vpop.permute.xlu1 %5648 }
0x368e   :  { %5495 = vadd.xlane.f32.xlu0 %v5494_v63  ;;  %v5503_v58 = vmul.f32 %v7446_v55, %v7442_v49 }
0x3690   :  { %v5505_v47 = vpack.c.bf16 %v5503_v58, %v5503_v58  ;;  %v6299_v58 = vld [vmem:[%s8767_s3 + $0x3c] sm:$0xf] }
0x36a4   :  { %5552 = vrot.lane.b32.xlu0 %v8515_v16, %s7500_s27 }
0x36a8   :  { %5698 = vrot.lane.b32.xlu0 %v8527_v15, %s7505_s15  ;;  %v5656_v15 = vsel %vm140_vm2, %v5651_v52, 0 }
0x371b   :  { %v5496_v33 = vpop.xlane.xlu0 %5495 }
0x371c   :  { %7447 = vrcp.f32 %v5496_v33 }
0x371f   :  { %v5553_v59 = vpop.permute.xlu0 %5552 }
0x3720   :  { %7096 = vmatpush3.bf16.msra.mxu1 %v5553_v59  ;;  %v5869_v59 = vsel %vm631_vm4, %v6299_v58, 0 }
0x3721   :  { %7107 = vmatprep.subr.bf16.mxu1 %v7494_v8 }
0x3723   :  { %7098 = vmatmul.mubr.msk.bf16.vlgmr.msra.gmra.mrb[156].mxu1 %vm238_vm3, %v5505_v47  ;;  %v5699_v23 = vpop.permute.xlu0 %5698 }
0x3724   :  { %7109 = vmatprep.mubr.msk.bf16.mxu1 %vm7495_vm1, %v7494_v8 }
0x3726   :  { %v7448_v53 = vpop.eup %7447 }
0x3727   :  { %v5502_v54 = vmul.f32 %v7448_v53, %v7444_v45 }
0x3729   :  { %7108 = vmatpush3.bf16.xpose.msra.mxu1 %v5656_v15  ;;  %v5504_v57 = vpack.c.bf16 %v5502_v54, %v5502_v54 }
0x372a   :  { %7119 = vmatprep.subr.bf16.mxu1 %v7494_v8 }
0x372b   :  { %7092 = vmatmul.mubr.msk.bf16.vlgmr.msra.gmra.mrb[156].mxu0 %vm238_vm3, %v5504_v57 }
0x372c   :  { %7103 = vmatprep.mubr.msk.bf16.mxu0 %vm7495_vm1, %v7494_v8  ;;  %7102 = vmatpush3.bf16.msra.mxu0 %v5603_v39 }
0x372d   :  { %7113 = vmatprep.subr.bf16.mxu0 %v7494_v8 }
0x3730   :  { %7110 = vmatmul.mubr.msk.bf16.vlgmr.msra.gmra.mrb[160].mxu1 %vm140_vm2, %v5649_v61 }
0x3731   :  { %7121 = vmatprep.mubr.msk.bf16.mxu1 %vm7495_vm1, %v7494_v8 }
0x37f6   :  { %v5592_v25 = vpop.f32.mrb[156].mxu1 }
0x37f7   :  { %v7099_v42 = vpop.f32.mrb[157].mxu1 }
0x37f8   :  { %v5595_v3 = vpop.f32.mrb[158].mxu1 }
0x37f9   :  { %v7100_v4 = vpop.f32.mrb[159].mxu1 }
0x37fa   :  { %v8707_v4 = vld [vmem:[%s8771_s7 + $0x18] sm:$0x3f] }
0x37fe   :  { %v5546_v10 = vpop.f32.mrb[156].mxu0 }
0x37ff   :  { %v5598_v11 = vpack.c.bf16 %v5592_v25, %v5546_v10  ;;  %v7093_v12 = vpop.f32.mrb[157].mxu0 }
0x3800   :  { %v5549_v34 = vpop.f32.mrb[158].mxu0 }
0x3801   :  { %v7094_v14 = vpop.f32.mrb[159].mxu0  ;;  %7104 = vmatmul.mubr.msk.bf16.vlgmr.msra.gmra.mrb[160].mxu0 %vm140_vm2, %v5598_v11  ;;  %v5919_v34 = vrot.slane %v8707_v4, %v7798_v44 }
0x3802   :  { %7114 = vmatpush3.bf16.xpose.msra.mxu0 %v5706_v13  ;;  %7115 = vmatprep.mubr.msk.bf16.mxu0 %vm7495_vm1, %v7494_v8 }
0x3803   :  { %v5692_v40 = vpop.f32.mrb[160].mxu1  ;;  %7125 = vmatprep.subr.bf16.mxu0 %v7494_v8 }
0x3804   :  { %v7111_v19 = vpop.f32.mrb[161].mxu1  ;;  %v5748_v18 = vsel %vm238_vm3, %v5692_v40, -inf }
0x3805   :  { %5749 = vmax.xlane.f32.xlu1 %v5748_v18  ;;  %v5695_v24 = vpop.f32.mrb[162].mxu1 }
0x3806   :  { %v7112_v26 = vpop.f32.mrb[163].mxu1 }
0x3809   :  { %7116 = vmatmul.mubr.msk.bf16.vlgmr.msra.gmra.mrb[164].mxu0 %vm140_vm2, %v5699_v23 }
0x380a   :  { %7127 = vmatprep.mubr.msk.bf16.mxu0 %vm7495_vm1, %v7494_v8 }
0x3816   :  { %5772 = vrot.lane.b32.xlu1 %v8517_v9, %s7504_s14 }
0x3892   :  { %v5750_v0 = vpop.xlane.xlu1 %5749 }
0x3893   :  { %v5754_v5 = vsub.f32 %v5692_v40, %v5750_v0 }
0x3895   :  { %v5756_v49 = vmul.f32 1.442695, %v5754_v5 }
0x3896   :  { %v5773_v51 = vpop.permute.xlu1 %5772 }
0x3897   :  { %7120 = vmatpush3.bf16.msra.mxu1 %v5773_v51  ;;  %7449 = vpow2.f32 %v5756_v49 }
0x3898   :  { %7131 = vmatprep.subr.bf16.mxu1 %v7494_v8 }
0x38a1   :  { %v7450_v28 = vpop.eup %7449 }
0x38a2   :  { %v5760_v48 = vsel %vm238_vm3, %v7450_v28, 0.0 }
0x38d4   :  { %v5639_v7 = vpop.f32.mrb[160].mxu0 }
0x38d5   :  { %v5646_v36 = vadd.f32 %v5639_v7, %v8634_v62  ;;  %v7105_v6 = vpop.f32.mrb[161].mxu0 }
0x38d6   :  { %v5642_v56 = vpop.f32.mrb[162].mxu0 }
0x38d7   :  { %v5647_v41 = vadd.f32 %v5642_v56, %v8636_v38  ;;  %v7106_v27 = vpop.f32.mrb[163].mxu0 }
0x38d8   :  { %v7222_v27 = vld [vmem:[%s8768_s4 + $0x38] sm:$0xff]  }
0x38dc   :  { %v5742_v29 = vpop.f32.mrb[164].mxu0 }
0x38dd   :  { %v7117_v30 = vpop.f32.mrb[165].mxu0  ;;  %v5751_v9 = vsel %vm238_vm3, %v5742_v29, -inf }
0x38de   :  { %5752 = vmax.xlane.f32.xlu0 %v5751_v9  ;;  %v5745_v31 = vpop.f32.mrb[166].mxu0 }
0x38df   :  { %v7118_v43 = vpop.f32.mrb[167].mxu0 }
0x38e2   :  { %5761 = vadd.xlane.f32.xlu0 %v5760_v48  ;;  %v5951_v48 = vrot.slane %v8707_v4, %v7834_v35  ;;  %v7224_v35 = vld [vmem:[%s8769_s5 + $0x38] sm:$0xff]  }
0x396b   :  { %v5753_v1 = vpop.xlane.xlu0 %5752 }
0x396c   :  { %v5755_v50 = vsub.f32 %v5742_v29, %v5753_v1 }
0x396e   :  { %v5758_v45 = vmul.f32 1.442695, %v5755_v50 }
0x396f   :  { %v5762_v62 = vpop.xlane.xlu0 %5761 }
0x3970   :  { %7451 = vpow2.f32 %v5758_v45 }
0x3971   :  { %7453 = vrcp.f32 %v5762_v62 }
0x397a   :  { %v7452_v63 = vpop.eup %7451 }
0x397b   :  { %v7454_v38 = vpop.eup %7453  ;;  %v5763_v21 = vsel %vm238_vm3, %v7452_v63, 0.0 }
0x397c   :  { %v5768_v55 = vmul.f32 %v7454_v38, %v7450_v28  ;;  %5764 = vadd.xlane.f32.xlu0 %v5763_v21  ;;  %v5957_v38 = vrot.slane %v8707_v4, %v7839_v37  ;;  %v6336_v37 = vld [vmem:[%s8772_s8 + $0x3] ss:$0 sm:$0xff] }
0x397e   :  { %v5770_v33 = vpack.c.bf16 %v5768_v55, %v5768_v55 }
0x3980   :  { %7122 = vmatmul.mubr.msk.bf16.vlgmr.msra.gmra.mrb[164].mxu1 %vm238_vm3, %v5770_v33 }
0x3981   :  { %7133 = vmatprep.mubr.msk.bf16.mxu1 %vm7495_vm1, %v7494_v8  ;;  %7132 = vmatpush3.bf16.msra.mxu1 %v5869_v59  ;;  %v7223_v59 = vld [vmem:[%s8769_s5 + $0x30] sm:$0xff]   ;;  %s7507_s5 = smov [#allocation2]  }
0x3982   :  { %7145 = vmatprep.subr.bf16.mxu1 %v7494_v8  ;;  %s6133_s8 = sshll.u32 %s7507_s5, 4  ;;  %s6134_s8 = int_to_ptr.vmem [resolvable:$true] %s6133_s8 }
0x3983   :  { %s7470_s30 = scalar_lea.vmem %s6134_s8, 256  ;;  %p7475_p1 = scmp.lt.s32.totalorder %s6134_s8, %s6134_s8 }
0x3984   :  { %p7471_p0 = scmp.ne.s32.totalorder %s6134_s8, %s7470_s30  ;;  %p7476_p2 = scmp.lt.s32.totalorder %s7470_s30, %s7470_s30 }
0x3986   :  { %p7477_p3 = por %p7476_p2, %p7475_p1 }
0x3988   :  { %p7478_p4 = pnand %p7477_p3, %p7471_p0 }
0x3992   :  { %5818 = vrot.lane.b32.xlu0 %v8515_v16, %s7504_s14 }
0x3a09   :  { %v5765_v47 = vpop.xlane.xlu0 %5764 }
0x3a0a   :  { %7455 = vrcp.f32 %v5765_v47 }
0x3a0d   :  { %v5819_v52 = vpop.permute.xlu0 %5818 }
0x3a0e   :  { %7126 = vmatpush3.bf16.msra.mxu0 %v5819_v52 }
0x3a0f   :  { %7137 = vmatprep.subr.bf16.mxu0 %v7494_v8 }
0x3a14   :  { %v7456_v53 = vpop.eup %7455 }
0x3a15   :  { %v5769_v54 = vmul.f32 %v7456_v53, %v7452_v63 }
0x3a17   :  { %v5771_v15 = vpack.c.bf16 %v5769_v54, %v5769_v54 }
0x3a19   :  { %7128 = vmatmul.mubr.msk.bf16.vlgmr.msra.gmra.mrb[168].mxu0 %vm238_vm3, %v5771_v15 }
0x3a1a   :  { %7141 = vmatprep.mubr.msk.bf16.mxu0 %vm7495_vm1, %v7494_v8 }
0x3a53   :  { %v5812_v16 = vpop.f32.mrb[164].mxu1 }
0x3a54   :  { %v7123_v60 = vpop.f32.mrb[165].mxu1 }
0x3a55   :  { %v5815_v57 = vpop.f32.mrb[166].mxu1 }
0x3a56   :  { %v7124_v61 = vpop.f32.mrb[167].mxu1 }
0x3aec   :  { %v5858_v2 = vpop.f32.mrb[168].mxu0 }
0x3aed   :  { %v5864_v39 = vpack.c.bf16 %v5858_v2, %v5812_v16  ;;  %v7129_v25 = vpop.f32.mrb[169].mxu0 }
0x3aee   :  { %v5861_v42 = vpop.f32.mrb[170].mxu0 }
0x3aef   :  { %v7130_v3 = vpop.f32.mrb[171].mxu0  ;;  %7134 = vmatmul.mubr.msk.bf16.vlgmr.msra.gmra.mrb[168].mxu1 %vm140_vm2, %v5864_v39 }
0x3af0   :  { %7149 = vmatprep.mubr.msk.bf16.mxu1 %vm7495_vm1, %v7494_v8  ;;  %7146 = vmatpush3.bf16.msra.mxu1 %v7223_v59 }
0x3af1   :  { %7147 = vmatprep.subr.bf16.mxu1 %v7494_v8 }
0x3af4   :  { %7148 = vmatpush3.bf16.msra.mxu1 %v7224_v35 }
0x3bc2   :  { %v5905_v10 = vpop.f32.mrb[168].mxu1 }
0x3bc3   :  { %v5912_v11 = vadd.f32 %v5905_v10, %v5646_v36  ;;  %v7135_v12 = vpop.f32.mrb[169].mxu1 }
0x3bc4   :  { %v5908_v13 = vpop.f32.mrb[170].mxu1 }
0x3bc5   :  { %v5914_v14 = vadd.f32 %v5912_v11, %v8495_v46  ;;  %v5913_v40 = vadd.f32 %v5908_v13, %v5647_v41  ;;  %v7136_v19 = vpop.f32.mrb[171].mxu1  ;;  %v7221_v41 = vld [vmem:[%s8768_s4 + $0x30] sm:$0xff]  }
0x3bc6   :  { %7138 = vmatpush3.bf16.msra.mxu0 %v7221_v41  ;;  %v6123_v41 = vrot.slane %v8707_v4, %v7908_v22 }
0x3bc7   :  { %v5915_v18 = vadd.f32 %v5913_v40, %v8497_v32  ;;  %v5920_v24 = vadd.f32 %v5919_v34, %v5914_v14  ;;  %7139 = vmatprep.subr.bf16.mxu0 %v7494_v8  ;;  %v6029_v8 = vrot.slane %v8707_v4, %v7857_v17 }
0x3bc9   :  { %v5922_v26 = vsel %vm79_vm0, %v5920_v24, 0.0  ;;  %v5921_v23 = vadd.f32 %v5919_v34, %v5915_v18 }
0x3bca   :  { %5923 = vadd.xlane.f32.xlu1 %v5922_v26  ;;  %7140 = vmatpush3.bf16.msra.mxu0 %v7222_v27 }
0x3bcb   :  { %v5925_v0 = vsel %vm79_vm0, %v5921_v23, 0.0 }
0x3bcc   :  { %5926 = vadd.xlane.f32.xlu0 %v5925_v0 }
0x3c57   :  { %v5924_v51 = vpop.xlane.xlu1 %5923 }
0x3c58   :  { %v5928_v5 = vmul.f32 0.03125, %v5924_v51 }
0x3c59   :  { %v5927_v49 = vpop.xlane.xlu0 %5926 }
0x3c5a   :  { %v5930_v7 = vsub.f32 %v5920_v24, %v5928_v5  ;;  %v5929_v44 = vmul.f32 0.03125, %v5927_v49 }
0x3c5c   :  { %v5931_v36 = vsub.f32 %v5921_v23, %v5929_v44  ;;  %v5932_v6 = vmul.f32 %v5930_v7, %v5930_v7 }
0x3c5e   :  { %v5934_v46 = vsel %vm79_vm0, %v5932_v6, 0.0  ;;  %v5933_v56 = vmul.f32 %v5931_v36, %v5931_v36 }
0x3c5f   :  { %5935 = vadd.xlane.f32.xlu1 %v5934_v46  ;;  %v6117_v46 = vrot.slane %v8707_v4, %v7902_v20 }
0x3c60   :  { %v5937_v32 = vsel %vm79_vm0, %v5933_v56, 0.0 }
0x3c61   :  { %5938 = vadd.xlane.f32.xlu0 %v5937_v32 }
0x3cec   :  { %v5936_v29 = vpop.xlane.xlu1 %5935 }
0x3ced   :  { %v5940_v30 = vmul.f32 0.03125, %v5936_v29 }
0x3cee   :  { %v5939_v9 = vpop.xlane.xlu0 %5938 }
0x3cef   :  { %v5942_v28 = vadd.f32 1e-05, %v5940_v30  ;;  %v5941_v31 = vmul.f32 0.03125, %v5939_v9 }
0x3cf1   :  { %7457 = vrsqrt.f32 %v5942_v28  ;;  %v5943_v43 = vadd.f32 1e-05, %v5941_v31 }
0x3cf3   :  { %7459 = vrsqrt.f32 %v5943_v43 }
0x3cfb   :  { %v7458_v1 = vpop.eup %7457 }
0x3cfc   :  { %v5946_v50 = vmul.f32 %v7458_v1, %v5930_v7 }
0x3cfd   :  { %v7460_v45 = vpop.eup %7459 }
0x3cfe   :  { %v5952_v62 = vmul.f32 %v5951_v48, %v5946_v50  ;;  %v5947_v63 = vmul.f32 %v7460_v45, %v5931_v36 }
0x3d00   :  { %v5953_v21 = vmul.f32 %v5951_v48, %v5947_v63  ;;  %v5958_v55 = vadd.f32 %v5957_v38, %v5952_v62 }
0x3d02   :  { %v5959_v33 = vadd.f32 %v5957_v38, %v5953_v21 }
0x3d04   :  { %v5960_v58 = vpack.c.bf16 %v5959_v33, %v5958_v55 }
0x3d06   :  { %7142 = vmatmul.mubr.msk.bf16.vlgmr.msra.gmra.mrb[172].mxu0 %vm79_vm0, %v5960_v58 }
0x3dd9   :  { %v6016_v47 = vpop.f32.mrb[172].mxu0 }
0x3dda   :  { %v6017_v52 = vadd.f32 %v6336_v37, %v6016_v47  ;;  %v7143_v53 = vpop.f32.mrb[173].mxu0 }
0x3ddb   :  { %v6019_v54 = vpop.f32.mrb[174].mxu0 }
0x3ddc   :  { %v6020_v15 = vadd.f32 %v6336_v37, %v6019_v54  ;;  %v7144_v16 = vpop.f32.mrb[175].mxu0  ;;  %v6023_v60 = vmax.f32 %v6017_v52, 0.0 }
0x3dde   :  { %v6024_v57 = vmax.f32 %v6020_v15, 0.0 }
0x3de0   :  { %v6025_v61 = vpack.c.bf16 %v6024_v57, %v6023_v60 }
0x3de2   :  { %7150 = vmatmul.mubr.msk.bf16.vlgmr.msra.gmra.mrb[172].mxu1 %vm79_vm0, %v6025_v61 }
0x3eb5   :  { %v6079_v2 = vpop.f32.mrb[172].mxu1 }
0x3eb6   :  { %v6080_v39 = vadd.f32 %v6079_v2, %v6029_v8  ;;  %v7151_v25 = vpop.f32.mrb[173].mxu1 }
0x3eb7   :  { %v6082_v42 = vpop.f32.mrb[174].mxu1 }
0x3eb8   :  { %v6086_v3 = vadd.f32 %v6080_v39, %v5958_v55  ;;  %v6083_v10 = vadd.f32 %v6082_v42, %v6029_v8  ;;  %v7152_v11 = vpop.f32.mrb[175].mxu1 }
0x3eba   :  { %v6087_v12 = vadd.f32 %v6083_v10, %v5959_v33  ;;  %v6088_v34 = vsel %vm79_vm0, %v6086_v3, 0.0 }
0x3ebb   :  { %6089 = vadd.xlane.f32.xlu1 %v6088_v34 }
0x3ebc   :  { %v6091_v13 = vsel %vm79_vm0, %v6087_v12, 0.0 }
0x3ebd   :  { %6092 = vadd.xlane.f32.xlu0 %v6091_v13 }
0x3f48   :  { %v6090_v14 = vpop.xlane.xlu1 %6089 }
0x3f49   :  { %v6094_v40 = vmul.f32 0.03125, %v6090_v14 }
0x3f4a   :  { %v6093_v19 = vpop.xlane.xlu0 %6092 }
0x3f4b   :  { %v6096_v18 = vsub.f32 %v6086_v3, %v6094_v40  ;;  %v6095_v24 = vmul.f32 0.03125, %v6093_v19 }
0x3f4d   :  { %v6097_v17 = vsub.f32 %v6087_v12, %v6095_v24  ;;  %v6098_v26 = vmul.f32 %v6096_v18, %v6096_v18 }
0x3f4f   :  { %v6100_v23 = vsel %vm79_vm0, %v6098_v26, 0.0  ;;  %v6099_v0 = vmul.f32 %v6097_v17, %v6097_v17 }
0x3f50   :  { %6101 = vadd.xlane.f32.xlu1 %v6100_v23 }
0x3f51   :  { %v6103_v51 = vsel %vm79_vm0, %v6099_v0, 0.0 }
0x3f52   :  { %6104 = vadd.xlane.f32.xlu0 %v6103_v51 }
0x3fdd   :  { %v6102_v5 = vpop.xlane.xlu1 %6101 }
0x3fde   :  { %v6106_v49 = vmul.f32 0.03125, %v6102_v5 }
0x3fdf   :  { %v6105_v7 = vpop.xlane.xlu0 %6104 }
0x3fe0   :  { %v6108_v44 = vadd.f32 1e-05, %v6106_v49  ;;  %v6107_v36 = vmul.f32 0.03125, %v6105_v7 }
0x3fe2   :  { %7461 = vrsqrt.f32 %v6108_v44  ;;  %v6109_v6 = vadd.f32 1e-05, %v6107_v36 }
0x3fe4   :  { %7463 = vrsqrt.f32 %v6109_v6 }
0x3fec   :  { %v7462_v56 = vpop.eup %7461 }
0x3fed   :  { %v6112_v32 = vmul.f32 %v7462_v56, %v6096_v18 }
0x3fee   :  { %v7464_v27 = vpop.eup %7463 }
0x3fef   :  { %v6113_v29 = vmul.f32 %v7464_v27, %v6097_v17  ;;  %v6118_v30 = vmul.f32 %v6117_v46, %v6112_v32 }
0x3ff1   :  { %v6119_v9 = vmul.f32 %v6117_v46, %v6113_v29  ;;  %v6124_v28 = vadd.f32 %v6123_v41, %v6118_v30 }
0x3ff3   :  { %v6125_v31 = vadd.f32 %v6123_v41, %v6119_v9  ;;  %6126 = vst.msk [vmem:[#allocation2] sm:$0xff] %vm79_vm0, %v6124_v28 }
0x3ff5   :  { %6127 = vst.msk [vmem:[#allocation2 + $0x8] sm:$0xff] %vm79_vm0, %v6125_v31 }
0x3ff6   :  { %7481 = shalt.err (!%p7478_p4)
}
0x3ff7   :  { %s7482_s22 = scalar_lea.hbm %s8773_s9, 256 }
0x3ff8   :  { %p7483_p5 = scmp.ne.s32.totalorder %s8773_s9, %s7482_s22  ;;  %p7486_p6 = scmp.lt.u32.totalorder %s7482_s22, %s8773_s9 }
0x3ffa   :  { %p7488_p7 = pnand %p7486_p6, %p7483_p5 }
0x3ffc   :  { %7491 = shalt.err (!%p7488_p7)
}
0x3ffd   :  { %s7508_s6 = smov 128   ;;  %s7509_s23 = smov 8  }
0x3ffe   :  { %6139 = dma.vmem_to_hbm [thread:$0]  %s6134_s8, 256, %s8773_s9, [#allocation3], %s7508_s6, %s7508_s6, %s7509_s23  }
0x3fff   :  { %7492 = dma.done.wait [#allocation3], 256  }
0x4000   :  { %7493 = vsyncadd [#allocation3], 4294967040 }
0x4001   :  { %6143 = vsyncpa [#allocation3], 1 }

</bundles_post_ra>
